<compile_context>
chip_gen: v5e
topology: v5e:2x2
jax: 0.10.0
libtpu: 0.0.40
codegen_flags: <defaults>
</compile_context>

<pallas_src>
import numpy as np
import jax
import jax.numpy as jnp
from jax.experimental import pallas as pl
from jax.experimental.pallas import tpu as pltpu


def _vspec():
    return pl.BlockSpec(memory_space=pltpu.MemorySpace.VMEM)


def _sigmoid(x):
    # exp-based logistic; identical math to torch.sigmoid in f32.
    return 1.0 / (1.0 + jnp.exp(-x))


def _batchnorm(x, eps=1e-5):
    # BatchNorm1d, training mode, default affine (gamma=1, beta=0), biased var.
    mean = jnp.mean(x, axis=0, keepdims=True)
    var = jnp.mean((x - mean) ** 2, axis=0, keepdims=True)
    return (x - mean) * jax.lax.rsqrt(var + eps)


# ------------------------------ fused kernel --------------------------------

def _make_fused_kernel(L, N, T, H, batch_size):
    M = H                 # composer mem_dim == hidden_dim
    B1 = 2 * L * N        # both condition streams batched through LSTM1

    def kernel(x12_ref, feat_ref, oh_ref,
               l1_wih_ref, l1_whh_ref, l1_b_ref,
               cm_w_ref, cm_b_ref,
               l2_wih_ref, l2_b_ref,
               c_win_ref, c_bin_ref, c_wlr_ref, c_blr_ref,
               m2_w_ref, m2_b_ref, m3_w_ref, m3_b_ref,
               mo_w_ref, mo_b_ref,
               out_ref):
        f32 = jnp.float32

        # ---------- LSTM1 over both condition streams at once ----------
        wih = l1_wih_ref[...]
        whh = l1_whh_ref[...]
        lb = l1_b_ref[...]
        lane4h = jax.lax.broadcasted_iota(jnp.int32, (B1, 4 * H), 1)
        is_g_gate = (lane4h >= 2 * H) & (lane4h < 3 * H)     # tanh gate (PyTorch i,f,g,o)
        h = jnp.zeros((B1, H), f32)
        c = jnp.zeros((B1, H), f32)
        for t in range(T):                                   # static unroll (T small)
            x_t = x12_ref[t]
            gates = (jnp.dot(x_t, wih, preferred_element_type=f32)
                     + jnp.dot(h, whh, preferred_element_type=f32) + lb)
            act = jnp.where(is_g_gate, jnp.tanh(gates), _sigmoid(gates))
            i_g = act[:, 0:H]
            f_g = act[:, H:2 * H]
            g_g = act[:, 2 * H:3 * H]
            o_g = act[:, 3 * H:4 * H]
            c = f_g * c + i_g * g_g
            h = o_g * jnp.tanh(c)

        # ---------- condition_mlp + ReLU (both halves in one matmul) ----------
        lo_all = jnp.maximum(
            jnp.dot(h, cm_w_ref[...], preferred_element_type=f32) + cm_b_ref[...], 0.0)
        lo = 0.5 * (lo_all[:L * N] + lo_all[L * N:])
        lo = _batchnorm(lo)                                   # batch_norm1

        # ---------- per-node features: cat(operators, extra, card, lo) ----------
        out2d = jnp.concatenate([feat_ref[...], lo], axis=1)  # (L*N, 24+hd)

        # ---------- LSTM2 on last level (seq_len == 1, zero init state) ----------
        x_last = out2d[(L - 1) * N:L * N, :]
        g2 = jnp.dot(x_last, l2_wih_ref[...], preferred_element_type=f32) + l2_b_ref[...]
        lane4h_n = jax.lax.broadcasted_iota(jnp.int32, (N, 4 * H), 1)
        is_g_n = (lane4h_n >= 2 * H) & (lane4h_n < 3 * H)
        act2 = jnp.where(is_g_n, jnp.tanh(g2), _sigmoid(g2))
        i2 = act2[:, 0:H]
        gc2 = act2[:, 2 * H:3 * H]
        o2 = act2[:, 3 * H:4 * H]
        c_last = i2 * gc2                                     # f*c0 == 0 exactly
        h_last = o2 * jnp.tanh(c_last)

        # hid/cid carried across tree levels (row-0 slice of the torch broadcast).
        hid_row = h_last                                      # torch `hid` (h_n)
        cid_row = c_last                                      # torch `cid` (c_n)

        c_win = c_win_ref[...]
        c_bin = c_bin_ref[...]
        c_wlr = c_wlr_ref[...]
        c_blr = c_blr_ref[...]
        lane5m = jax.lax.broadcasted_iota(jnp.int32, (N, 5 * M), 1)
        is_u_gate = lane5m >= 4 * M                            # gate order i,lf,rf,o,u
        zrow = jnp.zeros((1, M), f32)

        for idx in reversed(range(L - 1)):                     # static unroll
            oh_l = oh_ref[2 * idx]                             # (N, N+1) one-hot left
            oh_r = oh_ref[2 * idx + 1]                         # (N, N+1) one-hot right
            nh = jnp.concatenate([zrow, hid_row], axis=0)      # pad slot 0 = zeros
            nc = jnp.concatenate([zrow, cid_row], axis=0)
            hl = jnp.dot(oh_l, nh, preferred_element_type=f32)  # gather via one-hot
            hr = jnp.dot(oh_r, nh, preferred_element_type=f32)
            cl = jnp.dot(oh_l, nc, preferred_element_type=f32)
            cr = jnp.dot(oh_r, nc, preferred_element_type=f32)

            x0 = out2d[idx * N:idx * N + 1, :]                 # node 0 of this level
            x_lin = jnp.dot(x0, c_win, preferred_element_type=f32) + c_bin  # (1, M)
            hcat = jnp.concatenate([hl, hr], axis=1)           # (N, 2M)
            g_h = jnp.dot(hcat, c_wlr, preferred_element_type=f32) + c_blr  # (N, 5M)
            pre = g_h + jnp.concatenate([x_lin] * 5, axis=1)
            act = jnp.where(is_u_gate, jnp.tanh(pre), _sigmoid(pre))
            i_c = act[:, 0:M]
            lf = act[:, M:2 * M]
            rf = act[:, 2 * M:3 * M]
            o_c = act[:, 3 * M:4 * M]
            u_c = act[:, 4 * M:5 * M]
            c_new = i_c * u_c + lf * cl + rf * cr
            h_new = o_c * jnp.tanh(c_new)
            # NOTE: reproduces the original code exactly: composer returns (c, h)
            # and the caller assigns them to (hid, cid) in that order.
            hid_row, cid_row = c_new, h_new

        # ---------- task-1 head ----------
        last = hid_row[0:batch_size, :]
        o = _batchnorm(last)                                                  # bn2
        t1 = jnp.maximum(jnp.dot(o, m2_w_ref[...], preferred_element_type=f32)
                         + m2_b_ref[...], 0.0)
        t1 = _batchnorm(t1)                                                   # bn3
        t1 = jnp.maximum(jnp.dot(t1, m3_w_ref[...], preferred_element_type=f32)
                         + m3_b_ref[...], 0.0)
        t1 = _sigmoid(jnp.dot(t1, mo_w_ref[...], preferred_element_type=f32)
                      + mo_b_ref[...])
        out_ref[...] = t1.astype(out_ref.dtype)

    return kernel


# ------------------------------ parameters ---------------------------------

def init_params(key, input_dim, hidden_dim, hid_dim):
    H, hd = hidden_dim, hid_dim
    in2 = 15 + 7 + 2 + hd
    keys = iter(jax.random.split(key, 64))

    def lin_t(in_d, out_d, scale=0.1):
        w = jax.random.normal(next(keys), (in_d, out_d), jnp.float32) * scale
        b = jax.random.normal(next(keys), (1, out_d), jnp.float32) * scale
        return w, b

    def lstm_p(in_d):
        wih_t = jax.random.normal(next(keys), (in_d, 4 * H), jnp.float32) * 0.1
        whh_t = jax.random.normal(next(keys), (H, 4 * H), jnp.float32) * 0.1
        b = jax.random.normal(next(keys), (1, 4 * H), jnp.float32) * 0.1  # b_ih + b_hh
        return dict(wih_t=wih_t, whh_t=whh_t, b=b)

    params = {
        "lstm1": lstm_p(input_dim),
        "lstm2": lstm_p(in2),   # whh_t unused in kernel: seq_len==1 & zero init state
        "condition_mlp": lin_t(H, hd),
        "hid_mlp2_task1": lin_t(H, hd),
        "hid_mlp3_task1": lin_t(hd, hd),
        "out_mlp2_task1": lin_t(hd, 1),
    }

    M = H
    win_t, b_in = lin_t(in2, M)
    lw, lb, rw, rb = [], [], [], []
    for _ in range(5):  # gate order: i, lf, rf, o, u (left & right Linear each)
        w, b = lin_t(M, M); lw.append(w); lb.append(b)
        w, b = lin_t(M, M); rw.append(w); rb.append(b)
    wl = jnp.concatenate(lw, axis=1); bl = jnp.concatenate(lb, axis=1)
    wr = jnp.concatenate(rw, axis=1); br = jnp.concatenate(rb, axis=1)
    params["composer"] = dict(
        win_t=win_t, b_in=b_in,
        wlr_t=jnp.concatenate([wl, wr], axis=0),   # (2M, 5M) merged left|right
        blr=bl + br,                               # (1, 5M)  merged bias
    )
    return params


# ------------------------------- forward -----------------------------------

def my_representation_forward(params, operators, extra_infos, cardinalities,
                              condition1s, condition2s, mapping, batch_size,
                              hidden_dim, hid_dim):
    L, N, T, D = condition1s.shape
    H = hidden_dim

    # Both LSTM1 streams batched together, time-major for clean leading-dim steps.
    x12 = jnp.concatenate([condition1s.reshape(L * N, T, D),
                           condition2s.reshape(L * N, T, D)], axis=0)
    x12 = jnp.transpose(x12, (1, 0, 2))                           # (T, 2*L*N, D)

    feat2d = jnp.concatenate([operators, extra_infos, cardinalities],
                             axis=2).reshape(L * N, 15 + 7 + 2)

    # One-hot matrices for the tree gathers (index 0 == the zero pad slot).
    onehots = jax.nn.one_hot(mapping, N + 1, dtype=jnp.float32)   # (L, N, 2, N+1)
    onehots = jnp.transpose(onehots, (0, 2, 1, 3)).reshape(2 * L, N, N + 1)

    kern = _make_fused_kernel(L, N, T, H, batch_size)
    cp = params["composer"]
    out = pl.pallas_call(
        kern,
        out_shape=jax.ShapeDtypeStruct((batch_size, 1), jnp.float32),
        in_specs=[_vspec()] * 20,
        out_specs=_vspec(),
    )(x12, feat2d, onehots,
      params["lstm1"]["wih_t"], params["lstm1"]["whh_t"], params["lstm1"]["b"],
      params["condition_mlp"][0], params["condition_mlp"][1],
      params["lstm2"]["wih_t"], params["lstm2"]["b"],
      cp["win_t"], cp["b_in"], cp["wlr_t"], cp["blr"],
      params["hid_mlp2_task1"][0], params["hid_mlp2_task1"][1],
      params["hid_mlp3_task1"][0], params["hid_mlp3_task1"][1],
      params["out_mlp2_task1"][0], params["out_mlp2_task1"][1])
    return out


# --------------------------------- main -------------------------------------

if __name__ == "__main__":
    input_dim, hidden_dim, hid_dim = 10, 16, 12
    L, N, T = 4, 8, 3                         # num_level, nodes/level, conds/node

    params = init_params(jax.random.PRNGKey(42), input_dim, hidden_dim, hid_dim)

    key = jax.random.PRNGKey(0)
    kk = jax.random.split(key, 8)
    operators = jax.random.uniform(kk[0], (L, N, 15), minval=0.1, maxval=1.0)
    operators = operators.at[0, 5:, :].set(0.0)   # => batch_size == 5
    extra_infos = jax.random.uniform(kk[1], (L, N, 7))
    cardinalities = jax.random.uniform(kk[2], (L, N, 2))
    condition1s = jax.random.normal(kk[3], (L, N, T, input_dim))
    condition2s = jax.random.normal(kk[4], (L, N, T, input_dim))
    mapping = jax.random.randint(kk[5], (L, N, 2), 0, N + 1)

    # Host-side batch_size scan (same semantics as the PyTorch python loop).
    ops0 = np.asarray(operators[0])
    batch_size = 0
    for i in range(ops0.shape[0]):
        if ops0[i].sum() != 0:
            batch_size += 1
        else:
            break

    fwd = jax.jit(my_representation_forward, static_argnums=(7, 8, 9))
    out_task1 = fwd(params, operators, extra_infos, cardinalities,
                    condition1s, condition2s, mapping, batch_size,
                    hidden_dim, hid_dim)
    out_task1 = jax.block_until_ready(out_task1)
    assert out_task1.shape == (batch_size, 1)
    assert bool(jnp.all(jnp.isfinite(out_task1)))
    print("KERNEL_OK")
</pallas_src>

<mosaic_0001>
module attributes {stable_mosaic.version = 11 : i64} {
  func.func @kernel(%arg0: memref<3x64x10xf32, #tpu.memory_space<vmem>>, %arg1: memref<32x24xf32, #tpu.memory_space<vmem>>, %arg2: memref<8x8x9xf32, #tpu.memory_space<vmem>>, %arg3: memref<10x64xf32, #tpu.memory_space<vmem>>, %arg4: memref<16x64xf32, #tpu.memory_space<vmem>>, %arg5: memref<1x64xf32, #tpu.memory_space<vmem>>, %arg6: memref<16x12xf32, #tpu.memory_space<vmem>>, %arg7: memref<1x12xf32, #tpu.memory_space<vmem>>, %arg8: memref<36x64xf32, #tpu.memory_space<vmem>>, %arg9: memref<1x64xf32, #tpu.memory_space<vmem>>, %arg10: memref<36x16xf32, #tpu.memory_space<vmem>>, %arg11: memref<1x16xf32, #tpu.memory_space<vmem>>, %arg12: memref<32x80xf32, #tpu.memory_space<vmem>>, %arg13: memref<1x80xf32, #tpu.memory_space<vmem>>, %arg14: memref<16x12xf32, #tpu.memory_space<vmem>>, %arg15: memref<1x12xf32, #tpu.memory_space<vmem>>, %arg16: memref<12x12xf32, #tpu.memory_space<vmem>>, %arg17: memref<1x12xf32, #tpu.memory_space<vmem>>, %arg18: memref<12x1xf32, #tpu.memory_space<vmem>>, %arg19: memref<1x1xf32, #tpu.memory_space<vmem>>, %arg20: memref<5x1xf32, #tpu.memory_space<vmem>>) attributes {dimension_semantics = [], scalar_prefetch = 0 : i64, scratch_operands = 0 : i64, tpu.core_type = #tpu.core_type<tc>} {
    %c0 = arith.constant 0 : index
    %c0_0 = arith.constant 0 : index
    %0 = vector.load %arg3[%c0, %c0_0] : memref<10x64xf32, #tpu.memory_space<vmem>>, vector<10x64xf32>
    %c0_1 = arith.constant 0 : index
    %c0_2 = arith.constant 0 : index
    %1 = vector.load %arg4[%c0_1, %c0_2] : memref<16x64xf32, #tpu.memory_space<vmem>>, vector<16x64xf32>
    %c0_3 = arith.constant 0 : index
    %c0_4 = arith.constant 0 : index
    %2 = vector.load %arg5[%c0_3, %c0_4] : memref<1x64xf32, #tpu.memory_space<vmem>>, vector<1x64xf32>
    %3 = tpu.iota {dimensions = array<i32: 1>} : vector<64x64xi32>
    %c32_i32 = arith.constant 32 : i32
    %4 = vector.broadcast %c32_i32 : i32 to vector<64x64xi32>
    %5 = arith.cmpi sge, %3, %4 : vector<64x64xi32>
    %c48_i32 = arith.constant 48 : i32
    %6 = vector.broadcast %c48_i32 : i32 to vector<64x64xi32>
    %7 = arith.cmpi slt, %3, %6 : vector<64x64xi32>
    %8 = arith.andi %5, %7 : vector<64x64xi1>
    %cst = arith.constant 0.000000e+00 : f32
    %9 = vector.broadcast %cst : f32 to vector<64x16xf32>
    %cst_5 = arith.constant 0.000000e+00 : f32
    %10 = vector.broadcast %cst_5 : f32 to vector<64x16xf32>
    %c0_6 = arith.constant 0 : index
    %c0_7 = arith.constant 0 : index
    %c0_8 = arith.constant 0 : index
    %11 = vector.load %arg0[%c0_6, %c0_7, %c0_8] : memref<3x64x10xf32, #tpu.memory_space<vmem>>, vector<1x64x10xf32>
    %12 = vector.shape_cast %11 : vector<1x64x10xf32> to vector<64x10xf32>
    %cst_9 = arith.constant dense<0.000000e+00> : vector<64x64xf32>
    %13 = tpu.matmul %12, %0, %cst_9 {dimension_numbers = #tpu.dot_dimension_numbers<[1], [0], [0], [1], [0, 0, 1, 1], [], []>} : vector<64x10xf32>, vector<10x64xf32>, vector<64x64xf32> -> vector<64x64xf32>
    %cst_10 = arith.constant dense<0.000000e+00> : vector<64x64xf32>
    %14 = tpu.matmul %9, %1, %cst_10 {dimension_numbers = #tpu.dot_dimension_numbers<[1], [0], [0], [1], [0, 0, 1, 1], [], []>} : vector<64x16xf32>, vector<16x64xf32>, vector<64x64xf32> -> vector<64x64xf32>
    %15 = arith.addf %13, %14 : vector<64x64xf32>
    %16 = vector.broadcast %2 : vector<1x64xf32> to vector<64x64xf32>
    %17 = arith.addf %15, %16 : vector<64x64xf32>
    %18 = math.tanh %17 : vector<64x64xf32>
    %cst_11 = arith.constant 0.000000e+00 : f32
    %19 = vector.broadcast %cst_11 : f32 to vector<64x64xf32>
    %20 = arith.subf %19, %17 : vector<64x64xf32>
    %21 = math.exp %20 : vector<64x64xf32>
    %cst_12 = arith.constant 1.000000e+00 : f32
    %22 = vector.broadcast %cst_12 : f32 to vector<64x64xf32>
    %23 = arith.addf %22, %21 : vector<64x64xf32>
    %cst_13 = arith.constant 1.000000e+00 : f32
    %24 = vector.broadcast %cst_13 : f32 to vector<64x64xf32>
    %25 = arith.divf %24, %23 : vector<64x64xf32>
    %26 = arith.select %8, %18, %25 : vector<64x64xi1>, vector<64x64xf32>
    %27 = vector.extract_strided_slice %26 {offsets = [0, 0], sizes = [64, 16], strides = [1, 1]} : vector<64x64xf32> to vector<64x16xf32>
    %28 = vector.extract_strided_slice %26 {offsets = [0, 16], sizes = [64, 16], strides = [1, 1]} : vector<64x64xf32> to vector<64x16xf32>
    %29 = vector.extract_strided_slice %26 {offsets = [0, 32], sizes = [64, 16], strides = [1, 1]} : vector<64x64xf32> to vector<64x16xf32>
    %30 = vector.extract_strided_slice %26 {offsets = [0, 48], sizes = [64, 16], strides = [1, 1]} : vector<64x64xf32> to vector<64x16xf32>
    %31 = arith.mulf %28, %10 : vector<64x16xf32>
    %32 = arith.mulf %27, %29 : vector<64x16xf32>
    %33 = arith.addf %31, %32 : vector<64x16xf32>
    %34 = math.tanh %33 : vector<64x16xf32>
    %35 = arith.mulf %30, %34 : vector<64x16xf32>
    %c1 = arith.constant 1 : index
    %c0_14 = arith.constant 0 : index
    %c0_15 = arith.constant 0 : index
    %36 = vector.load %arg0[%c1, %c0_14, %c0_15] : memref<3x64x10xf32, #tpu.memory_space<vmem>>, vector<1x64x10xf32>
    %37 = vector.shape_cast %36 : vector<1x64x10xf32> to vector<64x10xf32>
    %cst_16 = arith.constant dense<0.000000e+00> : vector<64x64xf32>
    %38 = tpu.matmul %37, %0, %cst_16 {dimension_numbers = #tpu.dot_dimension_numbers<[1], [0], [0], [1], [0, 0, 1, 1], [], []>} : vector<64x10xf32>, vector<10x64xf32>, vector<64x64xf32> -> vector<64x64xf32>
    %cst_17 = arith.constant dense<0.000000e+00> : vector<64x64xf32>
    %39 = tpu.matmul %35, %1, %cst_17 {dimension_numbers = #tpu.dot_dimension_numbers<[1], [0], [0], [1], [0, 0, 1, 1], [], []>} : vector<64x16xf32>, vector<16x64xf32>, vector<64x64xf32> -> vector<64x64xf32>
    %40 = arith.addf %38, %39 : vector<64x64xf32>
    %41 = vector.broadcast %2 : vector<1x64xf32> to vector<64x64xf32>
    %42 = arith.addf %40, %41 : vector<64x64xf32>
    %43 = math.tanh %42 : vector<64x64xf32>
    %cst_18 = arith.constant 0.000000e+00 : f32
    %44 = vector.broadcast %cst_18 : f32 to vector<64x64xf32>
    %45 = arith.subf %44, %42 : vector<64x64xf32>
    %46 = math.exp %45 : vector<64x64xf32>
    %cst_19 = arith.constant 1.000000e+00 : f32
    %47 = vector.broadcast %cst_19 : f32 to vector<64x64xf32>
    %48 = arith.addf %47, %46 : vector<64x64xf32>
    %cst_20 = arith.constant 1.000000e+00 : f32
    %49 = vector.broadcast %cst_20 : f32 to vector<64x64xf32>
    %50 = arith.divf %49, %48 : vector<64x64xf32>
    %51 = arith.select %8, %43, %50 : vector<64x64xi1>, vector<64x64xf32>
    %52 = vector.extract_strided_slice %51 {offsets = [0, 0], sizes = [64, 16], strides = [1, 1]} : vector<64x64xf32> to vector<64x16xf32>
    %53 = vector.extract_strided_slice %51 {offsets = [0, 16], sizes = [64, 16], strides = [1, 1]} : vector<64x64xf32> to vector<64x16xf32>
    %54 = vector.extract_strided_slice %51 {offsets = [0, 32], sizes = [64, 16], strides = [1, 1]} : vector<64x64xf32> to vector<64x16xf32>
    %55 = vector.extract_strided_slice %51 {offsets = [0, 48], sizes = [64, 16], strides = [1, 1]} : vector<64x64xf32> to vector<64x16xf32>
    %56 = arith.mulf %53, %33 : vector<64x16xf32>
    %57 = arith.mulf %52, %54 : vector<64x16xf32>
    %58 = arith.addf %56, %57 : vector<64x16xf32>
    %59 = math.tanh %58 : vector<64x16xf32>
    %60 = arith.mulf %55, %59 : vector<64x16xf32>
    %c2 = arith.constant 2 : index
    %c0_21 = arith.constant 0 : index
    %c0_22 = arith.constant 0 : index
    %61 = vector.load %arg0[%c2, %c0_21, %c0_22] : memref<3x64x10xf32, #tpu.memory_space<vmem>>, vector<1x64x10xf32>
    %62 = vector.shape_cast %61 : vector<1x64x10xf32> to vector<64x10xf32>
    %cst_23 = arith.constant dense<0.000000e+00> : vector<64x64xf32>
    %63 = tpu.matmul %62, %0, %cst_23 {dimension_numbers = #tpu.dot_dimension_numbers<[1], [0], [0], [1], [0, 0, 1, 1], [], []>} : vector<64x10xf32>, vector<10x64xf32>, vector<64x64xf32> -> vector<64x64xf32>
    %cst_24 = arith.constant dense<0.000000e+00> : vector<64x64xf32>
    %64 = tpu.matmul %60, %1, %cst_24 {dimension_numbers = #tpu.dot_dimension_numbers<[1], [0], [0], [1], [0, 0, 1, 1], [], []>} : vector<64x16xf32>, vector<16x64xf32>, vector<64x64xf32> -> vector<64x64xf32>
    %65 = arith.addf %63, %64 : vector<64x64xf32>
    %66 = vector.broadcast %2 : vector<1x64xf32> to vector<64x64xf32>
    %67 = arith.addf %65, %66 : vector<64x64xf32>
    %68 = math.tanh %67 : vector<64x64xf32>
    %cst_25 = arith.constant 0.000000e+00 : f32
    %69 = vector.broadcast %cst_25 : f32 to vector<64x64xf32>
    %70 = arith.subf %69, %67 : vector<64x64xf32>
    %71 = math.exp %70 : vector<64x64xf32>
    %cst_26 = arith.constant 1.000000e+00 : f32
    %72 = vector.broadcast %cst_26 : f32 to vector<64x64xf32>
    %73 = arith.addf %72, %71 : vector<64x64xf32>
    %cst_27 = arith.constant 1.000000e+00 : f32
    %74 = vector.broadcast %cst_27 : f32 to vector<64x64xf32>
    %75 = arith.divf %74, %73 : vector<64x64xf32>
    %76 = arith.select %8, %68, %75 : vector<64x64xi1>, vector<64x64xf32>
    %77 = vector.extract_strided_slice %76 {offsets = [0, 0], sizes = [64, 16], strides = [1, 1]} : vector<64x64xf32> to vector<64x16xf32>
    %78 = vector.extract_strided_slice %76 {offsets = [0, 16], sizes = [64, 16], strides = [1, 1]} : vector<64x64xf32> to vector<64x16xf32>
    %79 = vector.extract_strided_slice %76 {offsets = [0, 32], sizes = [64, 16], strides = [1, 1]} : vector<64x64xf32> to vector<64x16xf32>
    %80 = vector.extract_strided_slice %76 {offsets = [0, 48], sizes = [64, 16], strides = [1, 1]} : vector<64x64xf32> to vector<64x16xf32>
    %81 = arith.mulf %78, %58 : vector<64x16xf32>
    %82 = arith.mulf %77, %79 : vector<64x16xf32>
    %83 = arith.addf %81, %82 : vector<64x16xf32>
    %84 = math.tanh %83 : vector<64x16xf32>
    %85 = arith.mulf %80, %84 : vector<64x16xf32>
    %c0_28 = arith.constant 0 : index
    %c0_29 = arith.constant 0 : index
    %86 = vector.load %arg6[%c0_28, %c0_29] : memref<16x12xf32, #tpu.memory_space<vmem>>, vector<16x12xf32>
    %cst_30 = arith.constant dense<0.000000e+00> : vector<64x12xf32>
    %87 = tpu.matmul %85, %86, %cst_30 {dimension_numbers = #tpu.dot_dimension_numbers<[1], [0], [0], [1], [0, 0, 1, 1], [], []>} : vector<64x16xf32>, vector<16x12xf32>, vector<64x12xf32> -> vector<64x12xf32>
    %c0_31 = arith.constant 0 : index
    %c0_32 = arith.constant 0 : index
    %88 = vector.load %arg7[%c0_31, %c0_32] : memref<1x12xf32, #tpu.memory_space<vmem>>, vector<1x12xf32>
    %89 = vector.broadcast %88 : vector<1x12xf32> to vector<64x12xf32>
    %90 = arith.addf %87, %89 : vector<64x12xf32>
    %cst_33 = arith.constant 0.000000e+00 : f32
    %91 = vector.broadcast %cst_33 : f32 to vector<64x12xf32>
    %92 = arith.maximumf %90, %91 : vector<64x12xf32>
    %93 = vector.extract_strided_slice %92 {offsets = [0, 0], sizes = [32, 12], strides = [1, 1]} : vector<64x12xf32> to vector<32x12xf32>
    %94 = vector.extract_strided_slice %92 {offsets = [32, 0], sizes = [32, 12], strides = [1, 1]} : vector<64x12xf32> to vector<32x12xf32>
    %95 = arith.addf %93, %94 : vector<32x12xf32>
    %cst_34 = arith.constant 5.000000e-01 : f32
    %96 = vector.broadcast %cst_34 : f32 to vector<32x12xf32>
    %97 = arith.mulf %96, %95 : vector<32x12xf32>
    %cst_35 = arith.constant dense<0.000000e+00> : vector<12xf32>
    %98 = vector.multi_reduction <add>, %97, %cst_35 [0] : vector<32x12xf32> to vector<12xf32>
    %99 = vector.shape_cast %98 : vector<12xf32> to vector<1x12xf32>
    %cst_36 = arith.constant 3.200000e+01 : f32
    %100 = vector.broadcast %cst_36 : f32 to vector<1x12xf32>
    %101 = arith.divf %99, %100 : vector<1x12xf32>
    %102 = vector.broadcast %101 : vector<1x12xf32> to vector<32x12xf32>
    %103 = arith.subf %97, %102 : vector<32x12xf32>
    %104 = arith.mulf %103, %103 : vector<32x12xf32>
    %cst_37 = arith.constant dense<0.000000e+00> : vector<12xf32>
    %105 = vector.multi_reduction <add>, %104, %cst_37 [0] : vector<32x12xf32> to vector<12xf32>
    %106 = vector.shape_cast %105 : vector<12xf32> to vector<1x12xf32>
    %cst_38 = arith.constant 3.200000e+01 : f32
    %107 = vector.broadcast %cst_38 : f32 to vector<1x12xf32>
    %108 = arith.divf %106, %107 : vector<1x12xf32>
    %109 = vector.broadcast %101 : vector<1x12xf32> to vector<32x12xf32>
    %110 = arith.subf %97, %109 : vector<32x12xf32>
    %cst_39 = arith.constant 9.99999974E-6 : f32
    %111 = vector.broadcast %cst_39 : f32 to vector<1x12xf32>
    %112 = arith.addf %108, %111 : vector<1x12xf32>
    %113 = math.rsqrt %112 : vector<1x12xf32>
    %114 = vector.broadcast %113 : vector<1x12xf32> to vector<32x12xf32>
    %115 = arith.mulf %110, %114 : vector<32x12xf32>
    %c0_40 = arith.constant 0 : index
    %c0_41 = arith.constant 0 : index
    %116 = vector.load %arg1[%c0_40, %c0_41] : memref<32x24xf32, #tpu.memory_space<vmem>>, vector<32x24xf32>
    %117 = tpu.concatenate %116, %115 in 1 : vector<32x24xf32>, vector<32x12xf32> -> vector<32x36xf32>
    %118 = vector.extract_strided_slice %117 {offsets = [24, 0], sizes = [8, 36], strides = [1, 1]} : vector<32x36xf32> to vector<8x36xf32>
    %c0_42 = arith.constant 0 : index
    %c0_43 = arith.constant 0 : index
    %119 = vector.load %arg8[%c0_42, %c0_43] : memref<36x64xf32, #tpu.memory_space<vmem>>, vector<36x64xf32>
    %cst_44 = arith.constant dense<0.000000e+00> : vector<8x64xf32>
    %120 = tpu.matmul %118, %119, %cst_44 {dimension_numbers = #tpu.dot_dimension_numbers<[1], [0], [0], [1], [0, 0, 1, 1], [], []>} : vector<8x36xf32>, vector<36x64xf32>, vector<8x64xf32> -> vector<8x64xf32>
    %c0_45 = arith.constant 0 : index
    %c0_46 = arith.constant 0 : index
    %121 = vector.load %arg9[%c0_45, %c0_46] : memref<1x64xf32, #tpu.memory_space<vmem>>, vector<1x64xf32>
    %122 = vector.broadcast %121 : vector<1x64xf32> to vector<8x64xf32>
    %123 = arith.addf %120, %122 : vector<8x64xf32>
    %124 = tpu.iota {dimensions = array<i32: 1>} : vector<8x64xi32>
    %c32_i32_47 = arith.constant 32 : i32
    %125 = vector.broadcast %c32_i32_47 : i32 to vector<8x64xi32>
    %126 = arith.cmpi sge, %124, %125 : vector<8x64xi32>
    %c48_i32_48 = arith.constant 48 : i32
    %127 = vector.broadcast %c48_i32_48 : i32 to vector<8x64xi32>
    %128 = arith.cmpi slt, %124, %127 : vector<8x64xi32>
    %129 = arith.andi %126, %128 : vector<8x64xi1>
    %130 = math.tanh %123 : vector<8x64xf32>
    %cst_49 = arith.constant 0.000000e+00 : f32
    %131 = vector.broadcast %cst_49 : f32 to vector<8x64xf32>
    %132 = arith.subf %131, %123 : vector<8x64xf32>
    %133 = math.exp %132 : vector<8x64xf32>
    %cst_50 = arith.constant 1.000000e+00 : f32
    %134 = vector.broadcast %cst_50 : f32 to vector<8x64xf32>
    %135 = arith.addf %134, %133 : vector<8x64xf32>
    %cst_51 = arith.constant 1.000000e+00 : f32
    %136 = vector.broadcast %cst_51 : f32 to vector<8x64xf32>
    %137 = arith.divf %136, %135 : vector<8x64xf32>
    %138 = arith.select %129, %130, %137 : vector<8x64xi1>, vector<8x64xf32>
    %139 = vector.extract_strided_slice %138 {offsets = [0, 0], sizes = [8, 16], strides = [1, 1]} : vector<8x64xf32> to vector<8x16xf32>
    %140 = vector.extract_strided_slice %138 {offsets = [0, 32], sizes = [8, 16], strides = [1, 1]} : vector<8x64xf32> to vector<8x16xf32>
    %141 = vector.extract_strided_slice %138 {offsets = [0, 48], sizes = [8, 16], strides = [1, 1]} : vector<8x64xf32> to vector<8x16xf32>
    %142 = arith.mulf %139, %140 : vector<8x16xf32>
    %143 = math.tanh %142 : vector<8x16xf32>
    %144 = arith.mulf %141, %143 : vector<8x16xf32>
    %c0_52 = arith.constant 0 : index
    %c0_53 = arith.constant 0 : index
    %145 = vector.load %arg10[%c0_52, %c0_53] : memref<36x16xf32, #tpu.memory_space<vmem>>, vector<36x16xf32>
    %c0_54 = arith.constant 0 : index
    %c0_55 = arith.constant 0 : index
    %146 = vector.load %arg11[%c0_54, %c0_55] : memref<1x16xf32, #tpu.memory_space<vmem>>, vector<1x16xf32>
    %c0_56 = arith.constant 0 : index
    %c0_57 = arith.constant 0 : index
    %147 = vector.load %arg12[%c0_56, %c0_57] : memref<32x80xf32, #tpu.memory_space<vmem>>, vector<32x80xf32>
    %c0_58 = arith.constant 0 : index
    %c0_59 = arith.constant 0 : index
    %148 = vector.load %arg13[%c0_58, %c0_59] : memref<1x80xf32, #tpu.memory_space<vmem>>, vector<1x80xf32>
    %149 = tpu.iota {dimensions = array<i32: 1>} : vector<8x80xi32>
    %c64_i32 = arith.constant 64 : i32
    %150 = vector.broadcast %c64_i32 : i32 to vector<8x80xi32>
    %151 = arith.cmpi sge, %149, %150 : vector<8x80xi32>
    %cst_60 = arith.constant 0.000000e+00 : f32
    %152 = vector.broadcast %cst_60 : f32 to vector<1x16xf32>
    %c4 = arith.constant 4 : index
    %c0_61 = arith.constant 0 : index
    %c0_62 = arith.constant 0 : index
    %153 = vector.load %arg2[%c4, %c0_61, %c0_62] : memref<8x8x9xf32, #tpu.memory_space<vmem>>, vector<1x8x9xf32>
    %154 = vector.shape_cast %153 : vector<1x8x9xf32> to vector<8x9xf32>
    %c5 = arith.constant 5 : index
    %c0_63 = arith.constant 0 : index
    %c0_64 = arith.constant 0 : index
    %155 = vector.load %arg2[%c5, %c0_63, %c0_64] : memref<8x8x9xf32, #tpu.memory_space<vmem>>, vector<1x8x9xf32>
    %156 = vector.shape_cast %155 : vector<1x8x9xf32> to vector<8x9xf32>
    %157 = tpu.concatenate %152, %144 in 0 : vector<1x16xf32>, vector<8x16xf32> -> vector<9x16xf32>
    %158 = tpu.concatenate %152, %142 in 0 : vector<1x16xf32>, vector<8x16xf32> -> vector<9x16xf32>
    %cst_65 = arith.constant dense<0.000000e+00> : vector<8x16xf32>
    %159 = tpu.matmul %154, %157, %cst_65 {dimension_numbers = #tpu.dot_dimension_numbers<[1], [0], [0], [1], [0, 0, 1, 1], [], []>} : vector<8x9xf32>, vector<9x16xf32>, vector<8x16xf32> -> vector<8x16xf32>
    %cst_66 = arith.constant dense<0.000000e+00> : vector<8x16xf32>
    %160 = tpu.matmul %156, %157, %cst_66 {dimension_numbers = #tpu.dot_dimension_numbers<[1], [0], [0], [1], [0, 0, 1, 1], [], []>} : vector<8x9xf32>, vector<9x16xf32>, vector<8x16xf32> -> vector<8x16xf32>
    %cst_67 = arith.constant dense<0.000000e+00> : vector<8x16xf32>
    %161 = tpu.matmul %154, %158, %cst_67 {dimension_numbers = #tpu.dot_dimension_numbers<[1], [0], [0], [1], [0, 0, 1, 1], [], []>} : vector<8x9xf32>, vector<9x16xf32>, vector<8x16xf32> -> vector<8x16xf32>
    %cst_68 = arith.constant dense<0.000000e+00> : vector<8x16xf32>
    %162 = tpu.matmul %156, %158, %cst_68 {dimension_numbers = #tpu.dot_dimension_numbers<[1], [0], [0], [1], [0, 0, 1, 1], [], []>} : vector<8x9xf32>, vector<9x16xf32>, vector<8x16xf32> -> vector<8x16xf32>
    %163 = vector.extract_strided_slice %117 {offsets = [16, 0], sizes = [1, 36], strides = [1, 1]} : vector<32x36xf32> to vector<1x36xf32>
    %cst_69 = arith.constant dense<0.000000e+00> : vector<1x16xf32>
    %164 = tpu.matmul %163, %145, %cst_69 {dimension_numbers = #tpu.dot_dimension_numbers<[1], [0], [0], [1], [0, 0, 1, 1], [], []>} : vector<1x36xf32>, vector<36x16xf32>, vector<1x16xf32> -> vector<1x16xf32>
    %165 = arith.addf %164, %146 : vector<1x16xf32>
    %166 = tpu.concatenate %159, %160 in 1 : vector<8x16xf32>, vector<8x16xf32> -> vector<8x32xf32>
    %cst_70 = arith.constant dense<0.000000e+00> : vector<8x80xf32>
    %167 = tpu.matmul %166, %147, %cst_70 {dimension_numbers = #tpu.dot_dimension_numbers<[1], [0], [0], [1], [0, 0, 1, 1], [], []>} : vector<8x32xf32>, vector<32x80xf32>, vector<8x80xf32> -> vector<8x80xf32>
    %168 = vector.broadcast %148 : vector<1x80xf32> to vector<8x80xf32>
    %169 = arith.addf %167, %168 : vector<8x80xf32>
    %170 = tpu.concatenate %165, %165, %165, %165, %165 in 1 : vector<1x16xf32>, vector<1x16xf32>, vector<1x16xf32>, vector<1x16xf32>, vector<1x16xf32> -> vector<1x80xf32>
    %171 = vector.broadcast %170 : vector<1x80xf32> to vector<8x80xf32>
    %172 = arith.addf %169, %171 : vector<8x80xf32>
    %173 = math.tanh %172 : vector<8x80xf32>
    %cst_71 = arith.constant 0.000000e+00 : f32
    %174 = vector.broadcast %cst_71 : f32 to vector<8x80xf32>
    %175 = arith.subf %174, %172 : vector<8x80xf32>
    %176 = math.exp %175 : vector<8x80xf32>
    %cst_72 = arith.constant 1.000000e+00 : f32
    %177 = vector.broadcast %cst_72 : f32 to vector<8x80xf32>
    %178 = arith.addf %177, %176 : vector<8x80xf32>
    %cst_73 = arith.constant 1.000000e+00 : f32
    %179 = vector.broadcast %cst_73 : f32 to vector<8x80xf32>
    %180 = arith.divf %179, %178 : vector<8x80xf32>
    %181 = arith.select %151, %173, %180 : vector<8x80xi1>, vector<8x80xf32>
    %182 = vector.extract_strided_slice %181 {offsets = [0, 0], sizes = [8, 16], strides = [1, 1]} : vector<8x80xf32> to vector<8x16xf32>
    %183 = vector.extract_strided_slice %181 {offsets = [0, 16], sizes = [8, 16], strides = [1, 1]} : vector<8x80xf32> to vector<8x16xf32>
    %184 = vector.extract_strided_slice %181 {offsets = [0, 32], sizes = [8, 16], strides = [1, 1]} : vector<8x80xf32> to vector<8x16xf32>
    %185 = vector.extract_strided_slice %181 {offsets = [0, 48], sizes = [8, 16], strides = [1, 1]} : vector<8x80xf32> to vector<8x16xf32>
    %186 = vector.extract_strided_slice %181 {offsets = [0, 64], sizes = [8, 16], strides = [1, 1]} : vector<8x80xf32> to vector<8x16xf32>
    %187 = arith.mulf %182, %186 : vector<8x16xf32>
    %188 = arith.mulf %183, %161 : vector<8x16xf32>
    %189 = arith.addf %187, %188 : vector<8x16xf32>
    %190 = arith.mulf %184, %162 : vector<8x16xf32>
    %191 = arith.addf %189, %190 : vector<8x16xf32>
    %192 = math.tanh %191 : vector<8x16xf32>
    %193 = arith.mulf %185, %192 : vector<8x16xf32>
    %c2_74 = arith.constant 2 : index
    %c0_75 = arith.constant 0 : index
    %c0_76 = arith.constant 0 : index
    %194 = vector.load %arg2[%c2_74, %c0_75, %c0_76] : memref<8x8x9xf32, #tpu.memory_space<vmem>>, vector<1x8x9xf32>
    %195 = vector.shape_cast %194 : vector<1x8x9xf32> to vector<8x9xf32>
    %c3 = arith.constant 3 : index
    %c0_77 = arith.constant 0 : index
    %c0_78 = arith.constant 0 : index
    %196 = vector.load %arg2[%c3, %c0_77, %c0_78] : memref<8x8x9xf32, #tpu.memory_space<vmem>>, vector<1x8x9xf32>
    %197 = vector.shape_cast %196 : vector<1x8x9xf32> to vector<8x9xf32>
    %198 = tpu.concatenate %152, %191 in 0 : vector<1x16xf32>, vector<8x16xf32> -> vector<9x16xf32>
    %199 = tpu.concatenate %152, %193 in 0 : vector<1x16xf32>, vector<8x16xf32> -> vector<9x16xf32>
    %cst_79 = arith.constant dense<0.000000e+00> : vector<8x16xf32>
    %200 = tpu.matmul %195, %198, %cst_79 {dimension_numbers = #tpu.dot_dimension_numbers<[1], [0], [0], [1], [0, 0, 1, 1], [], []>} : vector<8x9xf32>, vector<9x16xf32>, vector<8x16xf32> -> vector<8x16xf32>
    %cst_80 = arith.constant dense<0.000000e+00> : vector<8x16xf32>
    %201 = tpu.matmul %197, %198, %cst_80 {dimension_numbers = #tpu.dot_dimension_numbers<[1], [0], [0], [1], [0, 0, 1, 1], [], []>} : vector<8x9xf32>, vector<9x16xf32>, vector<8x16xf32> -> vector<8x16xf32>
    %cst_81 = arith.constant dense<0.000000e+00> : vector<8x16xf32>
    %202 = tpu.matmul %195, %199, %cst_81 {dimension_numbers = #tpu.dot_dimension_numbers<[1], [0], [0], [1], [0, 0, 1, 1], [], []>} : vector<8x9xf32>, vector<9x16xf32>, vector<8x16xf32> -> vector<8x16xf32>
    %cst_82 = arith.constant dense<0.000000e+00> : vector<8x16xf32>
    %203 = tpu.matmul %197, %199, %cst_82 {dimension_numbers = #tpu.dot_dimension_numbers<[1], [0], [0], [1], [0, 0, 1, 1], [], []>} : vector<8x9xf32>, vector<9x16xf32>, vector<8x16xf32> -> vector<8x16xf32>
    %204 = vector.extract_strided_slice %117 {offsets = [8, 0], sizes = [1, 36], strides = [1, 1]} : vector<32x36xf32> to vector<1x36xf32>
    %cst_83 = arith.constant dense<0.000000e+00> : vector<1x16xf32>
    %205 = tpu.matmul %204, %145, %cst_83 {dimension_numbers = #tpu.dot_dimension_numbers<[1], [0], [0], [1], [0, 0, 1, 1], [], []>} : vector<1x36xf32>, vector<36x16xf32>, vector<1x16xf32> -> vector<1x16xf32>
    %206 = arith.addf %205, %146 : vector<1x16xf32>
    %207 = tpu.concatenate %200, %201 in 1 : vector<8x16xf32>, vector<8x16xf32> -> vector<8x32xf32>
    %cst_84 = arith.constant dense<0.000000e+00> : vector<8x80xf32>
    %208 = tpu.matmul %207, %147, %cst_84 {dimension_numbers = #tpu.dot_dimension_numbers<[1], [0], [0], [1], [0, 0, 1, 1], [], []>} : vector<8x32xf32>, vector<32x80xf32>, vector<8x80xf32> -> vector<8x80xf32>
    %209 = vector.broadcast %148 : vector<1x80xf32> to vector<8x80xf32>
    %210 = arith.addf %208, %209 : vector<8x80xf32>
    %211 = tpu.concatenate %206, %206, %206, %206, %206 in 1 : vector<1x16xf32>, vector<1x16xf32>, vector<1x16xf32>, vector<1x16xf32>, vector<1x16xf32> -> vector<1x80xf32>
    %212 = vector.broadcast %211 : vector<1x80xf32> to vector<8x80xf32>
    %213 = arith.addf %210, %212 : vector<8x80xf32>
    %214 = math.tanh %213 : vector<8x80xf32>
    %cst_85 = arith.constant 0.000000e+00 : f32
    %215 = vector.broadcast %cst_85 : f32 to vector<8x80xf32>
    %216 = arith.subf %215, %213 : vector<8x80xf32>
    %217 = math.exp %216 : vector<8x80xf32>
    %cst_86 = arith.constant 1.000000e+00 : f32
    %218 = vector.broadcast %cst_86 : f32 to vector<8x80xf32>
    %219 = arith.addf %218, %217 : vector<8x80xf32>
    %cst_87 = arith.constant 1.000000e+00 : f32
    %220 = vector.broadcast %cst_87 : f32 to vector<8x80xf32>
    %221 = arith.divf %220, %219 : vector<8x80xf32>
    %222 = arith.select %151, %214, %221 : vector<8x80xi1>, vector<8x80xf32>
    %223 = vector.extract_strided_slice %222 {offsets = [0, 0], sizes = [8, 16], strides = [1, 1]} : vector<8x80xf32> to vector<8x16xf32>
    %224 = vector.extract_strided_slice %222 {offsets = [0, 16], sizes = [8, 16], strides = [1, 1]} : vector<8x80xf32> to vector<8x16xf32>
    %225 = vector.extract_strided_slice %222 {offsets = [0, 32], sizes = [8, 16], strides = [1, 1]} : vector<8x80xf32> to vector<8x16xf32>
    %226 = vector.extract_strided_slice %222 {offsets = [0, 48], sizes = [8, 16], strides = [1, 1]} : vector<8x80xf32> to vector<8x16xf32>
    %227 = vector.extract_strided_slice %222 {offsets = [0, 64], sizes = [8, 16], strides = [1, 1]} : vector<8x80xf32> to vector<8x16xf32>
    %228 = arith.mulf %223, %227 : vector<8x16xf32>
    %229 = arith.mulf %224, %202 : vector<8x16xf32>
    %230 = arith.addf %228, %229 : vector<8x16xf32>
    %231 = arith.mulf %225, %203 : vector<8x16xf32>
    %232 = arith.addf %230, %231 : vector<8x16xf32>
    %233 = math.tanh %232 : vector<8x16xf32>
    %234 = arith.mulf %226, %233 : vector<8x16xf32>
    %c0_88 = arith.constant 0 : index
    %c0_89 = arith.constant 0 : index
    %c0_90 = arith.constant 0 : index
    %235 = vector.load %arg2[%c0_88, %c0_89, %c0_90] : memref<8x8x9xf32, #tpu.memory_space<vmem>>, vector<1x8x9xf32>
    %236 = vector.shape_cast %235 : vector<1x8x9xf32> to vector<8x9xf32>
    %c1_91 = arith.constant 1 : index
    %c0_92 = arith.constant 0 : index
    %c0_93 = arith.constant 0 : index
    %237 = vector.load %arg2[%c1_91, %c0_92, %c0_93] : memref<8x8x9xf32, #tpu.memory_space<vmem>>, vector<1x8x9xf32>
    %238 = vector.shape_cast %237 : vector<1x8x9xf32> to vector<8x9xf32>
    %239 = tpu.concatenate %152, %232 in 0 : vector<1x16xf32>, vector<8x16xf32> -> vector<9x16xf32>
    %240 = tpu.concatenate %152, %234 in 0 : vector<1x16xf32>, vector<8x16xf32> -> vector<9x16xf32>
    %cst_94 = arith.constant dense<0.000000e+00> : vector<8x16xf32>
    %241 = tpu.matmul %236, %239, %cst_94 {dimension_numbers = #tpu.dot_dimension_numbers<[1], [0], [0], [1], [0, 0, 1, 1], [], []>} : vector<8x9xf32>, vector<9x16xf32>, vector<8x16xf32> -> vector<8x16xf32>
    %cst_95 = arith.constant dense<0.000000e+00> : vector<8x16xf32>
    %242 = tpu.matmul %238, %239, %cst_95 {dimension_numbers = #tpu.dot_dimension_numbers<[1], [0], [0], [1], [0, 0, 1, 1], [], []>} : vector<8x9xf32>, vector<9x16xf32>, vector<8x16xf32> -> vector<8x16xf32>
    %cst_96 = arith.constant dense<0.000000e+00> : vector<8x16xf32>
    %243 = tpu.matmul %236, %240, %cst_96 {dimension_numbers = #tpu.dot_dimension_numbers<[1], [0], [0], [1], [0, 0, 1, 1], [], []>} : vector<8x9xf32>, vector<9x16xf32>, vector<8x16xf32> -> vector<8x16xf32>
    %cst_97 = arith.constant dense<0.000000e+00> : vector<8x16xf32>
    %244 = tpu.matmul %238, %240, %cst_97 {dimension_numbers = #tpu.dot_dimension_numbers<[1], [0], [0], [1], [0, 0, 1, 1], [], []>} : vector<8x9xf32>, vector<9x16xf32>, vector<8x16xf32> -> vector<8x16xf32>
    %245 = vector.extract_strided_slice %117 {offsets = [0, 0], sizes = [1, 36], strides = [1, 1]} : vector<32x36xf32> to vector<1x36xf32>
    %cst_98 = arith.constant dense<0.000000e+00> : vector<1x16xf32>
    %246 = tpu.matmul %245, %145, %cst_98 {dimension_numbers = #tpu.dot_dimension_numbers<[1], [0], [0], [1], [0, 0, 1, 1], [], []>} : vector<1x36xf32>, vector<36x16xf32>, vector<1x16xf32> -> vector<1x16xf32>
    %247 = arith.addf %246, %146 : vector<1x16xf32>
    %248 = tpu.concatenate %241, %242 in 1 : vector<8x16xf32>, vector<8x16xf32> -> vector<8x32xf32>
    %cst_99 = arith.constant dense<0.000000e+00> : vector<8x80xf32>
    %249 = tpu.matmul %248, %147, %cst_99 {dimension_numbers = #tpu.dot_dimension_numbers<[1], [0], [0], [1], [0, 0, 1, 1], [], []>} : vector<8x32xf32>, vector<32x80xf32>, vector<8x80xf32> -> vector<8x80xf32>
    %250 = vector.broadcast %148 : vector<1x80xf32> to vector<8x80xf32>
    %251 = arith.addf %249, %250 : vector<8x80xf32>
    %252 = tpu.concatenate %247, %247, %247, %247, %247 in 1 : vector<1x16xf32>, vector<1x16xf32>, vector<1x16xf32>, vector<1x16xf32>, vector<1x16xf32> -> vector<1x80xf32>
    %253 = vector.broadcast %252 : vector<1x80xf32> to vector<8x80xf32>
    %254 = arith.addf %251, %253 : vector<8x80xf32>
    %255 = math.tanh %254 : vector<8x80xf32>
    %cst_100 = arith.constant 0.000000e+00 : f32
    %256 = vector.broadcast %cst_100 : f32 to vector<8x80xf32>
    %257 = arith.subf %256, %254 : vector<8x80xf32>
    %258 = math.exp %257 : vector<8x80xf32>
    %cst_101 = arith.constant 1.000000e+00 : f32
    %259 = vector.broadcast %cst_101 : f32 to vector<8x80xf32>
    %260 = arith.addf %259, %258 : vector<8x80xf32>
    %cst_102 = arith.constant 1.000000e+00 : f32
    %261 = vector.broadcast %cst_102 : f32 to vector<8x80xf32>
    %262 = arith.divf %261, %260 : vector<8x80xf32>
    %263 = arith.select %151, %255, %262 : vector<8x80xi1>, vector<8x80xf32>
    %264 = vector.extract_strided_slice %263 {offsets = [0, 0], sizes = [8, 16], strides = [1, 1]} : vector<8x80xf32> to vector<8x16xf32>
    %265 = vector.extract_strided_slice %263 {offsets = [0, 16], sizes = [8, 16], strides = [1, 1]} : vector<8x80xf32> to vector<8x16xf32>
    %266 = vector.extract_strided_slice %263 {offsets = [0, 32], sizes = [8, 16], strides = [1, 1]} : vector<8x80xf32> to vector<8x16xf32>
    %267 = vector.extract_strided_slice %263 {offsets = [0, 64], sizes = [8, 16], strides = [1, 1]} : vector<8x80xf32> to vector<8x16xf32>
    %268 = arith.mulf %264, %267 : vector<8x16xf32>
    %269 = arith.mulf %265, %243 : vector<8x16xf32>
    %270 = arith.addf %268, %269 : vector<8x16xf32>
    %271 = arith.mulf %266, %244 : vector<8x16xf32>
    %272 = arith.addf %270, %271 : vector<8x16xf32>
    %273 = vector.extract_strided_slice %272 {offsets = [0, 0], sizes = [5, 16], strides = [1, 1]} : vector<8x16xf32> to vector<5x16xf32>
    %cst_103 = arith.constant dense<0.000000e+00> : vector<16xf32>
    %274 = vector.multi_reduction <add>, %273, %cst_103 [0] : vector<5x16xf32> to vector<16xf32>
    %275 = vector.shape_cast %274 : vector<16xf32> to vector<1x16xf32>
    %cst_104 = arith.constant 5.000000e+00 : f32
    %276 = vector.broadcast %cst_104 : f32 to vector<1x16xf32>
    %277 = arith.divf %275, %276 : vector<1x16xf32>
    %278 = vector.broadcast %277 : vector<1x16xf32> to vector<5x16xf32>
    %279 = arith.subf %273, %278 : vector<5x16xf32>
    %280 = arith.mulf %279, %279 : vector<5x16xf32>
    %cst_105 = arith.constant dense<0.000000e+00> : vector<16xf32>
    %281 = vector.multi_reduction <add>, %280, %cst_105 [0] : vector<5x16xf32> to vector<16xf32>
    %282 = vector.shape_cast %281 : vector<16xf32> to vector<1x16xf32>
    %cst_106 = arith.constant 5.000000e+00 : f32
    %283 = vector.broadcast %cst_106 : f32 to vector<1x16xf32>
    %284 = arith.divf %282, %283 : vector<1x16xf32>
    %285 = vector.broadcast %277 : vector<1x16xf32> to vector<5x16xf32>
    %286 = arith.subf %273, %285 : vector<5x16xf32>
    %cst_107 = arith.constant 9.99999974E-6 : f32
    %287 = vector.broadcast %cst_107 : f32 to vector<1x16xf32>
    %288 = arith.addf %284, %287 : vector<1x16xf32>
    %289 = math.rsqrt %288 : vector<1x16xf32>
    %290 = vector.broadcast %289 : vector<1x16xf32> to vector<5x16xf32>
    %291 = arith.mulf %286, %290 : vector<5x16xf32>
    %c0_108 = arith.constant 0 : index
    %c0_109 = arith.constant 0 : index
    %292 = vector.load %arg14[%c0_108, %c0_109] : memref<16x12xf32, #tpu.memory_space<vmem>>, vector<16x12xf32>
    %cst_110 = arith.constant dense<0.000000e+00> : vector<5x12xf32>
    %293 = tpu.matmul %291, %292, %cst_110 {dimension_numbers = #tpu.dot_dimension_numbers<[1], [0], [0], [1], [0, 0, 1, 1], [], []>} : vector<5x16xf32>, vector<16x12xf32>, vector<5x12xf32> -> vector<5x12xf32>
    %c0_111 = arith.constant 0 : index
    %c0_112 = arith.constant 0 : index
    %294 = vector.load %arg15[%c0_111, %c0_112] : memref<1x12xf32, #tpu.memory_space<vmem>>, vector<1x12xf32>
    %295 = vector.broadcast %294 : vector<1x12xf32> to vector<5x12xf32>
    %296 = arith.addf %293, %295 : vector<5x12xf32>
    %cst_113 = arith.constant 0.000000e+00 : f32
    %297 = vector.broadcast %cst_113 : f32 to vector<5x12xf32>
    %298 = arith.maximumf %296, %297 : vector<5x12xf32>
    %cst_114 = arith.constant dense<0.000000e+00> : vector<12xf32>
    %299 = vector.multi_reduction <add>, %298, %cst_114 [0] : vector<5x12xf32> to vector<12xf32>
    %300 = vector.shape_cast %299 : vector<12xf32> to vector<1x12xf32>
    %cst_115 = arith.constant 5.000000e+00 : f32
    %301 = vector.broadcast %cst_115 : f32 to vector<1x12xf32>
    %302 = arith.divf %300, %301 : vector<1x12xf32>
    %303 = vector.broadcast %302 : vector<1x12xf32> to vector<5x12xf32>
    %304 = arith.subf %298, %303 : vector<5x12xf32>
    %305 = arith.mulf %304, %304 : vector<5x12xf32>
    %cst_116 = arith.constant dense<0.000000e+00> : vector<12xf32>
    %306 = vector.multi_reduction <add>, %305, %cst_116 [0] : vector<5x12xf32> to vector<12xf32>
    %307 = vector.shape_cast %306 : vector<12xf32> to vector<1x12xf32>
    %cst_117 = arith.constant 5.000000e+00 : f32
    %308 = vector.broadcast %cst_117 : f32 to vector<1x12xf32>
    %309 = arith.divf %307, %308 : vector<1x12xf32>
    %310 = vector.broadcast %302 : vector<1x12xf32> to vector<5x12xf32>
    %311 = arith.subf %298, %310 : vector<5x12xf32>
    %cst_118 = arith.constant 9.99999974E-6 : f32
    %312 = vector.broadcast %cst_118 : f32 to vector<1x12xf32>
    %313 = arith.addf %309, %312 : vector<1x12xf32>
    %314 = math.rsqrt %313 : vector<1x12xf32>
    %315 = vector.broadcast %314 : vector<1x12xf32> to vector<5x12xf32>
    %316 = arith.mulf %311, %315 : vector<5x12xf32>
    %c0_119 = arith.constant 0 : index
    %c0_120 = arith.constant 0 : index
    %317 = vector.load %arg16[%c0_119, %c0_120] : memref<12x12xf32, #tpu.memory_space<vmem>>, vector<12x12xf32>
    %cst_121 = arith.constant dense<0.000000e+00> : vector<5x12xf32>
    %318 = tpu.matmul %316, %317, %cst_121 {dimension_numbers = #tpu.dot_dimension_numbers<[1], [0], [0], [1], [0, 0, 1, 1], [], []>} : vector<5x12xf32>, vector<12x12xf32>, vector<5x12xf32> -> vector<5x12xf32>
    %c0_122 = arith.constant 0 : index
    %c0_123 = arith.constant 0 : index
    %319 = vector.load %arg17[%c0_122, %c0_123] : memref<1x12xf32, #tpu.memory_space<vmem>>, vector<1x12xf32>
    %320 = vector.broadcast %319 : vector<1x12xf32> to vector<5x12xf32>
    %321 = arith.addf %318, %320 : vector<5x12xf32>
    %cst_124 = arith.constant 0.000000e+00 : f32
    %322 = vector.broadcast %cst_124 : f32 to vector<5x12xf32>
    %323 = arith.maximumf %321, %322 : vector<5x12xf32>
    %c0_125 = arith.constant 0 : index
    %c0_126 = arith.constant 0 : index
    %324 = vector.load %arg18[%c0_125, %c0_126] : memref<12x1xf32, #tpu.memory_space<vmem>>, vector<12x1xf32>
    %cst_127 = arith.constant dense<0.000000e+00> : vector<5x1xf32>
    %325 = tpu.matmul %323, %324, %cst_127 {dimension_numbers = #tpu.dot_dimension_numbers<[1], [0], [0], [1], [0, 0, 1, 1], [], []>} : vector<5x12xf32>, vector<12x1xf32>, vector<5x1xf32> -> vector<5x1xf32>
    %c0_128 = arith.constant 0 : index
    %c0_129 = arith.constant 0 : index
    %326 = vector.load %arg19[%c0_128, %c0_129] : memref<1x1xf32, #tpu.memory_space<vmem>>, vector<1x1xf32>
    %327 = vector.broadcast %326 : vector<1x1xf32> to vector<5x1xf32>
    %328 = arith.addf %325, %327 : vector<5x1xf32>
    %cst_130 = arith.constant 0.000000e+00 : f32
    %329 = vector.broadcast %cst_130 : f32 to vector<5x1xf32>
    %330 = arith.subf %329, %328 : vector<5x1xf32>
    %331 = math.exp %330 : vector<5x1xf32>
    %cst_131 = arith.constant 1.000000e+00 : f32
    %332 = vector.broadcast %cst_131 : f32 to vector<5x1xf32>
    %333 = arith.addf %332, %331 : vector<5x1xf32>
    %cst_132 = arith.constant 1.000000e+00 : f32
    %334 = vector.broadcast %cst_132 : f32 to vector<5x1xf32>
    %335 = arith.divf %334, %333 : vector<5x1xf32>
    %c0_133 = arith.constant 0 : index
    %c0_134 = arith.constant 0 : index
    %336 = vector.load %arg20[%c0_133, %c0_134] : memref<5x1xf32, #tpu.memory_space<vmem>>, vector<5x1xf32>
    tpu.vector_store %arg20[%c0_133, %c0_134], %335 {strides = array<i32>} : memref<5x1xf32, #tpu.memory_space<vmem>>, vector<5x1xf32>,
    return
  }
}

</mosaic_0001>

<bundles_post_ra>
// kernel: my_representation_forward.1
= control target key start
LH: loop header
LB: loop body
LE: loop exit
PB: predicated region body
PF: predicated region fallthrough
CT: control target
= control target key end

     0   :  { %vm155_vm0 = vcmask 1041408   ;;  %vm130_vm1 = vcmask 80896   ;;  %v2979_v5 = vmov 0.0   ;;  %v72_v32 = vlaneseq  ;;  %s2980_s22 = smov 96   ;;  %s2982_s24 = smov 32   ;;  %s4004_s4 = inlined_call_operand.vmem [shape: f32[16,64], index: 4, kind: input, shape index: {}]   ;;  %s4005_s3 = inlined_call_operand.vmem [shape: f32[10,64], index: 3, kind: input, shape index: {}]   ;;  %s4006_s0 = inlined_call_operand.vmem [shape: f32[3,64,10], index: 0, kind: input, shape index: {}]   ;;  %s4007_s5 = inlined_call_operand.vmem [shape: f32[1,64], index: 5, kind: input, shape index: {}]   ;;  %s4008_s6 = inlined_call_operand.vmem [shape: f32[16,12], index: 6, kind: input, shape index: {}]   ;;  %s4009_s7 = inlined_call_operand.vmem [shape: f32[1,12], index: 7, kind: input, shape index: {}]   ;;  %s4010_s8 = inlined_call_operand.vmem [shape: f32[36,64], index: 8, kind: input, shape index: {}]   ;;  %s4011_s9 = inlined_call_operand.vmem [shape: f32[1,64], index: 9, kind: input, shape index: {}]   ;;  %s4012_s1 = inlined_call_operand.vmem [shape: f32[32,24], index: 1, kind: input, shape index: {}]   ;;  %s4013_s2 = inlined_call_operand.vmem [shape: f32[8,8,9], index: 2, kind: input, shape index: {}]   ;;  %s4014_s10 = inlined_call_operand.vmem [shape: f32[36,16], index: 10, kind: input, shape index: {}]   ;;  %s4015_s12 = inlined_call_operand.vmem [shape: f32[32,80], index: 12, kind: input, shape index: {}]   ;;  %s4016_s11 = inlined_call_operand.vmem [shape: f32[1,16], index: 11, kind: input, shape index: {}]   ;;  %s4017_s13 = inlined_call_operand.vmem [shape: f32[1,80], index: 13, kind: input, shape index: {}]   ;;  %s4018_s15 = inlined_call_operand.vmem [shape: f32[1,12], index: 15, kind: input, shape index: {}]   ;;  %s4019_s14 = inlined_call_operand.vmem [shape: f32[16,12], index: 14, kind: input, shape index: {}]   ;;  %s4020_s17 = inlined_call_operand.vmem [shape: f32[1,12], index: 17, kind: input, shape index: {}]   ;;  %s4021_s16 = inlined_call_operand.vmem [shape: f32[12,12], index: 16, kind: input, shape index: {}]   ;;  %s4022_s18 = inlined_call_operand.vmem [shape: f32[12,1], index: 18, kind: input, shape index: {}]   ;;  %s4023_s19 = inlined_call_operand.<no memory space> [shape: f32[1,1], index: 19, kind: input, shape index: {}]   ;;  %s4024_s20 = inlined_call_operand.vmem [shape: f32[5,1], index: 20, kind: output, shape index: {}]  }
   0x1   :  { %4030 = sst [smem:[#allocation3_spill]] %s4004_s4  ;;  %s2985_s4 = smov 24  }
   0x2   :  { %4031 = sst [smem:[#allocation4_spill]] %s4005_s3  ;;  %v3150_v36 = vand.u32 127, %v72_v32  ;;  %s2987_s26 = smov 64  }
   0x3   :  { %4032 = sst [smem:[#allocation5_spill]] %s4006_s0  ;;  %s2983_s0 = smov 80  }
   0x4   :  { %4033 = sst [smem:[#allocation6_spill]] %s4007_s5  ;;  %vm74_vm2 = vcmp.ge.s32.totalorder %v3150_v36, 32  ;;  %vm75_vm3 = vcmp.lt.s32.totalorder %v3150_v36, 48 }
   0x5   :  { %4034 = sst [smem:[#allocation7_spill]] %s4008_s6  ;;  %vm3158_vm5 = vmand %vm74_vm2, %vm75_vm3 }
   0x6   :  { %s4035_s23 = sld [smem:[#allocation3_spill]] }
   0x7   :  { %s4036_s25 = sld [smem:[#allocation4_spill]] }
   0x8   :  { %s4037_s30 = sld [smem:[#allocation5_spill]] }
   0x9   :  { %s4038_s3 = sld [smem:[#allocation6_spill]] }
   0xa   :  { %s4045_s29 = sld [smem:[#allocation7_spill]] }
   0xc   :  { %v70_v0 = vld [vmem:[%s4035_s23 + $0x8] sm:$0xff]  ;;  %v69_v2 = vld [vmem:[%s4035_s23] sm:$0xff]  ;;  %s2981_s23 = smov 16  }
   0xd   :  { %v68_v1 = vld [vmem:[%s4036_s25 + $0x8] sm:$0x3]  ;;  %103 = vmatpush.msra.mxu0 %v70_v0  ;;  %v67_v3 = vld [vmem:[%s4036_s25] sm:$0xff]  ;;  %578 = vmatpush.msra.mxu2 %v70_v0 }
   0xe   :  { %2588 = vmatpush.msk.msra.mxu1 %vm155_vm0, %v68_v1  ;;  %v77_v4 = vld [vmem:[%s4037_s30] sm:$0xff]  ;;  %2613 = vmatpush.msk.msra.mxu3 %vm155_vm0, %v68_v1  ;;  %v78_v6 = vld [vmem:[%s4037_s30 + $0x8] sm:$0xff]  ;;  %v79_v7 = vld [vmem:[%s4037_s30 + $0x10] sm:$0xff] }
   0xf   :  { %104 = vmatpush.msra.mxu0 %v69_v2  ;;  %579 = vmatpush.msra.mxu2 %v69_v2  ;;  %v80_v8 = vld [vmem:[%s4037_s30 + $0x18] sm:$0xff]  ;;  %v81_v9 = vld [vmem:[%s4037_s30 + $0x20] sm:$0xff]  ;;  %v82_v10 = vld [vmem:[%s4037_s30 + $0x28] sm:$0xff] }
  0x10   :  { %174 = vmatpush.msra.mxu1 %v67_v3  ;;  %105 = vmatmul.f32.vlgmr.msra.gmra.mxu0 %v2979_v5  ;;  %v83_v11 = vld [vmem:[%s4037_s30 + $0x30] sm:$0xff]  ;;  %v84_v12 = vld [vmem:[%s4037_s30 + $0x38] sm:$0xff]  ;;  %v3145_v13 = vld [vmem:[%s4038_s3] ss:$0 sm:$0xff] }
  0x11   :  { %2589 = vmatmul.msk.f32.vlgmr.msra.gmra.mxu1 %vm130_vm1, %v77_v4  ;;  %644 = vmatpush.msra.mxu3 %v67_v3 }
  0x12   :  { %1045 = vmatpush.msrb.mxu0 %v70_v0  ;;  %2638 = vmatpush.msk.msrb.mxu1 %vm155_vm0, %v68_v1 }
  0x14   :  { %1046 = vmatpush.msrb.mxu0 %v69_v2  ;;  %1111 = vmatpush.msrb.mxu1 %v67_v3 }
  0x18   :  { %108 = vmatmul.f32.gmra.mxu0 %v2979_v5 }
  0x19   :  { %2590 = vmatmul.msk.f32.gmra.mxu1 %vm130_vm1, %v78_v6 }
  0x20   :  { %111 = vmatmul.f32.gmra.mxu0 %v2979_v5 }
  0x21   :  { %2591 = vmatmul.msk.f32.gmra.mxu1 %vm130_vm1, %v79_v7 }
  0x28   :  { %114 = vmatmul.f32.gmra.mxu0 %v2979_v5 }
  0x29   :  { %2592 = vmatmul.msk.f32.gmra.mxu1 %vm130_vm1, %v80_v8 }
  0x30   :  { %117 = vmatmul.f32.gmra.mxu0 %v2979_v5 }
  0x31   :  { %2593 = vmatmul.msk.f32.gmra.mxu1 %vm130_vm1, %v81_v9 }
  0x38   :  { %120 = vmatmul.f32.gmra.mxu0 %v2979_v5 }
  0x39   :  { %2594 = vmatmul.msk.f32.gmra.mxu1 %vm130_vm1, %v82_v10 }
  0x40   :  { %123 = vmatmul.f32.gmra.mxu0 %v2979_v5 }
  0x41   :  { %2595 = vmatmul.msk.f32.gmra.mxu1 %vm130_vm1, %v83_v11 }
  0x48   :  { %126 = vmatmul.f32.gmra.mxu0 %v2979_v5 }
  0x49   :  { %2596 = vmatmul.msk.f32.gmra.mxu1 %vm130_vm1, %v84_v12 }
  0x8d   :  { %v106_v14 = vpop.f32.mrf.mxu0 }
  0x8e   :  { %v176_v15 = vpop.f32.mrf.mxu1 }
  0x8f   :  { %v177_v16 = vadd.f32 %v176_v15, %v106_v14 }
  0x91   :  { %v203_v17 = vadd.f32 %v3145_v13, %v177_v16 }
  0x93   :  { %v219_v18 = vsub.f32 0.0, %v203_v17 }
  0x95   :  { %v227_v19 = vmul.f32 1.442695, %v219_v18  ;;  %v109_v20 = vpop.f32.mrf.mxu0 }
  0x96   :  { %v179_v21 = vpop.f32.mrf.mxu1 }
  0x97   :  { %2742 = vpow2.f32 %v227_v19  ;;  %v180_v22 = vadd.f32 %v179_v21, %v109_v20 }
  0x99   :  { %v204_v23 = vadd.f32 %v3145_v13, %v180_v22 }
  0x9b   :  { %v220_v24 = vsub.f32 0.0, %v204_v23 }
  0x9d   :  { %v2743_v25 = vpop.eup %2742  ;;  %v229_v26 = vmul.f32 1.442695, %v220_v24  ;;  %v112_v28 = vpop.f32.mrf.mxu0 }
  0x9e   :  { %v243_v27 = vadd.f32 1.0, %v2743_v25  ;;  %v182_v29 = vpop.f32.mrf.mxu1 }
  0x9f   :  { %2744 = vpow2.f32 %v229_v26  ;;  %v183_v30 = vadd.f32 %v182_v29, %v112_v28 }
  0xa0   :  { %2746 = vrcp.f32 %v243_v27  ;;  %v260_v45 = vand.u32 2147483647, %v243_v27  ;;  %v262_v46 = vand.u32 2147483648, %v243_v27  ;;  %vm256_vm6 = vweird.f32 %v243_v27 }
  0xa1   :  { %v205_v31 = vadd.f32 %v3145_v13, %v183_v30 }
  0xa2   :  { %vm261_vm8 = vcmp.eq.f32.partialorder %v260_v45, 8.507059e+37  ;;  %v263_v57 = vor.u32 1.1754944e-38, %v262_v46 }
  0xa3   :  { %v221_v33 = vsub.f32 0.0, %v205_v31 }
  0xa5   :  { %v2745_v34 = vpop.eup %2744  ;;  %v231_v35 = vmul.f32 1.442695, %v221_v33  ;;  %v115_v39 = vpop.f32.mrf.mxu0 }
  0xa6   :  { %v2747_v37 = vpop.eup %2746  ;;  %v244_v38 = vadd.f32 1.0, %v2745_v34  ;;  %v185_v40 = vpop.f32.mrf.mxu1 }
  0xa7   :  { %2748 = vpow2.f32 %v231_v35  ;;  %v186_v41 = vadd.f32 %v185_v40, %v115_v39  ;;  %v252_v42 = vmul.f32 %v2747_v37, %v243_v27  ;;  %vm257_vm4 = vweird.f32 %v2747_v37 }
  0xa8   :  { %2750 = vrcp.f32 %v244_v38  ;;  %vm258_vm7 = vmor %vm256_vm6, %vm257_vm4  ;;  %vm271_vm9 = vweird.f32 %v244_v38  ;;  %v275_v63 = vand.u32 2147483647, %v244_v38  ;;  %v277_v0 = vand.u32 2147483648, %v244_v38 }
  0xa9   :  { %v3153_v43 = vadd.f32 %v3145_v13, %v186_v41  ;;  %v253_v44 = vsub.f32 1.0, %v252_v42  ;;  %2752 = vtanh.f32 %v203_v17 }
  0xaa   :  { %2754 = vtanh.f32 %v204_v23  ;;  %v278_v8 = vor.u32 1.1754944e-38, %v277_v0  ;;  %vm276_vm12 = vcmp.eq.f32.partialorder %v275_v63, 8.507059e+37 }
  0xab   :  { %v222_v47 = vsub.f32 0.0, %v3153_v43  ;;  %v254_v48 = vmul.f32 %v2747_v37, %v253_v44 }
  0xad   :  { %v2749_v49 = vpop.eup %2748  ;;  %v233_v50 = vmul.f32 1.442695, %v222_v47  ;;  %v255_v52 = vadd.f32 %v2747_v37, %v254_v48  ;;  %v118_v55 = vpop.f32.mrf.mxu0 }
  0xae   :  { %v2751_v53 = vpop.eup %2750  ;;  %v245_v54 = vadd.f32 1.0, %v2749_v49  ;;  %v188_v56 = vpop.f32.mrf.mxu1 }
  0xaf   :  { %2756 = vpow2.f32 %v233_v50  ;;  %v189_v58 = vadd.f32 %v188_v56, %v118_v55  ;;  %v259_v59 = vsel %vm258_vm7, %v2747_v37, %v255_v52  ;;  %v267_v60 = vmul.f32 %v2751_v53, %v244_v38  ;;  %v2753_v61 = vpop.eup %2752 }
  0xb0   :  { %2758 = vrcp.f32 %v245_v54  ;;  %v264_v62 = vsel %vm261_vm8, %v263_v57, %v259_v59  ;;  %vm272_vm10 = vweird.f32 %v2751_v53  ;;  %v2755_v4 = vpop.eup %2754  ;;  %vm286_vm13 = vweird.f32 %v245_v54 }
  0xb1   :  { %v3163_v1 = vadd.f32 %v3145_v13, %v189_v58  ;;  %v3167_v2 = vsel %vm3158_vm5, %v2753_v61, %v264_v62  ;;  %v268_v3 = vsub.f32 1.0, %v267_v60  ;;  %vm3173_vm11 = vmor %vm271_vm9, %vm272_vm10  ;;  %2760 = vtanh.f32 %v205_v31 }
  0xb2   :  { %395 = vrot.lane.b32.xlu0 %v3167_v2, %s2980_s22  ;;  %v290_v21 = vand.u32 2147483647, %v245_v54  ;;  %v292_v22 = vand.u32 2147483648, %v245_v54 }
  0xb3   :  { %v223_v5 = vsub.f32 0.0, %v3163_v1  ;;  %v269_v6 = vmul.f32 %v2751_v53, %v268_v3 }
  0xb4   :  { %v293_v30 = vor.u32 1.1754944e-38, %v292_v22  ;;  %vm291_vm0 = vcmp.eq.f32.partialorder %v290_v21, 8.507059e+37 }
  0xb5   :  { %v2757_v9 = vpop.eup %2756  ;;  %v235_v10 = vmul.f32 1.442695, %v223_v5  ;;  %v270_v11 = vadd.f32 %v2751_v53, %v269_v6  ;;  %v121_v15 = vpop.f32.mrf.mxu0 }
  0xb6   :  { %v2759_v12 = vpop.eup %2758  ;;  %v246_v14 = vadd.f32 1.0, %v2757_v9  ;;  %v191_v16 = vpop.f32.mrf.mxu1 }
  0xb7   :  { %2762 = vpow2.f32 %v235_v10  ;;  %v192_v17 = vadd.f32 %v191_v16, %v121_v15  ;;  %v274_v18 = vsel %vm3173_vm11, %v2751_v53, %v270_v11  ;;  %v282_v19 = vmul.f32 %v2759_v12, %v245_v54  ;;  %v2761_v28 = vpop.eup %2760 }
  0xb8   :  { %2764 = vrcp.f32 %v246_v14  ;;  %v279_v20 = vsel %vm276_vm12, %v278_v8, %v274_v18  ;;  %vm287_vm14 = vweird.f32 %v2759_v12  ;;  %vm301_vm2 = vweird.f32 %v246_v14 }
  0xb9   :  { %v3180_v23 = vadd.f32 %v3145_v13, %v192_v17  ;;  %v3184_v24 = vsel %vm3158_vm5, %v2755_v4, %v279_v20  ;;  %v283_v25 = vsub.f32 1.0, %v282_v19  ;;  %vm3190_vm15 = vmor %vm286_vm13, %vm287_vm14  ;;  %2766 = vtanh.f32 %v3153_v43 }
  0xba   :  { %397 = vrot.lane.b32.xlu0 %v3184_v24, %s2980_s22  ;;  %v305_v44 = vand.u32 2147483647, %v246_v14  ;;  %v307_v45 = vand.u32 2147483648, %v246_v14 }
  0xbb   :  { %v224_v26 = vsub.f32 0.0, %v3180_v23  ;;  %v284_v27 = vmul.f32 %v2759_v12, %v283_v25 }
  0xbc   :  { %v308_v52 = vor.u32 1.1754944e-38, %v307_v45  ;;  %vm306_vm6 = vcmp.eq.f32.partialorder %v305_v44, 8.507059e+37 }
  0xbd   :  { %v2763_v31 = vpop.eup %2762  ;;  %v237_v32 = vmul.f32 1.442695, %v224_v26  ;;  %v285_v33 = vadd.f32 %v2759_v12, %v284_v27  ;;  %v124_v37 = vpop.f32.mrf.mxu0 }
  0xbe   :  { %v2765_v34 = vpop.eup %2764  ;;  %v247_v35 = vadd.f32 1.0, %v2763_v31  ;;  %v194_v38 = vpop.f32.mrf.mxu1 }
  0xbf   :  { %2768 = vpow2.f32 %v237_v32  ;;  %v195_v39 = vadd.f32 %v194_v38, %v124_v37  ;;  %v289_v40 = vsel %vm3190_vm15, %v2759_v12, %v285_v33  ;;  %v297_v41 = vmul.f32 %v2765_v34, %v246_v14  ;;  %v2767_v50 = vpop.eup %2766 }
  0xc0   :  { %2770 = vrcp.f32 %v247_v35  ;;  %v294_v42 = vsel %vm291_vm0, %v293_v30, %v289_v40  ;;  %vm302_vm3 = vweird.f32 %v2765_v34  ;;  %vm316_vm7 = vweird.f32 %v247_v35 }
  0xc1   :  { %v209_v46 = vadd.f32 %v3145_v13, %v195_v39  ;;  %v3200_v47 = vsel %vm3158_vm5, %v2761_v28, %v294_v42  ;;  %v298_v43 = vsub.f32 1.0, %v297_v41  ;;  %vm303_vm4 = vmor %vm301_vm2, %vm302_vm3  ;;  %2772 = vtanh.f32 %v3163_v1 }
  0xc2   :  { %399 = vrot.lane.b32.xlu1 %v3200_v47, %s2980_s22  ;;  %v322_v61 = vand.u32 2147483648, %v247_v35  ;;  %v320_v0 = vand.u32 2147483647, %v247_v35 }
  0xc3   :  { %v225_v48 = vsub.f32 0.0, %v209_v46  ;;  %v299_v49 = vmul.f32 %v2765_v34, %v298_v43 }
  0xc4   :  { %v323_v4 = vor.u32 1.1754944e-38, %v322_v61  ;;  %vm321_vm10 = vcmp.eq.f32.partialorder %v320_v0, 8.507059e+37 }
  0xc5   :  { %v2769_v53 = vpop.eup %2768  ;;  %v239_v54 = vmul.f32 1.442695, %v225_v48  ;;  %v300_v55 = vadd.f32 %v2765_v34, %v299_v49  ;;  %v127_v38 = vpop.f32.mrf.mxu0 }
  0xc6   :  { %v2771_v56 = vpop.eup %2770  ;;  %v248_v57 = vadd.f32 1.0, %v2769_v53  ;;  %v197_v39 = vpop.f32.mrf.mxu1 }
  0xc7   :  { %2774 = vpow2.f32 %v239_v54  ;;  %v304_v58 = vsel %vm303_vm4, %v2765_v34, %v300_v55  ;;  %v312_v59 = vmul.f32 %v2771_v56, %v247_v35  ;;  %vm317_vm8 = vweird.f32 %v2771_v56  ;;  %v2773_v1 = vpop.eup %2772 }
  0xc8   :  { %2776 = vrcp.f32 %v248_v57  ;;  %v309_v60 = vsel %vm306_vm6, %v308_v52, %v304_v58  ;;  %vm318_vm9 = vmor %vm316_vm7, %vm317_vm8  ;;  %vm331_vm11 = vweird.f32 %v248_v57  ;;  %v337_v12 = vand.u32 2147483648, %v248_v57 }
  0xc9   :  { %v3208_v62 = vsel %vm3158_vm5, %v2767_v50, %v309_v60  ;;  %v313_v63 = vsub.f32 1.0, %v312_v59  ;;  %2778 = vtanh.f32 %v3180_v23  ;;  %v335_v16 = vand.u32 2147483647, %v248_v57 }
  0xca   :  { %401 = vrot.lane.b32.xlu1 %v3208_v62, %s2980_s22  ;;  %v338_v18 = vor.u32 1.1754944e-38, %v337_v12  ;;  %v198_v40 = vadd.f32 %v197_v39, %v127_v38  ;;  %v380_v12 = vmul.f32 0.0, %v3184_v24 }
  0xcb   :  { %v314_v3 = vmul.f32 %v2771_v56, %v313_v63  ;;  %vm336_vm14 = vcmp.eq.f32.partialorder %v335_v16, 8.507059e+37 }
  0xcc   :  { %v210_v41 = vadd.f32 %v3145_v13, %v198_v40 }
  0xcd   :  { %v2775_v5 = vpop.eup %2774  ;;  %v315_v6 = vadd.f32 %v2771_v56, %v314_v3 }
  0xce   :  { %v2777_v7 = vpop.eup %2776  ;;  %v249_v8 = vadd.f32 1.0, %v2775_v5  ;;  %v226_v42 = vsub.f32 0.0, %v210_v41 }
  0xcf   :  { %v319_v9 = vsel %vm318_vm9, %v2771_v56, %v315_v6  ;;  %v327_v10 = vmul.f32 %v2777_v7, %v248_v57  ;;  %vm332_vm12 = vweird.f32 %v2777_v7  ;;  %v2779_v19 = vpop.eup %2778  ;;  %vm85_vm9 = vcmask 130048  }
  0xd0   :  { %2780 = vrcp.f32 %v249_v8  ;;  %v324_v11 = vsel %vm321_vm10, %v323_v4, %v319_v9  ;;  %vm333_vm13 = vmor %vm331_vm11, %vm332_vm12  ;;  %vm346_vm15 = vweird.f32 %v249_v8  ;;  %v352_v26 = vand.u32 2147483648, %v249_v8 }
  0xd1   :  { %v3215_v14 = vsel %vm3158_vm5, %v2773_v1, %v324_v11  ;;  %v328_v15 = vsub.f32 1.0, %v327_v10  ;;  %2782 = vtanh.f32 %v209_v46  ;;  %v350_v29 = vand.u32 2147483647, %v249_v8 }
  0xd2   :  { %403 = vrot.lane.b32.xlu2 %v3215_v14, %s2980_s22  ;;  %v353_v31 = vor.u32 1.1754944e-38, %v352_v26  ;;  %v241_v44 = vmul.f32 1.442695, %v226_v42 }
  0xd3   :  { %v329_v17 = vmul.f32 %v2777_v7, %v328_v15  ;;  %vm351_vm3 = vcmp.eq.f32.partialorder %v350_v29, 8.507059e+37  ;;  %v381_v29 = vmul.f32 0.0, %v3200_v47 }
  0xd4   :  { %2784 = vpow2.f32 %v241_v44 }
  0xd5   :  { %v330_v20 = vadd.f32 %v2777_v7, %v329_v17 }
  0xd6   :  { %v2781_v21 = vpop.eup %2780 }
  0xd7   :  { %v334_v22 = vsel %vm333_vm13, %v2777_v7, %v330_v20  ;;  %v342_v23 = vmul.f32 %v2781_v21, %v249_v8  ;;  %vm347_vm0 = vweird.f32 %v2781_v21  ;;  %v2783_v33 = vpop.eup %2782 }
  0xd8   :  { %v339_v25 = vsel %vm336_vm14, %v338_v18, %v334_v22  ;;  %vm348_vm2 = vmor %vm346_vm15, %vm347_vm0  ;;  %v379_v18 = vmul.f32 0.0, %v3167_v2  ;;  %v382_v22 = vmul.f32 0.0, %v3208_v62 }
  0xd9   :  { %v3221_v27 = vsel %vm3158_vm5, %v2779_v19, %v339_v25  ;;  %v343_v28 = vsub.f32 1.0, %v342_v23 }
  0xda   :  { %405 = vrot.lane.b32.xlu2 %v3221_v27, %s2980_s22  ;;  %v2785_v45 = vpop.eup %2784  ;;  %v384_v38 = vmul.f32 0.0, %v3221_v27 }
  0xdb   :  { %v344_v30 = vmul.f32 %v2781_v21, %v343_v28  ;;  %v250_v46 = vadd.f32 1.0, %v2785_v45 }
  0xdd   :  { %v345_v32 = vadd.f32 %v2781_v21, %v344_v30  ;;  %2786 = vrcp.f32 %v250_v46  ;;  %vm361_vm4 = vweird.f32 %v250_v46  ;;  %v367_v52 = vand.u32 2147483648, %v250_v46 }
  0xde   :  { %v365_v55 = vand.u32 2147483647, %v250_v46  ;;  %2788 = vtanh.f32 %v210_v41  ;;  %v383_v30 = vmul.f32 0.0, %v3215_v14 }
  0xdf   :  { %v349_v34 = vsel %vm348_vm2, %v2781_v21, %v345_v32  ;;  %v368_v57 = vor.u32 1.1754944e-38, %v367_v52 }
  0xe0   :  { %v354_v35 = vsel %vm351_vm3, %v353_v31, %v349_v34  ;;  %vm366_vm8 = vcmp.eq.f32.partialorder %v365_v55, 8.507059e+37 }
  0xe1   :  { %v3227_v37 = vsel %vm3158_vm5, %v2783_v33, %v354_v35 }
  0xe2   :  { %407 = vrot.lane.b32.xlu1 %v3227_v37, %s2980_s22  ;;  %v385_v39 = vmul.f32 0.0, %v3227_v37 }
  0xe3   :  { %v2787_v43 = vpop.eup %2786 }
  0xe4   :  { %v357_v48 = vmul.f32 %v2787_v43, %v250_v46  ;;  %vm362_vm6 = vweird.f32 %v2787_v43  ;;  %v2789_v59 = vpop.eup %2788 }
  0xe5   :  { %vm363_vm7 = vmor %vm361_vm4, %vm362_vm6 }
  0xe6   :  { %v358_v49 = vsub.f32 1.0, %v357_v48 }
  0xe8   :  { %v359_v50 = vmul.f32 %v2787_v43, %v358_v49 }
  0xea   :  { %v360_v54 = vadd.f32 %v2787_v43, %v359_v50 }
  0xec   :  { %v364_v58 = vsel %vm363_vm7, %v2787_v43, %v360_v54 }
  0xed   :  { %v369_v60 = vsel %vm366_vm8, %v368_v57, %v364_v58 }
  0xee   :  { %v3237_v0 = vsel %vm3158_vm5, %v2789_v59, %v369_v60 }
 0x124   :  { %v396_v53 = vpop.permute.xlu0 %395 }
 0x125   :  { %v419_v56 = vmul.f32 %v396_v53, %v3167_v2  ;;  %v386_v53 = vmul.f32 0.0, %v3237_v0 }
 0x127   :  { %435 = vrot.lane.b32.xlu0 %v419_v56, %s2981_s23 }
 0x12c   :  { %v398_v61 = vpop.permute.xlu0 %397  ;;  %v404_v3 = vpop.permute.xlu2 %403 }
 0x12d   :  { %v420_v63 = vmul.f32 %v398_v61, %v3184_v24  ;;  %v423_v4 = vmul.f32 %v404_v3, %v3215_v14 }
 0x12f   :  { %409 = vrot.lane.b32.xlu0 %v3237_v0, %s2980_s22  ;;  %437 = vrot.lane.b32.xlu2 %v420_v63, %s2981_s23 }
 0x134   :  { %v400_v1 = vpop.permute.xlu1 %399  ;;  %v406_v6 = vpop.permute.xlu2 %405 }
 0x135   :  { %v421_v5 = vmul.f32 %v400_v1, %v3200_v47  ;;  %v424_v8 = vmul.f32 %v406_v6, %v3221_v27 }
 0x137   :  { %439 = vrot.lane.b32.xlu1 %v421_v5, %s2981_s23  ;;  %443 = vrot.lane.b32.xlu0 %v423_v4, %s2981_s23  ;;  %v2597_v4 = vld [vmem:[%s4037_s30 + $0x40] sm:$0xff] }
 0x138   :  { %2614 = vmatmul.msk.f32.vlgmr.msra.gmra.mxu3 %vm130_vm1, %v2597_v4  ;;  %v2601_v5 = vld [vmem:[%s4037_s30 + $0x60] sm:$0xff] }
 0x13c   :  { %v402_v7 = vpop.permute.xlu1 %401 }
 0x13d   :  { %v422_v9 = vmul.f32 %v402_v7, %v3208_v62 }
 0x13f   :  { %445 = vrot.lane.b32.xlu1 %v424_v8, %s2981_s23  ;;  %441 = vrot.lane.b32.xlu2 %v422_v9, %s2981_s23  ;;  %v2602_v8 = vld [vmem:[%s4037_s30 + $0x68] sm:$0xff] }
 0x154   :  { %v408_v10 = vpop.permute.xlu1 %407 }
 0x155   :  { %v425_v11 = vmul.f32 %v408_v10, %v3227_v37 }
 0x157   :  { %447 = vrot.lane.b32.xlu2 %v425_v11, %s2981_s23  ;;  %v2603_v11 = vld [vmem:[%s4037_s30 + $0x70] sm:$0xff] }
 0x189   :  { %v438_v15 = vpop.permute.xlu2 %437 }
 0x18a   :  { %v3253_v16 = vadd.f32 %v438_v15, %v380_v12 }
 0x18c   :  { %2790 = vtanh.f32 %v3253_v16 }
 0x192   :  { %v2791_v17 = vpop.eup %2790 }
 0x193   :  { %485 = vrot.lane.b32.xlu2 %v2791_v17, %s2982_s24 }
 0x199   :  { %v436_v19 = vpop.permute.xlu0 %435  ;;  %v442_v21 = vpop.permute.xlu2 %441 }
 0x19a   :  { %v3258_v20 = vadd.f32 %v436_v19, %v379_v18  ;;  %v3262_v23 = vadd.f32 %v442_v21, %v382_v22  ;;  %v2604_v18 = vld [vmem:[%s4037_s30 + $0x78] sm:$0xff] }
 0x19c   :  { %2792 = vtanh.f32 %v3258_v20 }
 0x19d   :  { %2794 = vtanh.f32 %v3262_v23 }
 0x1a1   :  { %v410_v25 = vpop.permute.xlu0 %409 }
 0x1a2   :  { %v426_v26 = vmul.f32 %v410_v25, %v3237_v0  ;;  %v2793_v28 = vpop.eup %2792 }
 0x1a3   :  { %483 = vrot.lane.b32.xlu0 %v2793_v28, %s2982_s24  ;;  %v2795_v35 = vpop.eup %2794 }
 0x1a4   :  { %449 = vrot.lane.b32.xlu1 %v426_v26, %s2981_s23 }
 0x1a9   :  { %v440_v31 = vpop.permute.xlu1 %439  ;;  %v444_v32 = vpop.permute.xlu0 %443 }
 0x1aa   :  { %v3270_v33 = vadd.f32 %v440_v31, %v381_v29  ;;  %v3272_v34 = vadd.f32 %v444_v32, %v383_v30 }
 0x1ac   :  { %2796 = vtanh.f32 %v3270_v33  ;;  %489 = vrot.lane.b32.xlu1 %v2795_v35, %s2982_s24 }
 0x1ad   :  { %2798 = vtanh.f32 %v3272_v34 }
 0x1b1   :  { %v446_v40 = vpop.permute.xlu1 %445  ;;  %v448_v41 = vpop.permute.xlu2 %447 }
 0x1b2   :  { %v2797_v42 = vpop.eup %2796  ;;  %v3279_v44 = vadd.f32 %v446_v40, %v384_v38  ;;  %v3281_v45 = vadd.f32 %v448_v41, %v385_v39 }
 0x1b3   :  { %v2799_v46 = vpop.eup %2798  ;;  %487 = vrot.lane.b32.xlu0 %v2797_v42, %s2982_s24 }
 0x1b4   :  { %2800 = vtanh.f32 %v3279_v44  ;;  %491 = vrot.lane.b32.xlu2 %v2799_v46, %s2982_s24 }
 0x1b5   :  { %2802 = vtanh.f32 %v3281_v45 }
 0x1ba   :  { %v2801_v43 = vpop.eup %2800 }
 0x1bb   :  { %v2803_v48 = vpop.eup %2802  ;;  %493 = vrot.lane.b32.xlu0 %v2801_v43, %s2982_s24  ;;  %v646_v19 = vpop.f32.mrf.mxu3 }
 0x1bc   :  { %495 = vrot.lane.b32.xlu2 %v2803_v48, %s2982_s24 }
 0x1ed   :  { %v486_v49 = vpop.permute.xlu2 %485 }
 0x1ee   :  { %v508_v50 = vmul.f32 %v486_v49, %v3184_v24 }
 0x1f0   :  { %534 = vrot.lane.b32.xlu0 %v508_v50, %s2983_s0 }
 0x20e   :  { %v492_v57 = vpop.permute.xlu2 %491 }
 0x20f   :  { %v511_v63 = vmul.f32 %v492_v57, %v3215_v14  ;;  %v2599_v14 = vld [vmem:[%s4037_s30 + $0x50] sm:$0xff] }
 0x215   :  { %v484_v52 = vpop.permute.xlu0 %483 }
 0x216   :  { %v507_v54 = vmul.f32 %v484_v52, %v3167_v2  ;;  %v450_v55 = vpop.permute.xlu1 %449  ;;  %v496_v60 = vpop.permute.xlu2 %495 }
 0x217   :  { %v3293_v56 = vadd.f32 %v450_v55, %v386_v53  ;;  %v513_v3 = vmul.f32 %v496_v60, %v3227_v37 }
 0x218   :  { %532 = vrot.lane.b32.xlu1 %v507_v54, %s2983_s0 }
 0x219   :  { %2804 = vtanh.f32 %v3293_v56 }
 0x21e   :  { %v490_v58 = vpop.permute.xlu1 %489 }
 0x21f   :  { %v2805_v59 = vpop.eup %2804  ;;  %v510_v24 = vmul.f32 %v490_v58, %v3208_v62 }
 0x220   :  { %497 = vrot.lane.b32.xlu1 %v2805_v59, %s2982_s24 }
 0x221   :  { %538 = vrot.lane.b32.xlu0 %v510_v24, %s2983_s0 }
 0x225   :  { %v488_v61 = vpop.permute.xlu0 %487 }
 0x226   :  { %v509_v2 = vmul.f32 %v488_v61, %v3200_v47  ;;  %v2598_v47 = vld [vmem:[%s4037_s30 + $0x48] sm:$0xff] }
 0x227   :  { %2615 = vmatmul.msk.f32.gmra.mxu3 %vm130_vm1, %v2598_v47 }
 0x228   :  { %536 = vrot.lane.b32.xlu2 %v509_v2, %s2983_s0  ;;  %540 = vrot.lane.b32.xlu1 %v511_v63, %s2983_s0 }
 0x229   :  { %544 = vrot.lane.b32.xlu0 %v513_v3, %s2983_s0 }
 0x22d   :  { %v494_v1 = vpop.permute.xlu0 %493 }
 0x22e   :  { %v512_v62 = vmul.f32 %v494_v1, %v3221_v27  ;;  %v2600_v27 = vld [vmem:[%s4037_s30 + $0x58] sm:$0xff] }
 0x22f   :  { %2616 = vmatmul.msk.f32.gmra.mxu3 %vm130_vm1, %v2599_v14 }
 0x230   :  { %542 = vrot.lane.b32.xlu2 %v512_v62, %s2983_s0 }
 0x237   :  { %2617 = vmatmul.msk.f32.gmra.mxu3 %vm130_vm1, %v2600_v27 }
 0x23f   :  { %2618 = vmatmul.msk.f32.gmra.mxu3 %vm130_vm1, %v2601_v5 }
 0x247   :  { %2619 = vmatmul.msk.f32.gmra.mxu3 %vm130_vm1, %v2602_v8 }
 0x24f   :  { %2620 = vmatmul.msk.f32.gmra.mxu3 %vm130_vm1, %v2603_v11 }
 0x257   :  { %2621 = vmatmul.msk.f32.gmra.mxu3 %vm130_vm1, %v2604_v18 }
 0x262   :  { %v535_v6 = vpop.permute.xlu0 %534 }
 0x282   :  { %v537_v10 = vpop.permute.xlu2 %536 }
 0x28a   :  { %v533_v37 = vpop.permute.xlu1 %532 }
 0x28b   :  { %2605 = vmatmul.msk.f32.vlgmr.msra.gmra.mxu2 %vm85_vm9, %v533_v37 }
 0x292   :  { %v498_v7 = vpop.permute.xlu1 %497 }
 0x293   :  { %v514_v9 = vmul.f32 %v498_v7, %v3237_v0  ;;  %2606 = vmatmul.msk.f32.gmra.mxu2 %vm85_vm9, %v535_v6  ;;  %v539_v12 = vpop.permute.xlu0 %538  ;;  %v543_v0 = vpop.permute.xlu2 %542 }
 0x295   :  { %546 = vrot.lane.b32.xlu1 %v514_v9, %s2983_s0 }
 0x29a   :  { %v541_v15 = vpop.permute.xlu1 %540 }
 0x29b   :  { %2607 = vmatmul.msk.f32.gmra.mxu2 %vm85_vm9, %v537_v10  ;;  %v545_v17 = vpop.permute.xlu0 %544 }
 0x2a3   :  { %2608 = vmatmul.msk.f32.gmra.mxu2 %vm85_vm9, %v539_v12 }
 0x2aa   :  { %v649_v22 = vpop.f32.mrf.mxu3 }
 0x2ab   :  { %2609 = vmatmul.msk.f32.gmra.mxu2 %vm85_vm9, %v541_v15 }
 0x2b2   :  { %v652_v30 = vpop.f32.mrf.mxu3 }
 0x2b3   :  { %2610 = vmatmul.msk.f32.gmra.mxu2 %vm85_vm9, %v543_v0 }
 0x2ba   :  { %v655_v43 = vpop.f32.mrf.mxu3 }
 0x2bb   :  { %2611 = vmatmul.msk.f32.gmra.mxu2 %vm85_vm9, %v545_v17 }
 0x2c2   :  { %v658_v24 = vpop.f32.mrf.mxu3 }
 0x2ca   :  { %v661_v0 = vpop.f32.mrf.mxu3 }
 0x307   :  { %v547_v21 = vpop.permute.xlu1 %546 }
 0x308   :  { %2612 = vmatmul.msk.f32.gmra.mxu2 %vm85_vm9, %v547_v21 }
 0x30e   :  { %v581_v25 = vpop.f32.mrf.mxu2 }
 0x30f   :  { %v647_v26 = vadd.f32 %v646_v19, %v581_v25 }
 0x311   :  { %v670_v28 = vadd.f32 %v3145_v13, %v647_v26 }
 0x313   :  { %v686_v29 = vsub.f32 0.0, %v670_v28 }
 0x315   :  { %v694_v31 = vmul.f32 1.442695, %v686_v29 }
 0x316   :  { %v584_v32 = vpop.f32.mrf.mxu2 }
 0x317   :  { %2806 = vpow2.f32 %v694_v31  ;;  %v650_v35 = vadd.f32 %v649_v22, %v584_v32 }
 0x319   :  { %v671_v38 = vadd.f32 %v3145_v13, %v650_v35 }
 0x31b   :  { %v687_v39 = vsub.f32 0.0, %v671_v38 }
 0x31d   :  { %v2807_v40 = vpop.eup %2806  ;;  %v696_v41 = vmul.f32 1.442695, %v687_v39 }
 0x31e   :  { %v710_v42 = vadd.f32 1.0, %v2807_v40  ;;  %v587_v46 = vpop.f32.mrf.mxu2 }
 0x31f   :  { %2808 = vpow2.f32 %v696_v41  ;;  %v653_v48 = vadd.f32 %v652_v30, %v587_v46 }
 0x320   :  { %2810 = vrcp.f32 %v710_v42  ;;  %v727_v2 = vand.u32 2147483647, %v710_v42  ;;  %v729_v63 = vand.u32 2147483648, %v710_v42  ;;  %vm723_vm11 = vweird.f32 %v710_v42 }
 0x321   :  { %v3353_v49 = vadd.f32 %v3145_v13, %v653_v48 }
 0x322   :  { %vm728_vm13 = vcmp.eq.f32.partialorder %v727_v2, 8.507059e+37  ;;  %v730_v5 = vor.u32 1.1754944e-38, %v729_v63 }
 0x323   :  { %v688_v50 = vsub.f32 0.0, %v3353_v49 }
 0x325   :  { %v2809_v52 = vpop.eup %2808  ;;  %v698_v53 = vmul.f32 1.442695, %v688_v50 }
 0x326   :  { %v2811_v54 = vpop.eup %2810  ;;  %v711_v55 = vadd.f32 1.0, %v2809_v52  ;;  %v590_v57 = vpop.f32.mrf.mxu2 }
 0x327   :  { %2812 = vpow2.f32 %v698_v53  ;;  %v656_v58 = vadd.f32 %v655_v43, %v590_v57  ;;  %v719_v59 = vmul.f32 %v2811_v54, %v710_v42  ;;  %vm724_vm10 = vweird.f32 %v2811_v54  ;;  %v664_v53 = vpop.f32.mrf.mxu3 }
 0x328   :  { %2814 = vrcp.f32 %v711_v55  ;;  %vm725_vm12 = vmor %vm723_vm11, %vm724_vm10  ;;  %v742_v17 = vand.u32 2147483647, %v711_v55  ;;  %v744_v18 = vand.u32 2147483648, %v711_v55  ;;  %vm738_vm15 = vweird.f32 %v711_v55 }
 0x329   :  { %v3357_v60 = vadd.f32 %v3145_v13, %v656_v58  ;;  %v720_v61 = vsub.f32 1.0, %v719_v59  ;;  %2816 = vtanh.f32 %v670_v28 }
 0x32a   :  { %vm743_vm2 = vcmp.eq.f32.partialorder %v742_v17, 8.507059e+37  ;;  %v745_v31 = vor.u32 1.1754944e-38, %v744_v18 }
 0x32b   :  { %v689_v3 = vsub.f32 0.0, %v3357_v60  ;;  %v721_v1 = vmul.f32 %v2811_v54, %v720_v61 }
 0x32d   :  { %v2813_v62 = vpop.eup %2812  ;;  %v700_v4 = vmul.f32 1.442695, %v689_v3  ;;  %v722_v47 = vadd.f32 %v2811_v54, %v721_v1 }
 0x32e   :  { %v2815_v14 = vpop.eup %2814  ;;  %v712_v27 = vadd.f32 1.0, %v2813_v62  ;;  %v593_v37 = vpop.f32.mrf.mxu2 }
 0x32f   :  { %2818 = vpow2.f32 %v700_v4  ;;  %v659_v6 = vadd.f32 %v658_v24, %v593_v37  ;;  %v726_v7 = vsel %vm725_vm12, %v2811_v54, %v722_v47  ;;  %v734_v8 = vmul.f32 %v2815_v14, %v711_v55  ;;  %v2817_v9 = vpop.eup %2816 }
 0x330   :  { %2820 = vrcp.f32 %v712_v27  ;;  %v731_v10 = vsel %vm728_vm13, %v730_v5, %v726_v7  ;;  %vm739_vm14 = vweird.f32 %v2815_v14  ;;  %v757_v43 = vand.u32 2147483647, %v712_v27 }
 0x331   :  { %v3361_v11 = vadd.f32 %v3145_v13, %v659_v6  ;;  %v3365_v12 = vsel %vm3158_vm5, %v2817_v9, %v731_v10  ;;  %v735_v15 = vsub.f32 1.0, %v734_v8  ;;  %2822 = vtanh.f32 %v671_v38  ;;  %vm740_vm0 = vmor %vm738_vm15, %vm739_vm14 }
 0x332   :  { %862 = vrot.lane.b32.xlu2 %v3365_v12, %s2980_s22  ;;  %v759_v48 = vand.u32 2147483648, %v712_v27  ;;  %vm753_vm4 = vweird.f32 %v712_v27  ;;  %vm758_vm7 = vcmp.eq.f32.partialorder %v757_v43, 8.507059e+37 }
 0x333   :  { %v690_v19 = vsub.f32 0.0, %v3361_v11  ;;  %v736_v21 = vmul.f32 %v2815_v14, %v735_v15 }
 0x335   :  { %v2819_v22 = vpop.eup %2818  ;;  %v702_v25 = vmul.f32 1.442695, %v690_v19  ;;  %v737_v26 = vadd.f32 %v2815_v14, %v736_v21 }
 0x336   :  { %v2821_v28 = vpop.eup %2820  ;;  %v713_v29 = vadd.f32 1.0, %v2819_v22  ;;  %v596_v30 = vpop.f32.mrf.mxu2 }
 0x337   :  { %2824 = vpow2.f32 %v702_v25  ;;  %v662_v32 = vadd.f32 %v661_v0, %v596_v30  ;;  %v741_v35 = vsel %vm740_vm0, %v2815_v14, %v737_v26  ;;  %v749_v38 = vmul.f32 %v2821_v28, %v712_v27  ;;  %v2823_v39 = vpop.eup %2822 }
 0x338   :  { %2826 = vrcp.f32 %v713_v29  ;;  %v746_v40 = vsel %vm743_vm2, %v745_v31, %v741_v35  ;;  %vm754_vm3 = vweird.f32 %v2821_v28  ;;  %v774_v14 = vand.u32 2147483648, %v713_v29 }
 0x339   :  { %v3371_v41 = vadd.f32 %v3145_v13, %v662_v32  ;;  %v3375_v42 = vsel %vm3158_vm5, %v2823_v39, %v746_v40  ;;  %v750_v46 = vsub.f32 1.0, %v749_v38  ;;  %2828 = vtanh.f32 %v3353_v49  ;;  %vm755_vm6 = vmor %vm753_vm4, %vm754_vm3 }
 0x33a   :  { %864 = vrot.lane.b32.xlu0 %v3375_v42, %s2980_s22  ;;  %v760_v49 = vor.u32 1.1754944e-38, %v759_v48  ;;  %v772_v5 = vand.u32 2147483647, %v713_v29  ;;  %vm768_vm10 = vweird.f32 %v713_v29  ;;  %v775_v10 = vor.u32 1.1754944e-38, %v774_v14 }
 0x33b   :  { %v691_v50 = vsub.f32 0.0, %v3371_v41  ;;  %v751_v52 = vmul.f32 %v2821_v28, %v750_v46 }
 0x33c   :  { %vm773_vm12 = vcmp.eq.f32.partialorder %v772_v5, 8.507059e+37 }
 0x33d   :  { %v2825_v54 = vpop.eup %2824  ;;  %v704_v55 = vmul.f32 1.442695, %v691_v50  ;;  %v752_v57 = vadd.f32 %v2821_v28, %v751_v52 }
 0x33e   :  { %v2827_v58 = vpop.eup %2826  ;;  %v714_v59 = vadd.f32 1.0, %v2825_v54  ;;  %v599_v24 = vpop.f32.mrf.mxu2 }
 0x33f   :  { %2830 = vpow2.f32 %v704_v55  ;;  %v665_v61 = vadd.f32 %v664_v53, %v599_v24  ;;  %v756_v2 = vsel %vm755_vm6, %v2821_v28, %v752_v57  ;;  %v764_v63 = vmul.f32 %v2827_v58, %v713_v29  ;;  %v2829_v3 = vpop.eup %2828 }
 0x340   :  { %2832 = vrcp.f32 %v714_v59  ;;  %v761_v1 = vsel %vm758_vm7, %v760_v49, %v756_v2  ;;  %vm769_vm8 = vweird.f32 %v2827_v58  ;;  %v789_v21 = vand.u32 2147483648, %v714_v59 }
 0x341   :  { %v3382_v62 = vadd.f32 %v3145_v13, %v665_v61  ;;  %v3386_v4 = vsel %vm3158_vm5, %v2829_v3, %v761_v1  ;;  %v765_v47 = vsub.f32 1.0, %v764_v63  ;;  %2834 = vtanh.f32 %v3357_v60  ;;  %vm770_vm11 = vmor %vm768_vm10, %vm769_vm8 }
 0x342   :  { %866 = vrot.lane.b32.xlu1 %v3386_v4, %s2980_s22  ;;  %v787_v25 = vand.u32 2147483647, %v714_v59  ;;  %vm783_vm14 = vweird.f32 %v714_v59  ;;  %v790_v31 = vor.u32 1.1754944e-38, %v789_v21 }
 0x343   :  { %v692_v27 = vsub.f32 0.0, %v3382_v62  ;;  %v766_v37 = vmul.f32 %v2827_v58, %v765_v47 }
 0x344   :  { %vm788_vm0 = vcmp.eq.f32.partialorder %v787_v25, 8.507059e+37 }
 0x345   :  { %v2831_v6 = vpop.eup %2830  ;;  %v706_v7 = vmul.f32 1.442695, %v692_v27  ;;  %v767_v13 = vadd.f32 %v2827_v58, %v766_v37 }
 0x346   :  { %v2833_v8 = vpop.eup %2832  ;;  %v715_v9 = vadd.f32 1.0, %v2831_v6 }
 0x347   :  { %2836 = vpow2.f32 %v706_v7  ;;  %v771_v15 = vsel %vm770_vm11, %v2827_v58, %v767_v13  ;;  %v779_v60 = vmul.f32 %v2833_v8, %v714_v59  ;;  %v2835_v0 = vpop.eup %2834  ;;  %vm784_vm13 = vweird.f32 %v2833_v8  ;;  %v3423_v7 = vld [vmem:[%s4038_s3] ss:$0 sm:$0xff] }
 0x348   :  { %2838 = vrcp.f32 %v715_v9  ;;  %v776_v17 = vsel %vm773_vm12, %v775_v10, %v771_v15  ;;  %vm785_vm15 = vmor %vm783_vm14, %vm784_vm13  ;;  %v804_v46 = vand.u32 2147483648, %v715_v9  ;;  %v802_v48 = vand.u32 2147483647, %v715_v9 }
 0x349   :  { %v3394_v18 = vsel %vm3158_vm5, %v2835_v0, %v776_v17  ;;  %v780_v19 = vsub.f32 1.0, %v779_v60  ;;  %2840 = vtanh.f32 %v3361_v11  ;;  %vm798_vm3 = vweird.f32 %v715_v9 }
 0x34a   :  { %868 = vrot.lane.b32.xlu2 %v3394_v18, %s2980_s22  ;;  %v805_v53 = vor.u32 1.1754944e-38, %v804_v46  ;;  %vm803_vm6 = vcmp.eq.f32.partialorder %v802_v48, 8.507059e+37 }
 0x34b   :  { %v781_v22 = vmul.f32 %v2833_v8, %v780_v19 }
 0x34d   :  { %v2837_v26 = vpop.eup %2836  ;;  %v782_v28 = vadd.f32 %v2833_v8, %v781_v22 }
 0x34e   :  { %v2839_v29 = vpop.eup %2838  ;;  %v716_v30 = vadd.f32 1.0, %v2837_v26 }
 0x34f   :  { %v786_v32 = vsel %vm785_vm15, %v2833_v8, %v782_v28  ;;  %v794_v35 = vmul.f32 %v2839_v29, %v715_v9  ;;  %v2841_v38 = vpop.eup %2840  ;;  %vm799_vm2 = vweird.f32 %v2839_v29 }
 0x350   :  { %2842 = vrcp.f32 %v716_v30  ;;  %v791_v11 = vsel %vm788_vm0, %v790_v31, %v786_v32  ;;  %vm800_vm4 = vmor %vm798_vm3, %vm799_vm2  ;;  %v819_v24 = vand.u32 2147483648, %v716_v30  ;;  %v817_v61 = vand.u32 2147483647, %v716_v30 }
 0x351   :  { %v3401_v39 = vsel %vm3158_vm5, %v2841_v38, %v791_v11  ;;  %v795_v40 = vsub.f32 1.0, %v794_v35  ;;  %2844 = vtanh.f32 %v3371_v41  ;;  %vm813_vm8 = vweird.f32 %v716_v30 }
 0x352   :  { %870 = vrot.lane.b32.xlu0 %v3401_v39, %s2980_s22  ;;  %2846 = vtanh.f32 %v3382_v62  ;;  %v820_v63 = vor.u32 1.1754944e-38, %v819_v24  ;;  %vm818_vm11 = vcmp.eq.f32.partialorder %v817_v61, 8.507059e+37  ;;  %v667_v62 = vpop.f32.mrf.mxu3  ;;  %v847_v61 = vmul.f32 %v3375_v42, %v3253_v16 }
 0x353   :  { %v796_v43 = vmul.f32 %v2839_v29, %v795_v40 }
 0x355   :  { %v797_v50 = vadd.f32 %v2839_v29, %v796_v43 }
 0x356   :  { %v2843_v52 = vpop.eup %2842 }
 0x357   :  { %v801_v54 = vsel %vm800_vm4, %v2839_v29, %v797_v50  ;;  %v809_v55 = vmul.f32 %v2843_v52, %v716_v30  ;;  %v2845_v57 = vpop.eup %2844  ;;  %vm814_vm7 = vweird.f32 %v2843_v52 }
 0x358   :  { %v806_v58 = vsel %vm803_vm6, %v805_v53, %v801_v54  ;;  %vm815_vm10 = vmor %vm813_vm8, %vm814_vm7  ;;  %v2847_v1 = vpop.eup %2846 }
 0x359   :  { %v3408_v41 = vsel %vm3158_vm5, %v2845_v57, %v806_v58  ;;  %v810_v59 = vsub.f32 1.0, %v809_v55  ;;  %v846_v55 = vmul.f32 %v3365_v12, %v3258_v20 }
 0x35a   :  { %872 = vrot.lane.b32.xlu1 %v3408_v41, %s2980_s22 }
 0x35b   :  { %v811_v49 = vmul.f32 %v2843_v52, %v810_v59 }
 0x35d   :  { %v812_v2 = vadd.f32 %v2843_v52, %v811_v49 }
 0x35f   :  { %v816_v3 = vsel %vm815_vm10, %v2843_v52, %v812_v2 }
 0x360   :  { %v821_v47 = vsel %vm818_vm11, %v820_v63, %v816_v3  ;;  %v850_v3 = vmul.f32 %v3401_v39, %v3272_v34 }
 0x361   :  { %v3415_v14 = vsel %vm3158_vm5, %v2847_v1, %v821_v47  ;;  %v849_v47 = vmul.f32 %v3394_v18, %v3262_v23 }
 0x362   :  { %874 = vrot.lane.b32.xlu0 %v3415_v14, %s2980_s22 }
 0x38b   :  { %v602_v27 = vpop.f32.mrf.mxu2 }
 0x38c   :  { %v668_v37 = vadd.f32 %v667_v62, %v602_v27  ;;  %v863_v5 = vpop.permute.xlu2 %862  ;;  %v848_v62 = vmul.f32 %v3386_v4, %v3270_v33  ;;  %v851_v33 = vmul.f32 %v3408_v41, %v3279_v44 }
 0x38d   :  { %v886_v6 = vmul.f32 %v863_v5, %v3365_v12 }
 0x38e   :  { %v677_v13 = vadd.f32 %v3423_v7, %v668_v37 }
 0x38f   :  { %902 = vrot.lane.b32.xlu2 %v886_v6, %s2981_s23 }
 0x390   :  { %v693_v8 = vsub.f32 0.0, %v677_v13 }
 0x392   :  { %v708_v9 = vmul.f32 1.442695, %v693_v8 }
 0x394   :  { %2848 = vpow2.f32 %v708_v9 }
 0x39a   :  { %v2849_v10 = vpop.eup %2848 }
 0x39b   :  { %v717_v15 = vadd.f32 1.0, %v2849_v10  ;;  %v852_v10 = vmul.f32 %v3415_v14, %v3281_v45 }
 0x39d   :  { %2850 = vrcp.f32 %v717_v15  ;;  %v834_v19 = vand.u32 2147483648, %v717_v15  ;;  %v832_v22 = vand.u32 2147483647, %v717_v15  ;;  %vm828_vm13 = vweird.f32 %v717_v15 }
 0x39e   :  { %2852 = vtanh.f32 %v677_v13 }
 0x39f   :  { %v835_v26 = vor.u32 1.1754944e-38, %v834_v19  ;;  %vm833_vm15 = vcmp.eq.f32.partialorder %v832_v22, 8.507059e+37 }
 0x3a3   :  { %v2851_v60 = vpop.eup %2850 }
 0x3a4   :  { %v824_v0 = vmul.f32 %v2851_v60, %v717_v15  ;;  %vm829_vm12 = vweird.f32 %v2851_v60  ;;  %v2853_v30 = vpop.eup %2852  ;;  %v869_v38 = vpop.permute.xlu2 %868 }
 0x3a5   :  { %vm830_vm14 = vmor %vm828_vm13, %vm829_vm12  ;;  %v889_v40 = vmul.f32 %v869_v38, %v3394_v18 }
 0x3a6   :  { %v825_v17 = vsub.f32 1.0, %v824_v0 }
 0x3a8   :  { %v826_v21 = vmul.f32 %v2851_v60, %v825_v17 }
 0x3aa   :  { %v827_v25 = vadd.f32 %v2851_v60, %v826_v21 }
 0x3ac   :  { %v865_v28 = vpop.permute.xlu0 %864  ;;  %v831_v29 = vsel %vm830_vm14, %v2851_v60, %v827_v25 }
 0x3ad   :  { %v887_v31 = vmul.f32 %v865_v28, %v3375_v42  ;;  %v836_v32 = vsel %vm833_vm15, %v835_v26, %v831_v29 }
 0x3ae   :  { %v3430_v35 = vsel %vm3158_vm5, %v2853_v30, %v836_v32 }
 0x3af   :  { %876 = vrot.lane.b32.xlu2 %v3430_v35, %s2980_s22  ;;  %904 = vrot.lane.b32.xlu1 %v887_v31, %s2981_s23  ;;  %v853_v21 = vmul.f32 %v3430_v35, %v3293_v56  ;;  %v2622_v56 = vld [vmem:[%s4037_s30 + $0x80] sm:$0xff] }
 0x3b0   :  { %2639 = vmatmul.msk.f32.vlgmr.msrb.gmra.mxu1 %vm130_vm1, %v2622_v56 }
 0x3b4   :  { %v867_v11 = vpop.permute.xlu1 %866 }
 0x3b5   :  { %v888_v46 = vmul.f32 %v867_v11, %v3386_v4 }
 0x3b7   :  { %906 = vrot.lane.b32.xlu0 %v888_v46, %s2981_s23  ;;  %908 = vrot.lane.b32.xlu1 %v889_v40, %s2981_s23 }
 0x3c4   :  { %v871_v43 = vpop.permute.xlu0 %870 }
 0x3c5   :  { %v890_v48 = vmul.f32 %v871_v43, %v3401_v39 }
 0x3c7   :  { %910 = vrot.lane.b32.xlu2 %v890_v48, %s2981_s23 }
 0x3cc   :  { %v873_v50 = vpop.permute.xlu1 %872 }
 0x3cd   :  { %v891_v52 = vmul.f32 %v873_v50, %v3408_v41  ;;  %v2626_v50 = vld [vmem:[%s4037_s30 + $0xa0] sm:$0xff] }
 0x3cf   :  { %912 = vrot.lane.b32.xlu0 %v891_v52, %s2981_s23 }
 0x3d4   :  { %v875_v53 = vpop.permute.xlu0 %874 }
 0x3d5   :  { %v892_v54 = vmul.f32 %v875_v53, %v3415_v14  ;;  %v2627_v53 = vld [vmem:[%s4037_s30 + $0xa8] sm:$0xff] }
 0x3d7   :  { %914 = vrot.lane.b32.xlu1 %v892_v54, %s2981_s23  ;;  %v2628_v54 = vld [vmem:[%s4037_s30 + $0xb0] sm:$0xff] }
 0x3e9   :  { %v903_v57 = vpop.permute.xlu2 %902 }
 0x3ea   :  { %v3447_v58 = vadd.f32 %v903_v57, %v846_v55 }
 0x3ec   :  { %2854 = vtanh.f32 %v3447_v58 }
 0x3f2   :  { %v2855_v59 = vpop.eup %2854 }
 0x3f3   :  { %950 = vrot.lane.b32.xlu2 %v2855_v59, %s2982_s24 }
 0x409   :  { %v877_v24 = vpop.permute.xlu2 %876 }
 0x40a   :  { %v893_v49 = vmul.f32 %v877_v24, %v3430_v35 }
 0x40c   :  { %916 = vrot.lane.b32.xlu0 %v893_v49, %s2981_s23 }
 0x421   :  { %v905_v2 = vpop.permute.xlu1 %904  ;;  %v911_v20 = vpop.permute.xlu2 %910 }
 0x422   :  { %v3455_v63 = vadd.f32 %v905_v2, %v847_v61  ;;  %v3460_v1 = vadd.f32 %v911_v20, %v850_v3 }
 0x424   :  { %2856 = vtanh.f32 %v3455_v63 }
 0x425   :  { %2858 = vtanh.f32 %v3460_v1 }
 0x429   :  { %v909_v27 = vpop.permute.xlu1 %908  ;;  %v907_v37 = vpop.permute.xlu0 %906 }
 0x42a   :  { %v2857_v16 = vpop.eup %2856  ;;  %v3466_v5 = vadd.f32 %v909_v27, %v849_v47  ;;  %v3468_v6 = vadd.f32 %v907_v37, %v848_v62  ;;  %v2629_v27 = vld [vmem:[%s4037_s30 + $0xb8] sm:$0xff] }
 0x42b   :  { %952 = vrot.lane.b32.xlu1 %v2857_v16, %s2982_s24  ;;  %v2859_v34 = vpop.eup %2858 }
 0x42c   :  { %2860 = vtanh.f32 %v3466_v5 }
 0x42d   :  { %2862 = vtanh.f32 %v3468_v6  ;;  %v1113_v24 = vpop.f32.mrf.mxu1 }
 0x432   :  { %v2861_v23 = vpop.eup %2860 }
 0x433   :  { %v2863_v13 = vpop.eup %2862  ;;  %956 = vrot.lane.b32.xlu0 %v2861_v23, %s2982_s24  ;;  %958 = vrot.lane.b32.xlu1 %v2859_v34, %s2982_s24 }
 0x434   :  { %954 = vrot.lane.b32.xlu2 %v2863_v13, %s2982_s24 }
 0x441   :  { %v913_v8 = vpop.permute.xlu0 %912 }
 0x442   :  { %v3479_v9 = vadd.f32 %v913_v8, %v851_v33 }
 0x444   :  { %2864 = vtanh.f32 %v3479_v9 }
 0x449   :  { %v915_v15 = vpop.permute.xlu1 %914 }
 0x44a   :  { %v2865_v60 = vpop.eup %2864  ;;  %v3484_v0 = vadd.f32 %v915_v15, %v852_v10 }
 0x44b   :  { %960 = vrot.lane.b32.xlu2 %v2865_v60, %s2982_s24 }
 0x44c   :  { %2866 = vtanh.f32 %v3484_v0 }
 0x44d   :  { %v951_v17 = vpop.permute.xlu2 %950 }
 0x44e   :  { %v974_v19 = vmul.f32 %v951_v17, %v3365_v12 }
 0x450   :  { %999 = vrot.lane.b32.xlu0 %v974_v19, %s2983_s0 }
 0x452   :  { %v2867_v44 = vpop.eup %2866 }
 0x453   :  { %962 = vrot.lane.b32.xlu1 %v2867_v44, %s2982_s24 }
 0x47e   :  { %v917_v45 = vpop.permute.xlu0 %916 }
 0x47f   :  { %v3493_v22 = vadd.f32 %v917_v45, %v853_v21 }
 0x481   :  { %2868 = vtanh.f32 %v3493_v22 }
 0x487   :  { %v2869_v25 = vpop.eup %2868 }
 0x488   :  { %964 = vrot.lane.b32.xlu0 %v2869_v25, %s2982_s24 }
 0x48e   :  { %v955_v26 = vpop.permute.xlu2 %954 }
 0x48f   :  { %v976_v28 = vmul.f32 %v955_v26, %v3386_v4 }
 0x491   :  { %1003 = vrot.lane.b32.xlu1 %v976_v28, %s2983_s0 }
 0x49d   :  { %v953_v12 = vpop.permute.xlu1 %952 }
 0x49e   :  { %v975_v29 = vmul.f32 %v953_v12, %v3375_v42 }
 0x4a0   :  { %1001 = vrot.lane.b32.xlu2 %v975_v29, %s2983_s0 }
 0x4a5   :  { %v959_v30 = vpop.permute.xlu1 %958  ;;  %v961_v31 = vpop.permute.xlu2 %960 }
 0x4a6   :  { %v978_v32 = vmul.f32 %v959_v30, %v3401_v39  ;;  %v979_v38 = vmul.f32 %v961_v31, %v3408_v41  ;;  %v957_v4 = vpop.permute.xlu0 %956  ;;  %v2623_v39 = vld [vmem:[%s4037_s30 + $0x88] sm:$0xff]  ;;  %v2625_v41 = vld [vmem:[%s4037_s30 + $0x98] sm:$0xff] }
 0x4a7   :  { %v977_v11 = vmul.f32 %v957_v4, %v3394_v18  ;;  %2640 = vmatmul.msk.f32.gmra.mxu1 %vm130_vm1, %v2623_v39  ;;  %v2624_v18 = vld [vmem:[%s4037_s30 + $0x90] sm:$0xff] }
 0x4a8   :  { %1009 = vrot.lane.b32.xlu1 %v979_v38, %s2983_s0  ;;  %1007 = vrot.lane.b32.xlu0 %v978_v32, %s2983_s0 }
 0x4a9   :  { %1005 = vrot.lane.b32.xlu2 %v977_v11, %s2983_s0 }
 0x4af   :  { %2641 = vmatmul.msk.f32.gmra.mxu1 %vm130_vm1, %v2624_v18 }
 0x4b7   :  { %2642 = vmatmul.msk.f32.gmra.mxu1 %vm130_vm1, %v2625_v41 }
 0x4bf   :  { %2643 = vmatmul.msk.f32.gmra.mxu1 %vm130_vm1, %v2626_v50 }
 0x4c2   :  { %v1000_v42 = vpop.permute.xlu0 %999 }
 0x4c3   :  { %2630 = vmatmul.msk.f32.vlgmr.msrb.gmra.mxu0 %vm85_vm9, %v1000_v42 }
 0x4c5   :  { %v963_v40 = vpop.permute.xlu1 %962 }
 0x4c6   :  { %v980_v46 = vmul.f32 %v963_v40, %v3415_v14 }
 0x4c7   :  { %2644 = vmatmul.msk.f32.gmra.mxu1 %vm130_vm1, %v2627_v53 }
 0x4c8   :  { %1011 = vrot.lane.b32.xlu2 %v980_v46, %s2983_s0 }
 0x4cf   :  { %2645 = vmatmul.msk.f32.gmra.mxu1 %vm130_vm1, %v2628_v54 }
 0x4d7   :  { %2646 = vmatmul.msk.f32.gmra.mxu1 %vm130_vm1, %v2629_v27 }
 0x4fa   :  { %v1002_v14 = vpop.permute.xlu2 %1001  ;;  %v965_v43 = vpop.permute.xlu0 %964 }
 0x4fb   :  { %v981_v48 = vmul.f32 %v965_v43, %v3430_v35  ;;  %2631 = vmatmul.msk.f32.gmra.mxu0 %vm85_vm9, %v1002_v14 }
 0x4fd   :  { %1013 = vrot.lane.b32.xlu0 %v981_v48, %s2983_s0 }
 0x503   :  { %v1004_v52 = vpop.permute.xlu1 %1003  ;;  %v1006_v35 = vpop.permute.xlu2 %1005 }
 0x504   :  { %2632 = vmatmul.msk.f32.gmra.mxu0 %vm85_vm9, %v1004_v52 }
 0x50c   :  { %2633 = vmatmul.msk.f32.gmra.mxu0 %vm85_vm9, %v1006_v35 }
 0x51a   :  { %v1008_v55 = vpop.permute.xlu0 %1007  ;;  %v1010_v57 = vpop.permute.xlu1 %1009 }
 0x51b   :  { %2634 = vmatmul.msk.f32.gmra.mxu0 %vm85_vm9, %v1008_v55 }
 0x522   :  { %v1012_v59 = vpop.permute.xlu2 %1011 }
 0x523   :  { %2635 = vmatmul.msk.f32.gmra.mxu0 %vm85_vm9, %v1010_v57 }
 0x524   :  { %v1116_v21 = vpop.f32.mrf.mxu1 }
 0x52b   :  { %2636 = vmatmul.msk.f32.gmra.mxu0 %vm85_vm9, %v1012_v59 }
 0x52c   :  { %v1119_v12 = vpop.f32.mrf.mxu1 }
 0x534   :  { %v1122_v4 = vpop.f32.mrf.mxu1 }
 0x53c   :  { %v1125_v52 = vpop.f32.mrf.mxu1 }
 0x540   :  { %v1048_v49 = vpop.f32.mrf.mxu0 }
 0x541   :  { %v1114_v61 = vadd.f32 %v1113_v24, %v1048_v49 }
 0x543   :  { %v1137_v2 = vadd.f32 %v3423_v7, %v1114_v61 }
 0x545   :  { %v1153_v20 = vsub.f32 0.0, %v1137_v2 }
 0x547   :  { %v1161_v3 = vmul.f32 1.442695, %v1153_v20 }
 0x549   :  { %2870 = vpow2.f32 %v1161_v3 }
 0x54f   :  { %v2871_v47 = vpop.eup %2870 }
 0x550   :  { %v1177_v62 = vadd.f32 1.0, %v2871_v47 }
 0x552   :  { %2872 = vrcp.f32 %v1177_v62  ;;  %v1196_v23 = vand.u32 2147483648, %v1177_v62  ;;  %v1194_v33 = vand.u32 2147483647, %v1177_v62  ;;  %vm1190_vm2 = vweird.f32 %v1177_v62 }
 0x553   :  { %2874 = vtanh.f32 %v1137_v2 }
 0x554   :  { %v1197_v10 = vor.u32 1.1754944e-38, %v1196_v23  ;;  %vm1195_vm4 = vcmp.eq.f32.partialorder %v1194_v33, 8.507059e+37 }
 0x558   :  { %v2873_v37 = vpop.eup %2872 }
 0x559   :  { %v1186_v16 = vmul.f32 %v2873_v37, %v1177_v62  ;;  %vm1191_vm0 = vweird.f32 %v2873_v37  ;;  %v2875_v60 = vpop.eup %2874 }
 0x55a   :  { %vm1192_vm3 = vmor %vm1190_vm2, %vm1191_vm0 }
 0x55b   :  { %v1187_v34 = vsub.f32 1.0, %v1186_v16 }
 0x55d   :  { %v1188_v13 = vmul.f32 %v2873_v37, %v1187_v34  ;;  %v1128_v34 = vpop.f32.mrf.mxu1 }
 0x55f   :  { %v1189_v8 = vadd.f32 %v2873_v37, %v1188_v13 }
 0x561   :  { %v1193_v15 = vsel %vm1192_vm3, %v2873_v37, %v1189_v8 }
 0x562   :  { %v1198_v17 = vsel %vm1195_vm4, %v1197_v10, %v1193_v15 }
 0x563   :  { %v3553_v19 = vsel %vm3158_vm5, %v2875_v60, %v1198_v17 }
 0x564   :  { %1329 = vrot.lane.b32.xlu1 %v3553_v19, %s2980_s22 }
 0x56f   :  { %v1014_v44 = vpop.permute.xlu0 %1013 }
 0x570   :  { %2637 = vmatmul.msk.f32.gmra.mxu0 %vm85_vm9, %v1014_v44 }
 0x578   :  { %v1051_v45 = vpop.f32.mrf.mxu0 }
 0x579   :  { %v1117_v25 = vadd.f32 %v1116_v21, %v1051_v45 }
 0x57b   :  { %v1138_v26 = vadd.f32 %v3423_v7, %v1117_v25 }
 0x57d   :  { %v1154_v28 = vsub.f32 0.0, %v1138_v26 }
 0x57f   :  { %v1163_v29 = vmul.f32 1.442695, %v1154_v28 }
 0x581   :  { %2876 = vpow2.f32 %v1163_v29  ;;  %v1054_v56 = vpop.f32.mrf.mxu0 }
 0x582   :  { %v1120_v30 = vadd.f32 %v1119_v12, %v1054_v56 }
 0x584   :  { %v1139_v31 = vadd.f32 %v3423_v7, %v1120_v30 }
 0x586   :  { %v1155_v32 = vsub.f32 0.0, %v1139_v31 }
 0x587   :  { %v2877_v38 = vpop.eup %2876 }
 0x588   :  { %v1178_v11 = vadd.f32 1.0, %v2877_v38  ;;  %v1165_v42 = vmul.f32 1.442695, %v1155_v32  ;;  %v1131_v38 = vpop.f32.mrf.mxu1 }
 0x589   :  { %v1057_v40 = vpop.f32.mrf.mxu0 }
 0x58a   :  { %2878 = vrcp.f32 %v1178_v11  ;;  %v1123_v46 = vadd.f32 %v1122_v4, %v1057_v40  ;;  %v1211_v35 = vand.u32 2147483648, %v1178_v11  ;;  %v1209_v55 = vand.u32 2147483647, %v1178_v11 }
 0x58b   :  { %2880 = vpow2.f32 %v1165_v42  ;;  %vm1205_vm6 = vweird.f32 %v1178_v11 }
 0x58c   :  { %v1140_v39 = vadd.f32 %v3423_v7, %v1123_v46  ;;  %v1212_v49 = vor.u32 1.1754944e-38, %v1211_v35  ;;  %vm1210_vm8 = vcmp.eq.f32.partialorder %v1209_v55, 8.507059e+37 }
 0x58e   :  { %v1156_v18 = vsub.f32 0.0, %v1140_v39 }
 0x590   :  { %v2879_v41 = vpop.eup %2878  ;;  %v1167_v14 = vmul.f32 1.442695, %v1156_v18 }
 0x591   :  { %v2881_v43 = vpop.eup %2880  ;;  %v1201_v48 = vmul.f32 %v2879_v41, %v1178_v11  ;;  %vm1206_vm1 = vweird.f32 %v2879_v41 }
 0x592   :  { %v1179_v50 = vadd.f32 1.0, %v2881_v43  ;;  %2882 = vpow2.f32 %v1167_v14  ;;  %vm1207_vm7 = vmor %vm1205_vm6, %vm1206_vm1 }
 0x593   :  { %2884 = vtanh.f32 %v1138_v26  ;;  %v1202_v53 = vsub.f32 1.0, %v1201_v48 }
 0x594   :  { %2886 = vrcp.f32 %v1179_v50  ;;  %v1226_v33 = vand.u32 2147483648, %v1179_v50  ;;  %v1224_v15 = vand.u32 2147483647, %v1179_v50  ;;  %vm1220_vm11 = vweird.f32 %v1179_v50 }
 0x595   :  { %v1203_v54 = vmul.f32 %v2879_v41, %v1202_v53 }
 0x596   :  { %v1227_v45 = vor.u32 1.1754944e-38, %v1226_v33  ;;  %vm1225_vm13 = vcmp.eq.f32.partialorder %v1224_v15, 8.507059e+37 }
 0x597   :  { %v1204_v57 = vadd.f32 %v2879_v41, %v1203_v54 }
 0x598   :  { %v2883_v59 = vpop.eup %2882  ;;  %v1060_v24 = vpop.f32.mrf.mxu0 }
 0x599   :  { %v2885_v61 = vpop.eup %2884  ;;  %v1180_v2 = vadd.f32 1.0, %v2883_v59  ;;  %v1126_v20 = vadd.f32 %v1125_v52, %v1060_v24  ;;  %v1208_v3 = vsel %vm1207_vm7, %v2879_v41, %v1204_v57 }
 0x59a   :  { %v2887_v47 = vpop.eup %2886  ;;  %v1213_v62 = vsel %vm1210_vm8, %v1212_v49, %v1208_v3 }
 0x59b   :  { %2888 = vrcp.f32 %v1180_v2  ;;  %v3562_v27 = vadd.f32 %v3423_v7, %v1126_v20  ;;  %v3566_v37 = vsel %vm3158_vm5, %v2885_v61, %v1213_v62  ;;  %v1216_v16 = vmul.f32 %v2887_v47, %v1179_v50 }
 0x59c   :  { %1331 = vrot.lane.b32.xlu2 %v3566_v37, %s2980_s22  ;;  %2890 = vtanh.f32 %v1139_v31  ;;  %vm1221_vm10 = vweird.f32 %v2887_v47  ;;  %v1241_v32 = vand.u32 2147483648, %v1180_v2  ;;  %v1239_v11 = vand.u32 2147483647, %v1180_v2 }
 0x59d   :  { %v1157_v23 = vsub.f32 0.0, %v3562_v27  ;;  %v1217_v13 = vsub.f32 1.0, %v1216_v16  ;;  %vm1222_vm12 = vmor %vm1220_vm11, %vm1221_vm10  ;;  %vm1235_vm15 = vweird.f32 %v1180_v2 }
 0x59e   :  { %v1242_v14 = vor.u32 1.1754944e-38, %v1241_v32  ;;  %vm1240_vm2 = vcmp.eq.f32.partialorder %v1239_v11, 8.507059e+37 }
 0x59f   :  { %v1169_v8 = vmul.f32 1.442695, %v1157_v23  ;;  %v1218_v10 = vmul.f32 %v2887_v47, %v1217_v13 }
 0x5a0   :  { %v1063_v60 = vpop.f32.mrf.mxu0 }
 0x5a1   :  { %v2889_v17 = vpop.eup %2888  ;;  %2892 = vpow2.f32 %v1169_v8  ;;  %v1129_v44 = vadd.f32 %v1128_v34, %v1063_v60  ;;  %v1219_v21 = vadd.f32 %v2887_v47, %v1218_v10 }
 0x5a2   :  { %v1231_v25 = vmul.f32 %v2889_v17, %v1180_v2  ;;  %v2891_v12 = vpop.eup %2890  ;;  %2894 = vtanh.f32 %v1140_v39  ;;  %vm1236_vm14 = vweird.f32 %v2889_v17 }
 0x5a3   :  { %v1142_v26 = vadd.f32 %v3423_v7, %v1129_v44  ;;  %v1223_v28 = vsel %vm1222_vm12, %v2887_v47, %v1219_v21  ;;  %vm1237_vm0 = vmor %vm1235_vm15, %vm1236_vm14 }
 0x5a4   :  { %v1228_v29 = vsel %vm1225_vm13, %v1227_v45, %v1223_v28  ;;  %v1232_v56 = vsub.f32 1.0, %v1231_v25 }
 0x5a5   :  { %v1158_v30 = vsub.f32 0.0, %v1142_v26  ;;  %v3574_v31 = vsel %vm3158_vm5, %v2891_v12, %v1228_v29 }
 0x5a6   :  { %1333 = vrot.lane.b32.xlu0 %v3574_v31, %s2980_s22  ;;  %v1233_v4 = vmul.f32 %v2889_v17, %v1232_v56 }
 0x5a7   :  { %v2893_v42 = vpop.eup %2892  ;;  %v1171_v40 = vmul.f32 1.442695, %v1158_v30 }
 0x5a8   :  { %v1181_v46 = vadd.f32 1.0, %v2893_v42  ;;  %v1066_v18 = vpop.f32.mrf.mxu0  ;;  %v1234_v41 = vadd.f32 %v2889_v17, %v1233_v4  ;;  %v2895_v48 = vpop.eup %2894 }
 0x5a9   :  { %2896 = vpow2.f32 %v1171_v40  ;;  %v1132_v39 = vadd.f32 %v1131_v38, %v1066_v18 }
 0x5aa   :  { %2898 = vrcp.f32 %v1181_v46  ;;  %v1238_v43 = vsel %vm1237_vm0, %v2889_v17, %v1234_v41  ;;  %v1256_v61 = vand.u32 2147483648, %v1181_v46  ;;  %v1254_v20 = vand.u32 2147483647, %v1181_v46 }
 0x5ab   :  { %v1143_v50 = vadd.f32 %v3423_v7, %v1132_v39  ;;  %v1243_v52 = vsel %vm1240_vm2, %v1242_v14, %v1238_v43  ;;  %vm1250_vm4 = vweird.f32 %v1181_v46  ;;  %v1134_v14 = vpop.f32.mrf.mxu1 }
 0x5ac   :  { %v3581_v53 = vsel %vm3158_vm5, %v2895_v48, %v1243_v52  ;;  %v1257_v34 = vor.u32 1.1754944e-38, %v1256_v61  ;;  %vm1255_vm6 = vcmp.eq.f32.partialorder %v1254_v20, 8.507059e+37 }
 0x5ad   :  { %v1159_v35 = vsub.f32 0.0, %v1143_v50  ;;  %1335 = vrot.lane.b32.xlu1 %v3581_v53, %s2980_s22 }
 0x5af   :  { %v2897_v54 = vpop.eup %2896  ;;  %v1173_v55 = vmul.f32 1.442695, %v1159_v35 }
 0x5b0   :  { %v2899_v57 = vpop.eup %2898  ;;  %v1182_v59 = vadd.f32 1.0, %v2897_v54 }
 0x5b1   :  { %2900 = vpow2.f32 %v1173_v55  ;;  %v1246_v24 = vmul.f32 %v2899_v57, %v1181_v46  ;;  %vm1251_vm3 = vweird.f32 %v2899_v57 }
 0x5b2   :  { %2902 = vrcp.f32 %v1182_v59  ;;  %vm1252_vm1 = vmor %vm1250_vm4, %vm1251_vm3  ;;  %v1271_v15 = vand.u32 2147483648, %v1182_v59  ;;  %v1269_v17 = vand.u32 2147483647, %v1182_v59  ;;  %vm1265_vm8 = vweird.f32 %v1182_v59 }
 0x5b3   :  { %v1247_v49 = vsub.f32 1.0, %v1246_v24  ;;  %2904 = vtanh.f32 %v3562_v27 }
 0x5b4   :  { %v1272_v45 = vor.u32 1.1754944e-38, %v1271_v15  ;;  %vm1270_vm11 = vcmp.eq.f32.partialorder %v1269_v17, 8.507059e+37 }
 0x5b5   :  { %v1248_v2 = vmul.f32 %v2899_v57, %v1247_v49 }
 0x5b7   :  { %v2901_v3 = vpop.eup %2900  ;;  %v1249_v47 = vadd.f32 %v2899_v57, %v1248_v2 }
 0x5b8   :  { %v2903_v62 = vpop.eup %2902  ;;  %v1183_v16 = vadd.f32 1.0, %v2901_v3 }
 0x5b9   :  { %v1253_v23 = vsel %vm1252_vm1, %v2899_v57, %v1249_v47  ;;  %v1261_v13 = vmul.f32 %v2903_v62, %v1182_v59  ;;  %v2905_v33 = vpop.eup %2904  ;;  %vm1266_vm7 = vweird.f32 %v2903_v62  ;;  %vm1552_vm1 = vcmask 97280  }
 0x5ba   :  { %2906 = vrcp.f32 %v1183_v16  ;;  %v1258_v8 = vsel %vm1255_vm6, %v1257_v34, %v1253_v23  ;;  %vm1267_vm10 = vmor %vm1265_vm8, %vm1266_vm7  ;;  %v1286_v30 = vand.u32 2147483648, %v1183_v16  ;;  %v1284_v38 = vand.u32 2147483647, %v1183_v16 }
 0x5bb   :  { %v3588_v27 = vsel %vm3158_vm5, %v2905_v33, %v1258_v8  ;;  %v1262_v10 = vsub.f32 1.0, %v1261_v13  ;;  %2908 = vtanh.f32 %v1142_v26  ;;  %vm1280_vm13 = vweird.f32 %v1183_v16 }
 0x5bc   :  { %1337 = vrot.lane.b32.xlu2 %v3588_v27, %s2980_s22  ;;  %2910 = vtanh.f32 %v1143_v50  ;;  %v1287_v11 = vor.u32 1.1754944e-38, %v1286_v30  ;;  %vm1285_vm15 = vcmp.eq.f32.partialorder %v1284_v38, 8.507059e+37  ;;  %vm1649_vm7 = vcmask 1043456  }
 0x5bd   :  { %v1263_v60 = vmul.f32 %v2903_v62, %v1262_v10 }
 0x5bf   :  { %v1264_v44 = vadd.f32 %v2903_v62, %v1263_v60 }
 0x5c0   :  { %v2907_v21 = vpop.eup %2906 }
 0x5c1   :  { %v1268_v25 = vsel %vm1267_vm10, %v2903_v62, %v1264_v44  ;;  %v1276_v28 = vmul.f32 %v2907_v21, %v1183_v16  ;;  %v2909_v12 = vpop.eup %2908  ;;  %vm1281_vm12 = vweird.f32 %v2907_v21 }
 0x5c2   :  { %v1273_v29 = vsel %vm1270_vm11, %v1272_v45, %v1268_v25  ;;  %vm1282_vm14 = vmor %vm1280_vm13, %vm1281_vm12  ;;  %v2911_v40 = vpop.eup %2910  ;;  %v1313_v25 = vmul.f32 %v3553_v19, %v3447_v58  ;;  %vm1631_vm12 = vcmask 195584   ;;  %vm1645_vm13 = vcmask 293888  }
 0x5c3   :  { %v3594_v26 = vsel %vm3158_vm5, %v2909_v12, %v1273_v29  ;;  %v1277_v56 = vsub.f32 1.0, %v1276_v28 }
 0x5c4   :  { %1339 = vrot.lane.b32.xlu0 %v3594_v26, %s2980_s22 }
 0x5c5   :  { %v1278_v32 = vmul.f32 %v2907_v21, %v1277_v56  ;;  %v1314_v56 = vmul.f32 %v3566_v37, %v3455_v63  ;;  %v1317_v63 = vmul.f32 %v3588_v27, %v3460_v1 }
 0x5c7   :  { %v1279_v4 = vadd.f32 %v2907_v21, %v1278_v32 }
 0x5c9   :  { %v1283_v42 = vsel %vm1282_vm14, %v2907_v21, %v1279_v4  ;;  %v1315_v4 = vmul.f32 %v3574_v31, %v3468_v6  ;;  %v1318_v6 = vmul.f32 %v3594_v26, %v3479_v9 }
 0x5ca   :  { %v1288_v46 = vsel %vm1285_vm15, %v1287_v11, %v1283_v42 }
 0x5cb   :  { %v3600_v18 = vsel %vm3158_vm5, %v2911_v40, %v1288_v46 }
 0x5cc   :  { %1341 = vrot.lane.b32.xlu2 %v3600_v18, %s2980_s22  ;;  %v1319_v1 = vmul.f32 %v3600_v18, %v3484_v0 }
 0x5d6   :  { %v1330_v41 = vpop.permute.xlu1 %1329 }
 0x5d7   :  { %v1353_v39 = vmul.f32 %v1330_v41, %v3553_v19 }
 0x5d9   :  { %1369 = vrot.lane.b32.xlu1 %v1353_v39, %s2981_s23 }
 0x5ed   :  { %v1069_v43 = vpop.f32.mrf.mxu0 }
 0x5ee   :  { %v1135_v48 = vadd.f32 %v1134_v14, %v1069_v43  ;;  %v1316_v43 = vmul.f32 %v3581_v53, %v3466_v5 }
 0x5f0   :  { %v1144_v50 = vadd.f32 %v3423_v7, %v1135_v48 }
 0x5f2   :  { %v1160_v52 = vsub.f32 0.0, %v1144_v50 }
 0x5f4   :  { %v1175_v35 = vmul.f32 1.442695, %v1160_v52 }
 0x5f6   :  { %2912 = vpow2.f32 %v1175_v35  ;;  %v1332_v54 = vpop.permute.xlu2 %1331 }
 0x5f7   :  { %v1354_v55 = vmul.f32 %v1332_v54, %v3566_v37 }
 0x5f9   :  { %1371 = vrot.lane.b32.xlu0 %v1354_v55, %s2981_s23 }
 0x5fc   :  { %v2913_v57 = vpop.eup %2912 }
 0x5fd   :  { %v1184_v59 = vadd.f32 1.0, %v2913_v57 }
 0x5ff   :  { %2914 = vrcp.f32 %v1184_v59  ;;  %v1301_v2 = vand.u32 2147483648, %v1184_v59  ;;  %v1299_v3 = vand.u32 2147483647, %v1184_v59  ;;  %vm1295_vm2 = vweird.f32 %v1184_v59 }
 0x600   :  { %2916 = vtanh.f32 %v1144_v50 }
 0x601   :  { %v1302_v47 = vor.u32 1.1754944e-38, %v1301_v2  ;;  %vm1300_vm4 = vcmp.eq.f32.partialorder %v1299_v3, 8.507059e+37 }
 0x605   :  { %v2915_v24 = vpop.eup %2914 }
 0x606   :  { %v1291_v49 = vmul.f32 %v2915_v24, %v1184_v59  ;;  %vm1296_vm0 = vweird.f32 %v2915_v24  ;;  %v2917_v16 = vpop.eup %2916 }
 0x607   :  { %vm1297_vm3 = vmor %vm1295_vm2, %vm1296_vm0 }
 0x608   :  { %v1292_v61 = vsub.f32 1.0, %v1291_v49 }
 0x60a   :  { %v1293_v20 = vmul.f32 %v2915_v24, %v1292_v61 }
 0x60c   :  { %v1294_v7 = vadd.f32 %v2915_v24, %v1293_v20 }
 0x60e   :  { %v1298_v62 = vsel %vm1297_vm3, %v2915_v24, %v1294_v7  ;;  %vm1726_vm3 = vcmask 1040384  }
 0x60f   :  { %v1303_v34 = vsel %vm1300_vm4, %v1302_v47, %v1298_v62  ;;  %vm1732_vm4 = vcmask 72704  }
 0x610   :  { %v3611_v23 = vsel %vm3158_vm5, %v2917_v16, %v1303_v34 }
 0x611   :  { %1343 = vrot.lane.b32.xlu1 %v3611_v23, %s2980_s22  ;;  %v1320_v0 = vmul.f32 %v3611_v23, %v3493_v22  ;;  %v1450_v22 = vld [vmem:[%s4045_s29 + $0x8] sm:$0xff] }
 0x612   :  { %1509 = vmatpush.msrb.mxu2 %v1450_v22 }
 0x616   :  { %v1338_v13 = vpop.permute.xlu2 %1337 }
 0x617   :  { %v1357_v33 = vmul.f32 %v1338_v13, %v3588_v27 }
 0x618   :  { %v1334_v8 = vpop.permute.xlu0 %1333 }
 0x619   :  { %v1355_v10 = vmul.f32 %v1334_v8, %v3574_v31  ;;  %1377 = vrot.lane.b32.xlu1 %v1357_v33, %s2981_s23 }
 0x61b   :  { %1373 = vrot.lane.b32.xlu2 %v1355_v10, %s2981_s23 }
 0x61f   :  { %v1336_v15 = vpop.permute.xlu1 %1335 }
 0x620   :  { %v1356_v60 = vmul.f32 %v1336_v15, %v3581_v53 }
 0x622   :  { %1375 = vrot.lane.b32.xlu0 %v1356_v60, %s2981_s23 }
 0x626   :  { %v1342_v17 = vpop.permute.xlu2 %1341 }
 0x627   :  { %v1359_v44 = vmul.f32 %v1342_v17, %v3600_v18 }
 0x62a   :  { %1381 = vrot.lane.b32.xlu0 %v1359_v44, %s2981_s23 }
 0x636   :  { %v1340_v21 = vpop.permute.xlu0 %1339 }
 0x637   :  { %v1358_v45 = vmul.f32 %v1340_v21, %v3594_v26 }
 0x639   :  { %1379 = vrot.lane.b32.xlu2 %v1358_v45, %s2981_s23 }
 0x64b   :  { %v1370_v28 = vpop.permute.xlu1 %1369 }
 0x64c   :  { %v1393_v12 = vadd.f32 %v1370_v28, %v1313_v25 }
 0x64e   :  { %2918 = vtanh.f32 %v1393_v12 }
 0x654   :  { %v2919_v29 = vpop.eup %2918 }
 0x655   :  { %1417 = vrot.lane.b32.xlu1 %v2919_v29, %s2982_s24 }
 0x66b   :  { %v1372_v30 = vpop.permute.xlu0 %1371 }
 0x66c   :  { %v1394_v32 = vadd.f32 %v1372_v30, %v1314_v56  ;;  %v2736_v56 = vld [vmem:[%s4009_s7] ss:$0 sm:$0xff] }
 0x66e   :  { %2920 = vtanh.f32 %v1394_v32 }
 0x674   :  { %v2921_v38 = vpop.eup %2920 }
 0x675   :  { %v1374_v11 = vpop.permute.xlu2 %1373  ;;  %1419 = vrot.lane.b32.xlu0 %v2921_v38, %s2982_s24 }
 0x676   :  { %v1395_v58 = vadd.f32 %v1374_v11, %v1315_v4 }
 0x678   :  { %2922 = vtanh.f32 %v1395_v58 }
 0x67e   :  { %v2923_v42 = vpop.eup %2922 }
 0x67f   :  { %1421 = vrot.lane.b32.xlu1 %v2923_v42, %s2982_s24 }
 0x683   :  { %v1344_v40 = vpop.permute.xlu1 %1343 }
 0x684   :  { %v1360_v46 = vmul.f32 %v1344_v40, %v3611_v23 }
 0x686   :  { %1383 = vrot.lane.b32.xlu2 %v1360_v46, %s2981_s23 }
 0x68b   :  { %v1378_v41 = vpop.permute.xlu1 %1377 }
 0x68c   :  { %v1397_v39 = vadd.f32 %v1378_v41, %v1317_v63 }
 0x68e   :  { %2924 = vtanh.f32 %v1397_v39 }
 0x693   :  { %v1380_v14 = vpop.permute.xlu2 %1379 }
 0x694   :  { %v2925_v48 = vpop.eup %2924  ;;  %v1398_v50 = vadd.f32 %v1380_v14, %v1318_v6  ;;  %v1376_v52 = vpop.permute.xlu0 %1375 }
 0x695   :  { %v1396_v35 = vadd.f32 %v1376_v52, %v1316_v43  ;;  %1425 = vrot.lane.b32.xlu0 %v2925_v48, %s2982_s24  ;;  %v2984_v43 = vmov 32.0  }
 0x696   :  { %2926 = vtanh.f32 %v1398_v50 }
 0x697   :  { %2928 = vtanh.f32 %v1396_v35 }
 0x69c   :  { %v2927_v54 = vpop.eup %2926  ;;  %v1382_v55 = vpop.permute.xlu0 %1381 }
 0x69d   :  { %v2929_v57 = vpop.eup %2928  ;;  %v1399_v59 = vadd.f32 %v1382_v55, %v1319_v1  ;;  %1427 = vrot.lane.b32.xlu1 %v2927_v54, %s2982_s24 }
 0x69e   :  { %1423 = vrot.lane.b32.xlu2 %v2929_v57, %s2982_s24 }
 0x69f   :  { %2930 = vtanh.f32 %v1399_v59 }
 0x6a5   :  { %v2931_v5 = vpop.eup %2930 }
 0x6a6   :  { %1429 = vrot.lane.b32.xlu0 %v2931_v5, %s2982_s24 }
 0x6c7   :  { %v1418_v9 = vpop.permute.xlu1 %1417 }
 0x6c8   :  { %v1441_v24 = vmul.f32 %v1418_v9, %v3553_v19 }
 0x6ca   :  { %1463 = vrot.lane.b32.xlu2 %v1441_v24, %s2983_s0 }
 0x6e0   :  { %v1384_v49 = vpop.permute.xlu2 %1383 }
 0x6e1   :  { %v1400_v61 = vadd.f32 %v1384_v49, %v1320_v0 }
 0x6e3   :  { %2932 = vtanh.f32 %v1400_v61 }
 0x6e4   :  { %2934 = vrcp.f32 %v2984_v43 }
 0x6e7   :  { %v1420_v2 = vpop.permute.xlu0 %1419 }
 0x6e8   :  { %v1442_v20 = vmul.f32 %v1420_v2, %v3566_v37  ;;  %v1449_v37 = vld [vmem:[%s4045_s29] sm:$0xff] }
 0x6e9   :  { %v2933_v3 = vpop.eup %2932  ;;  %1510 = vmatpush.msrb.mxu2 %v1449_v37 }
 0x6ea   :  { %1431 = vrot.lane.b32.xlu2 %v2933_v3, %s2982_s24  ;;  %1465 = vrot.lane.b32.xlu1 %v1442_v20, %s2983_s0  ;;  %v2935_v59 = vpop.eup %2934 }
 0x6eb   :  { %v1567_v2 = vmul.f32 32.0, %v2935_v59  ;;  %vm1571_vm6 = vweird.f32 %v2935_v59 }
 0x6f1   :  { %v1422_v7 = vpop.permute.xlu1 %1421 }
 0x6f2   :  { %v1443_v47 = vmul.f32 %v1422_v7, %v3574_v31 }
 0x6f4   :  { %1467 = vrot.lane.b32.xlu0 %v1443_v47, %s2983_s0 }
 0x6f8   :  { %v1424_v19 = vpop.permute.xlu2 %1423 }
 0x6f9   :  { %v1444_v62 = vmul.f32 %v1424_v19, %v3581_v53  ;;  %v1568_v19 = vsub.f32 1.0, %v1567_v2 }
 0x6fb   :  { %1469 = vrot.lane.b32.xlu1 %v1444_v62, %s2983_s0  ;;  %v1569_v37 = vmul.f32 %v2935_v59, %v1568_v19 }
 0x707   :  { %v1426_v16 = vpop.permute.xlu0 %1425 }
 0x708   :  { %v1445_v31 = vmul.f32 %v1426_v16, %v3588_v27 }
 0x70a   :  { %1471 = vrot.lane.b32.xlu2 %v1445_v31, %s2983_s0 }
 0x70f   :  { %v1428_v34 = vpop.permute.xlu1 %1427 }
 0x710   :  { %v1446_v53 = vmul.f32 %v1428_v34, %v3594_v26  ;;  %v1570_v34 = vadd.f32 %v2935_v59, %v1569_v37 }
 0x712   :  { %1473 = vrot.lane.b32.xlu0 %v1446_v53, %s2983_s0 }
 0x718   :  { %v1430_v13 = vpop.permute.xlu0 %1429 }
 0x719   :  { %v1447_v33 = vmul.f32 %v1430_v13, %v3600_v18 }
 0x71b   :  { %1475 = vrot.lane.b32.xlu1 %v1447_v33, %s2983_s0  ;;  %v1572_v33 = vsel %vm1571_vm6, %v2935_v59, %v1570_v34  ;;  %v1636_v59 = vld [vmem:[%s4010_s8] sm:$0xff]  ;;  %vm1857_vm6 = vcmask 261120  }
 0x724   :  { %v1464_v8 = vpop.permute.xlu2 %1463 }
 0x725   :  { %2647 = vmatmul.msk.f32.vlgmr.msrb.gmra.mxu2 %vm85_vm9, %v1464_v8 }
 0x744   :  { %v1432_v10 = vpop.permute.xlu2 %1431 }
 0x745   :  { %v1448_v15 = vmul.f32 %v1432_v10, %v3611_v23 }
 0x747   :  { %1477 = vrot.lane.b32.xlu2 %v1448_v15, %s2983_s0 }
 0x75c   :  { %v1466_v27 = vpop.permute.xlu1 %1465 }
 0x75d   :  { %2648 = vmatmul.msk.f32.gmra.mxu2 %vm85_vm9, %v1466_v27 }
 0x764   :  { %v1472_v18 = vpop.permute.xlu2 %1471 }
 0x766   :  { %v1468_v60 = vpop.permute.xlu0 %1467 }
 0x767   :  { %2649 = vmatmul.msk.f32.gmra.mxu2 %vm85_vm9, %v1468_v60 }
 0x76d   :  { %v1470_v26 = vpop.permute.xlu1 %1469 }
 0x76f   :  { %2650 = vmatmul.msk.f32.gmra.mxu2 %vm85_vm9, %v1470_v26 }
 0x777   :  { %2651 = vmatmul.msk.f32.gmra.mxu2 %vm85_vm9, %v1472_v18 }
 0x784   :  { %v1474_v17 = vpop.permute.xlu0 %1473 }
 0x785   :  { %2652 = vmatmul.msk.f32.gmra.mxu2 %vm85_vm9, %v1474_v17 }
 0x78d   :  { %v1476_v44 = vpop.permute.xlu1 %1475 }
 0x78e   :  { %2653 = vmatmul.msk.f32.gmra.mxu2 %vm85_vm9, %v1476_v44 }
 0x7a1   :  { %v1478_v23 = vpop.permute.xlu2 %1477 }
 0x7a2   :  { %2654 = vmatmul.msk.f32.gmra.mxu2 %vm85_vm9, %v1478_v23 }
 0x7a8   :  { %v1512_v21 = vpop.f32.mrf.mxu2 }
 0x7a9   :  { %v1513_v58 = vadd.f32 %v2736_v56, %v1512_v21 }
 0x7ab   :  { %v1536_v39 = vmax.f32 %v1513_v58, 0.0 }
 0x7e0   :  { %v1515_v45 = vpop.f32.mrf.mxu2 }
 0x7e1   :  { %v1516_v38 = vadd.f32 %v2736_v56, %v1515_v45 }
 0x7e3   :  { %v1537_v46 = vmax.f32 %v1516_v38, 0.0 }
 0x7ea   :  { %v1518_v25 = vpop.f32.mrf.mxu2 }
 0x7eb   :  { %v1519_v42 = vadd.f32 %v2736_v56, %v1518_v25 }
 0x7ed   :  { %v1538_v6 = vmax.f32 %v1519_v42, 0.0  ;;  %v1638_v42 = vld [vmem:[%s4010_s8 + $0x10] sm:$0xff] }
 0x7f2   :  { %v1521_v28 = vpop.f32.mrf.mxu2 }
 0x7f3   :  { %v1522_v52 = vadd.f32 %v2736_v56, %v1521_v28 }
 0x7f5   :  { %v1539_v5 = vmax.f32 %v1522_v52, 0.0 }
 0x7fa   :  { %v1524_v12 = vpop.f32.mrf.mxu2 }
 0x7fb   :  { %v1525_v4 = vadd.f32 %v2736_v56, %v1524_v12 }
 0x7fd   :  { %v1540_v63 = vmax.f32 %v1525_v4, 0.0  ;;  %v1640_v4 = vld [vmem:[%s4010_s8 + $0x20] sm:$0xf] }
 0x7fe   :  { %2655 = vmatpush.msk.msrb.mxu3 %vm1649_vm7, %v1640_v4 }
 0x7ff   :  { %v1544_v48 = vadd.f32 %v1540_v63, %v1536_v39 }
 0x801   :  { %v1548_v54 = vmul.f32 0.5, %v1544_v48 }
 0x803   :  { %v1553_v0 = vsel %vm1552_vm1, %v1548_v54, 0.0 }
 0x808   :  { %v1527_v29 = vpop.f32.mrf.mxu2 }
 0x809   :  { %v1528_v32 = vadd.f32 %v2736_v56, %v1527_v29 }
 0x80b   :  { %v1541_v40 = vmax.f32 %v1528_v32, 0.0 }
 0x80d   :  { %v1545_v14 = vadd.f32 %v1541_v40, %v1537_v46  ;;  %v1637_v46 = vld [vmem:[%s4010_s8 + $0x8] sm:$0xff] }
 0x80f   :  { %v1549_v35 = vmul.f32 0.5, %v1545_v14 }
 0x811   :  { %v1530_v30 = vpop.f32.mrf.mxu2  ;;  %v1554_v9 = vsel %vm1552_vm1, %v1549_v35, 0.0 }
 0x812   :  { %v1531_v11 = vadd.f32 %v2736_v56, %v1530_v30  ;;  %v1555_v20 = vadd.f32 %v1554_v9, %v1553_v0  ;;  %v2737_v0 = vld [vmem:[%s4011_s9] ss:$0 sm:$0xff] }
 0x814   :  { %v1542_v41 = vmax.f32 %v1531_v11, 0.0  ;;  %v1639_v11 = vld [vmem:[%s4010_s8 + $0x18] sm:$0xff]  ;;  %s2986_s8 = smov 48  }
 0x815   :  { %1665 = vmatpush.msrb.mxu3 %v1639_v11  ;;  %v3794_v11 = vld [vmem:[%s4015_s12 + $0x18] sm:$0xff] }
 0x816   :  { %v1546_v50 = vadd.f32 %v1542_v41, %v1538_v6 }
 0x817   :  { %1666 = vmatpush.msrb.mxu3 %v1638_v42  ;;  %v3805_v42 = vld [vmem:[%s4015_s12 + $0x8] sm:$0xff] }
 0x818   :  { %v1550_v55 = vmul.f32 0.5, %v1546_v50 }
 0x819   :  { %1667 = vmatpush.msrb.mxu3 %v1637_v46 }
 0x81a   :  { %v1556_v49 = vsel %vm1552_vm1, %v1550_v55, 0.0 }
 0x81b   :  { %v1557_v7 = vadd.f32 %v1556_v49, %v1555_v20  ;;  %1668 = vmatpush.msrb.mxu3 %v1636_v59 }
 0x825   :  { %v1533_v1 = vpop.f32.mrf.mxu2 }
 0x826   :  { %v1534_v57 = vadd.f32 %v2736_v56, %v1533_v1 }
 0x828   :  { %v1543_v24 = vmax.f32 %v1534_v57, 0.0 }
 0x82a   :  { %v1547_v61 = vadd.f32 %v1543_v24, %v1539_v5  ;;  %v1614_v5 = vld [vmem:[%s4012_s1 + $0x18] sm:$0xff] }
 0x82c   :  { %v1551_v3 = vmul.f32 0.5, %v1547_v61 }
 0x82e   :  { %v1558_v47 = vsel %vm1552_vm1, %v1551_v3, 0.0 }
 0x82f   :  { %v1559_v62 = vadd.f32 %v1558_v47, %v1557_v7 }
 0x831   :  { %v1560_v22 = vrot.slane %v1559_v62, 4 }
 0x833   :  { %v1561_v16 = vadd.f32 %v1560_v22, %v1559_v62 }
 0x835   :  { %v1562_v31 = vrot.slane %v1561_v16, 2 }
 0x837   :  { %v1563_v53 = vadd.f32 %v1562_v31, %v1561_v16 }
 0x839   :  { %v1564_v13 = vrot.slane %v1563_v53, 1 }
 0x83b   :  { %v1565_v8 = vadd.f32 %v1564_v13, %v1563_v53 }
 0x83d   :  { %v1573_v10 = vmul.f32 %v1572_v33, %v1565_v8 }
 0x83f   :  { %v1574_v15 = vsub.f32 %v1548_v54, %v1573_v10  ;;  %v1575_v27 = vsub.f32 %v1549_v35, %v1573_v10  ;;  %v1576_v60 = vsub.f32 %v1550_v55, %v1573_v10  ;;  %v1577_v26 = vsub.f32 %v1551_v3, %v1573_v10 }
 0x841   :  { %v1578_v18 = vmul.f32 %v1574_v15, %v1574_v15  ;;  %v1579_v17 = vmul.f32 %v1575_v27, %v1575_v27  ;;  %v1580_v44 = vmul.f32 %v1576_v60, %v1576_v60  ;;  %v1581_v23 = vmul.f32 %v1577_v26, %v1577_v26 }
 0x843   :  { %v1582_v21 = vsel %vm1552_vm1, %v1578_v18, 0.0  ;;  %v1583_v45 = vsel %vm1552_vm1, %v1579_v17, 0.0  ;;  %v1585_v28 = vsel %vm1552_vm1, %v1580_v44, 0.0  ;;  %v1587_v29 = vsel %vm1552_vm1, %v1581_v23, 0.0  ;;  %v2657_v44 = vld [vmem:[%s4013_s2 + $0x20] sm:$0xff] }
 0x844   :  { %v1584_v25 = vadd.f32 %v1583_v45, %v1582_v21  ;;  %v2658_v21 = vld [vmem:[%s4013_s2 + $0x28] sm:$0xff]  ;;  %v3755_v45 = vld [vmem:[%s4014_s10 + $0x20] sm:$0xf] }
 0x846   :  { %v1586_v12 = vadd.f32 %v1585_v28, %v1584_v25  ;;  %v3761_v25 = vld [vmem:[%s4014_s10 + $0x18] sm:$0xff]  ;;  %v3768_v28 = vld [vmem:[%s4014_s10 + $0x10] sm:$0xff] }
 0x848   :  { %v1588_v56 = vadd.f32 %v1587_v29, %v1586_v12  ;;  %v3774_v12 = vld [vmem:[%s4014_s10 + $0x8] sm:$0xff]  ;;  %v3780_v29 = vld [vmem:[%s4014_s10] sm:$0xff] }
 0x84a   :  { %v1589_v30 = vrot.slane %v1588_v56, 4 }
 0x84c   :  { %v1590_v32 = vadd.f32 %v1589_v30, %v1588_v56  ;;  %v1613_v56 = vld [vmem:[%s4012_s1 + $0x10] sm:$0xff] }
 0x84e   :  { %v1591_v38 = vrot.slane %v1590_v32, 2 }
 0x850   :  { %v1592_v58 = vadd.f32 %v1591_v38, %v1590_v32 }
 0x852   :  { %v1593_v40 = vrot.slane %v1592_v58, 1 }
 0x854   :  { %v1594_v63 = vadd.f32 %v1593_v40, %v1592_v58  ;;  %v3799_v58 = vld [vmem:[%s4015_s12 + $0x10] sm:$0xff] }
 0x856   :  { %v1595_v41 = vmul.f32 %v1594_v63, %v1572_v33  ;;  %v3812_v63 = vld [vmem:[%s4016_s11] sm:$0x1] }
 0x858   :  { %v1596_v39 = vadd.f32 1e-05, %v1595_v41 }
 0x85a   :  { %2936 = vrsqrt.f32 %v1596_v39  ;;  %vm1603_vm10 = vweird.f32 %v1596_v39 }
 0x860   :  { %v2937_v6 = vpop.eup %2936 }
 0x861   :  { %v1598_v14 = vmul.f32 %v2937_v6, %v1596_v39  ;;  %vm1604_vm8 = vweird.f32 %v2937_v6 }
 0x862   :  { %vm1605_vm11 = vmor %vm1603_vm10, %vm1604_vm8  ;;  %vm1896_vm8 = vcmask 392192   ;;  %vm1898_vm10 = vcmask 523264  }
 0x863   :  { %v1599_v43 = vmul.f32 %v2937_v6, %v1598_v14 }
 0x865   :  { %v1600_v48 = vmul.f32 0.5, %v1599_v43 }
 0x867   :  { %v1601_v50 = vsub.f32 1.5, %v1600_v48 }
 0x869   :  { %v1602_v52 = vmul.f32 %v2937_v6, %v1601_v50 }
 0x86b   :  { %v1606_v35 = vsel %vm1605_vm11, %v2937_v6, %v1602_v52  ;;  %v3824_v6 = vld [vmem:[%s4015_s12] sm:$0xff] }
 0x86c   :  { %v1610_v1 = vmul.f32 %v1606_v35, %v1577_v26  ;;  %v1609_v54 = vmul.f32 %v1606_v35, %v1576_v60  ;;  %v3705_v55 = vmul.f32 %v1606_v35, %v1575_v27  ;;  %v3707_v57 = vmul.f32 %v1606_v35, %v1574_v15 }
 0x86e   :  { %1625 = vrot.lane.b32.xlu0 %v1610_v1, %s2985_s4 }
 0x8e0   :  { %v1626_v9 = vpop.permute.xlu0 %1625 }
 0x8e1   :  { %v1635_v24 = vsel %vm1631_vm12, %v1614_v5, %v1626_v9  ;;  %v3835_v5 = vld [vmem:[%s4017_s13] ss:$0 sm:$0xff]  ;;  %s2988_s13 = smov 112  }
 0x8e2   :  { %2656 = vmatmul.msk.f32.vlgmr.msrb.gmra.mxu3 %vm1645_vm13, %v1635_v24 }
 0x965   :  { %v1670_v49 = vpop.f32.mrf.mxu3 }
 0x966   :  { %v1671_v61 = vadd.f32 %v2737_v0, %v1670_v49 }
 0x968   :  { %v1674_v2 = vsub.f32 0.0, %v1671_v61 }
 0x96a   :  { %v1675_v20 = vmul.f32 1.442695, %v1674_v2 }
 0x96c   :  { %2938 = vpow2.f32 %v1675_v20 }
 0x972   :  { %v2939_v3 = vpop.eup %2938 }
 0x973   :  { %v1677_v7 = vadd.f32 1.0, %v2939_v3 }
 0x975   :  { %2940 = vrcp.f32 %v1677_v7  ;;  %v1689_v22 = vand.u32 2147483648, %v1677_v7  ;;  %v1687_v16 = vand.u32 2147483647, %v1677_v7  ;;  %vm1683_vm15 = vweird.f32 %v1677_v7 }
 0x976   :  { %2942 = vtanh.f32 %v1671_v61 }
 0x977   :  { %v1690_v34 = vor.u32 1.1754944e-38, %v1689_v22  ;;  %vm1688_vm2 = vcmp.eq.f32.partialorder %v1687_v16, 8.507059e+37 }
 0x97b   :  { %v2941_v47 = vpop.eup %2940 }
 0x97c   :  { %v1679_v19 = vmul.f32 %v2941_v47, %v1677_v7  ;;  %vm1684_vm14 = vweird.f32 %v2941_v47  ;;  %v2943_v13 = vpop.eup %2942 }
 0x97d   :  { %vm1685_vm0 = vmor %vm1683_vm15, %vm1684_vm14  ;;  %vm1716_vm15 = vcmp.ge.s32.totalorder %v3150_v36, 64 }
 0x97e   :  { %v1680_v62 = vsub.f32 1.0, %v1679_v19 }
 0x980   :  { %v1681_v37 = vmul.f32 %v2941_v47, %v1680_v62 }
 0x982   :  { %v1682_v31 = vadd.f32 %v2941_v47, %v1681_v37 }
 0x984   :  { %v1686_v53 = vsel %vm1685_vm0, %v2941_v47, %v1682_v31 }
 0x985   :  { %v1691_v33 = vsel %vm1688_vm2, %v1690_v34, %v1686_v53 }
 0x986   :  { %v1693_v8 = vsel %vm3158_vm5, %v2943_v13, %v1691_v33  ;;  %vm3728_vm5 = vmneg %vm1726_vm3 }
 0x987   :  { %1695 = vrot.lane.b32.xlu1 %v1693_v8, %s2980_s22 }
 0x98f   :  { %1623 = vrot.lane.b32.xlu1 %v1609_v54, %s2985_s4 }
 0x9f9   :  { %v1696_v10 = vpop.permute.xlu1 %1695 }
 0x9fa   :  { %v1698_v15 = vmul.f32 %v1696_v10, %v1693_v8 }
 0x9fc   :  { %2944 = vtanh.f32 %v1698_v15  ;;  %v1729_v23 = vrot.slane %v1698_v15, 7 }
 0xa01   :  { %v1624_v30 = vpop.permute.xlu1 %1623 }
 0xa02   :  { %v2945_v27 = vpop.eup %2944  ;;  %v1634_v32 = vsel %vm1631_vm12, %v1613_v56, %v1624_v30  ;;  %v2679_v30 = vld [vmem:[%s4013_s2 + $0x18] sm:$0xff] }
 0xa03   :  { %1701 = vrot.lane.b32.xlu2 %v2945_v27, %s2986_s8 }
 0xa5d   :  { %v1702_v60 = vpop.permute.xlu2 %1701 }
 0xa5e   :  { %v1704_v26 = vmul.f32 %v1702_v60, %v1693_v8 }
 0xa60   :  { %v1722_v18 = vrot.slane %v1704_v26, 7 }
 0xa62   :  { %1723 = vrot.lane.b32.xlu0 %v1722_v18, %s2983_s0 }
 0xad4   :  { %v1724_v17 = vpop.permute.xlu0 %1723 }
 0xad5   :  { %2659 = vmatpush.msk.msra.mxu3 %vm1726_vm3, %v1724_v17 }
 0xad7   :  { %2661 = vmatpush.msk.msra.mxu3 %vm3728_vm5, %v1724_v17 }
 0xad8   :  { %2662 = vmatmul.msk.f32.vlgmr.msra.gmra.mxu3 %vm1732_vm4, %v2657_v44 }
 0xad9   :  { %2663 = vmatpush.msk.msrb.mxu3 %vm1726_vm3, %v1724_v17 }
 0xadb   :  { %2665 = vmatpush.msk.msrb.mxu3 %vm3728_vm5, %v1724_v17 }
 0xadd   :  { %2667 = vmatpush.msk.msra.mxu3 %vm1726_vm3, %v1729_v23 }
 0xadf   :  { %2669 = vmatpush.msk.msra.mxu3 %vm3728_vm5, %v1729_v23 }
 0xae0   :  { %2666 = vmatmul.msk.f32.vlgmr.msrb.gmra.mxu3 %vm1732_vm4, %v2658_v21 }
 0xae1   :  { %2671 = vmatpush.msk.msrb.mxu3 %vm1726_vm3, %v1729_v23 }
 0xae3   :  { %2673 = vmatpush.msk.msrb.mxu3 %vm3728_vm5, %v1729_v23 }
 0xae8   :  { %2670 = vmatmul.msk.f32.vlgmr.msra.gmra.mxu3 %vm1732_vm4, %v2657_v44 }
 0xae9   :  { %2675 = vmatpush.msk.msra.mxu3 %vm1649_vm7, %v3755_v45 }
 0xaeb   :  { %1841 = vmatpush.msra.mxu3 %v3761_v25 }
 0xaed   :  { %1842 = vmatpush.msra.mxu3 %v3768_v28 }
 0xaef   :  { %1843 = vmatpush.msra.mxu3 %v3774_v12 }
 0xaf0   :  { %2674 = vmatmul.msk.f32.vlgmr.msrb.gmra.mxu3 %vm1732_vm4, %v2658_v21 }
 0xaf1   :  { %1844 = vmatpush.msra.mxu3 %v3780_v29 }
 0xaf3   :  { %1873 = vmatpush.msrb.mxu3 %v3794_v11 }
 0xaf5   :  { %1874 = vmatpush.msrb.mxu3 %v3799_v58 }
 0xaf7   :  { %1875 = vmatpush.msrb.mxu3 %v3805_v42 }
 0xaf8   :  { %2676 = vmatmul.msk.f32.vlgmr.msra.gmra.mxu3 %vm1645_vm13, %v1634_v32 }
 0xaf9   :  { %1876 = vmatpush.msrb.mxu3 %v3824_v6 }
 0xb5b   :  { %v1755_v38 = vpop.f32.mrf.mxu3 }
 0xb63   :  { %v1778_v4 = vpop.f32.mrf.mxu3 }
 0xb64   :  { %1850 = vrot.lane.b32.xlu2 %v1778_v4, %s2981_s23 }
 0xb6b   :  { %v1800_v40 = vpop.f32.mrf.mxu3 }
 0xb73   :  { %v1820_v46 = vpop.f32.mrf.mxu3 }
 0xb7b   :  { %v1846_v41 = vpop.f32.mrf.mxu3 }
 0xb7c   :  { %v1847_v39 = vadd.f32 %v1846_v41, %v3812_v63 }
 0xb7e   :  { %1888 = vrot.lane.b32.xlu2 %v1847_v39, %s2986_s8  ;;  %1885 = vrot.lane.b32.xlu1 %v1847_v39, %s2982_s24 }
 0xb7f   :  { %1882 = vrot.lane.b32.xlu0 %v1847_v39, %s2981_s23 }
 0xb86   :  { %1929 = vrot.lane.b32.xlu1 %v1800_v40, %s2981_s23  ;;  %1939 = vrot.lane.b32.xlu2 %v1820_v46, %s2982_s24 }
 0xb87   :  { %1891 = vrot.lane.b32.xlu0 %v1847_v39, %s2987_s26 }
 0xbbe   :  { %v1851_v14 = vpop.permute.xlu2 %1850 }
 0xbbf   :  { %v1853_v43 = vsel %vm85_vm9, %v1755_v38, %v1851_v14  ;;  %v1612_v38 = vld [vmem:[%s4012_s1 + $0x8] sm:$0xff] }
 0xbc0   :  { %2677 = vmatmul.msk.f32.vlgmr.msrb.gmra.mxu3 %vm1857_vm6, %v1853_v43 }
 0xbd8   :  { %v1889_v54 = vpop.permute.xlu2 %1888 }
 0xbe0   :  { %v1940_v8 = vpop.permute.xlu2 %1939 }
 0xbf0   :  { %v1886_v50 = vpop.permute.xlu1 %1885 }
 0xbf1   :  { %v1883_v48 = vpop.permute.xlu0 %1882 }
 0xbf2   :  { %v1894_v52 = vsel %vm85_vm9, %v1847_v39, %v1883_v48 }
 0xbf3   :  { %v1895_v35 = vsel %vm1857_vm6, %v1894_v52, %v1886_v50 }
 0xbf4   :  { %v1897_v59 = vsel %vm1896_vm8, %v1895_v35, %v1889_v54 }
 0xbf8   :  { %v1930_v10 = vpop.permute.xlu1 %1929 }
 0xbf9   :  { %v1892_v1 = vpop.permute.xlu0 %1891 }
 0xbfa   :  { %v1899_v9 = vsel %vm1898_vm10, %v1897_v59, %v1892_v1 }
 0xbfb   :  { %v1900_v0 = vperm.slane %v1899_v9, 0 }
 0xc43   :  { %v1878_v24 = vpop.f32.mrf.mxu3 }
 0xc44   :  { %v1879_v49 = vadd.f32 %v3835_v5, %v1878_v24 }
 0xc46   :  { %v1901_v61 = vadd.f32 %v1900_v0, %v1879_v49 }
 0xc48   :  { %v1903_v2 = vsub.f32 0.0, %v1901_v61 }
 0xc4a   :  { %v1904_v20 = vmul.f32 1.442695, %v1903_v2 }
 0xc4c   :  { %2946 = vpow2.f32 %v1904_v20 }
 0xc52   :  { %v2947_v3 = vpop.eup %2946 }
 0xc53   :  { %v1906_v7 = vadd.f32 1.0, %v2947_v3 }
 0xc55   :  { %2948 = vrcp.f32 %v1906_v7  ;;  %v1918_v22 = vand.u32 2147483648, %v1906_v7  ;;  %v1916_v16 = vand.u32 2147483647, %v1906_v7  ;;  %vm1912_vm14 = vweird.f32 %v1906_v7 }
 0xc56   :  { %2950 = vtanh.f32 %v1901_v61 }
 0xc57   :  { %v1919_v34 = vor.u32 1.1754944e-38, %v1918_v22  ;;  %vm1917_vm2 = vcmp.eq.f32.partialorder %v1916_v16, 8.507059e+37 }
 0xc5b   :  { %v2949_v47 = vpop.eup %2948 }
 0xc5c   :  { %v1908_v19 = vmul.f32 %v2949_v47, %v1906_v7  ;;  %vm1913_vm11 = vweird.f32 %v2949_v47  ;;  %v2951_v13 = vpop.eup %2950 }
 0xc5d   :  { %vm1914_vm0 = vmor %vm1912_vm14, %vm1913_vm11 }
 0xc5e   :  { %v1909_v62 = vsub.f32 1.0, %v1908_v19 }
 0xc60   :  { %v1910_v37 = vmul.f32 %v2949_v47, %v1909_v62 }
 0xc62   :  { %v1911_v31 = vadd.f32 %v2949_v47, %v1910_v37 }
 0xc64   :  { %v1915_v53 = vsel %vm1914_vm0, %v2949_v47, %v1911_v31 }
 0xc65   :  { %v1920_v33 = vsel %vm1917_vm2, %v1919_v34, %v1915_v53 }
 0xc66   :  { %v1922_v15 = vsel %vm1716_vm15, %v2951_v13, %v1920_v33 }
 0xc67   :  { %1924 = vrot.lane.b32.xlu0 %v1922_v15, %s2987_s26  ;;  %v1942_v27 = vmul.f32 %v1940_v8, %v1922_v15  ;;  %v1932_v60 = vmul.f32 %v1930_v10, %v1922_v15 }
 0xc69   :  { %1944 = vrot.lane.b32.xlu2 %v1942_v27, %s2980_s22  ;;  %1934 = vrot.lane.b32.xlu1 %v1932_v60, %s2988_s13 }
 0xc71   :  { %1621 = vrot.lane.b32.xlu1 %v3705_v55, %s2985_s4  ;;  %v2678_v55 = vld [vmem:[%s4013_s2 + $0x10] sm:$0xff] }
 0xcc3   :  { %v1945_v23 = vpop.permute.xlu2 %1944 }
 0xcd9   :  { %v1925_v26 = vpop.permute.xlu0 %1924 }
 0xcda   :  { %v1927_v18 = vmul.f32 %v1925_v26, %v1922_v15 }
 0xcdb   :  { %v1935_v17 = vpop.permute.xlu1 %1934 }
 0xcdc   :  { %v1937_v44 = vadd.f32 %v1935_v17, %v1927_v18 }
 0xcde   :  { %v1947_v21 = vadd.f32 %v1945_v23, %v1937_v44 }
 0xce0   :  { %2952 = vtanh.f32 %v1947_v21  ;;  %v1959_v56 = vrot.slane %v1947_v21, 7 }
 0xce2   :  { %2680 = vmatpush.msk.msra.mxu3 %vm1726_vm3, %v1959_v56  ;;  %2684 = vmatpush.msk.msra.mxu0 %vm1726_vm3, %v1959_v56 }
 0xce3   :  { %v1622_v4 = vpop.permute.xlu1 %1621 }
 0xce4   :  { %2682 = vmatpush.msk.msra.mxu3 %vm3728_vm5, %v1959_v56  ;;  %2686 = vmatpush.msk.msra.mxu0 %vm3728_vm5, %v1959_v56  ;;  %v1633_v40 = vsel %vm1631_vm12, %v1612_v38, %v1622_v4 }
 0xce5   :  { %2687 = vmatmul.msk.f32.vlgmr.msra.gmra.mxu0 %vm1732_vm4, %v2679_v30  ;;  %2683 = vmatmul.msk.f32.vlgmr.msra.gmra.mxu3 %vm1732_vm4, %v2678_v55 }
 0xce6   :  { %2696 = vmatpush.msk.msrb.mxu3 %vm1649_vm7, %v3755_v45  ;;  %v2953_v32 = vpop.eup %2952  ;;  %2101 = vmatpush.msrb.mxu0 %v3794_v11 }
 0xce7   :  { %1950 = vrot.lane.b32.xlu0 %v2953_v32, %s2986_s8 }
 0xce8   :  { %2073 = vmatpush.msrb.mxu3 %v3761_v25  ;;  %2102 = vmatpush.msrb.mxu0 %v3799_v58 }
 0xcea   :  { %2074 = vmatpush.msrb.mxu3 %v3768_v28  ;;  %2103 = vmatpush.msrb.mxu0 %v3805_v42 }
 0xcec   :  { %2075 = vmatpush.msrb.mxu3 %v3774_v12  ;;  %2104 = vmatpush.msrb.mxu0 %v3824_v6 }
 0xcee   :  { %2076 = vmatpush.msrb.mxu3 %v3780_v29 }
 0xcef   :  { %2697 = vmatmul.msk.f32.vlgmr.msrb.gmra.mxu3 %vm1645_vm13, %v1633_v40 }
 0xd59   :  { %v1951_v46 = vpop.permute.xlu0 %1950 }
 0xd5a   :  { %v1953_v41 = vmul.f32 %v1951_v46, %v1922_v15 }
 0xd5c   :  { %v1963_v39 = vrot.slane %v1953_v41, 7  ;;  %v2180_v41 = vld [vmem:[%s4013_s2] sm:$0xff] }
 0xd5e   :  { %1964 = vrot.lane.b32.xlu2 %v1963_v39, %s2983_s0 }
 0xd62   :  { %v2013_v14 = vpop.f32.mrf.mxu0 }
 0xd63   :  { %2082 = vrot.lane.b32.xlu0 %v2013_v14, %s2981_s23  ;;  %v1611_v14 = vld [vmem:[%s4012_s1] sm:$0xff] }
 0xd68   :  { %v1990_v43 = vpop.f32.mrf.mxu3 }
 0xd72   :  { %v2078_v48 = vpop.f32.mrf.mxu3 }
 0xd73   :  { %v2079_v50 = vadd.f32 %v2078_v48, %v3812_v63 }
 0xd75   :  { %2116 = vrot.lane.b32.xlu0 %v2079_v50, %s2986_s8  ;;  %2113 = vrot.lane.b32.xlu2 %v2079_v50, %s2982_s24 }
 0xd76   :  { %2110 = vrot.lane.b32.xlu1 %v2079_v50, %s2981_s23 }
 0xd7e   :  { %2119 = vrot.lane.b32.xlu1 %v2079_v50, %s2987_s26 }
 0xdb8   :  { %v1965_v52 = vpop.permute.xlu2 %1964 }
 0xdb9   :  { %2688 = vmatpush.msk.msra.mxu1 %vm1726_vm3, %v1965_v52  ;;  %2692 = vmatpush.msk.msra.mxu2 %vm1726_vm3, %v1965_v52 }
 0xdbb   :  { %2690 = vmatpush.msk.msra.mxu1 %vm3728_vm5, %v1965_v52  ;;  %2694 = vmatpush.msk.msra.mxu2 %vm3728_vm5, %v1965_v52 }
 0xdbc   :  { %2691 = vmatmul.msk.f32.vlgmr.msra.gmra.mxu1 %vm1732_vm4, %v2678_v55  ;;  %2695 = vmatmul.msk.f32.vlgmr.msra.gmra.mxu2 %vm1732_vm4, %v2679_v30 }
 0xdcf   :  { %v2114_v0 = vpop.permute.xlu2 %2113 }
 0xdd5   :  { %v2083_v35 = vpop.permute.xlu0 %2082 }
 0xdd6   :  { %v2085_v1 = vsel %vm85_vm9, %v1990_v43, %v2083_v35 }
 0xdd7   :  { %2698 = vmatmul.msk.f32.vlgmr.msrb.gmra.mxu0 %vm1857_vm6, %v2085_v1 }
 0xde7   :  { %v2117_v2 = vpop.permute.xlu0 %2116 }
 0xde8   :  { %v2111_v9 = vpop.permute.xlu1 %2110 }
 0xde9   :  { %v2122_v24 = vsel %vm85_vm9, %v2079_v50, %v2111_v9 }
 0xdea   :  { %v2123_v49 = vsel %vm1857_vm6, %v2122_v24, %v2114_v0 }
 0xdeb   :  { %v2124_v20 = vsel %vm1896_vm8, %v2123_v49, %v2117_v2 }
 0xdf0   :  { %v2120_v61 = vpop.permute.xlu1 %2119 }
 0xdf1   :  { %v2125_v3 = vsel %vm1898_vm10, %v2124_v20, %v2120_v61 }
 0xdf2   :  { %v2126_v47 = vperm.slane %v2125_v3, 0 }
 0xe39   :  { %v2035_v54 = vpop.f32.mrf.mxu1 }
 0xe3a   :  { %2155 = vrot.lane.b32.xlu2 %v2035_v54, %s2981_s23 }
 0xe3f   :  { %v2055_v59 = vpop.f32.mrf.mxu2 }
 0xe40   :  { %2165 = vrot.lane.b32.xlu0 %v2055_v59, %s2982_s24 }
 0xe54   :  { %v2106_v7 = vpop.f32.mrf.mxu0 }
 0xe55   :  { %v2107_v19 = vadd.f32 %v3835_v5, %v2106_v7 }
 0xe57   :  { %v2127_v62 = vadd.f32 %v2126_v47, %v2107_v19 }
 0xe59   :  { %v2129_v22 = vsub.f32 0.0, %v2127_v62 }
 0xe5b   :  { %v2130_v37 = vmul.f32 1.442695, %v2129_v22 }
 0xe5d   :  { %2954 = vpow2.f32 %v2130_v37 }
 0xe63   :  { %v2955_v16 = vpop.eup %2954 }
 0xe64   :  { %v2132_v31 = vadd.f32 1.0, %v2955_v16 }
 0xe66   :  { %2956 = vrcp.f32 %v2132_v31  ;;  %v2144_v33 = vand.u32 2147483648, %v2132_v31  ;;  %v2142_v10 = vand.u32 2147483647, %v2132_v31  ;;  %vm2138_vm14 = vweird.f32 %v2132_v31 }
 0xe67   :  { %2958 = vtanh.f32 %v2127_v62 }
 0xe68   :  { %v2145_v27 = vor.u32 1.1754944e-38, %v2144_v33  ;;  %vm2143_vm2 = vcmp.eq.f32.partialorder %v2142_v10, 8.507059e+37 }
 0xe6c   :  { %v2957_v34 = vpop.eup %2956 }
 0xe6d   :  { %v2134_v53 = vmul.f32 %v2957_v34, %v2132_v31  ;;  %vm2139_vm11 = vweird.f32 %v2957_v34  ;;  %v2959_v26 = vpop.eup %2958 }
 0xe6e   :  { %vm2140_vm0 = vmor %vm2138_vm14, %vm2139_vm11  ;;  %vm2467_vm11 = vcmask 94208  }
 0xe6f   :  { %v2135_v13 = vsub.f32 1.0, %v2134_v53 }
 0xe71   :  { %v2136_v8 = vmul.f32 %v2957_v34, %v2135_v13 }
 0xe73   :  { %v2137_v15 = vadd.f32 %v2957_v34, %v2136_v8 }
 0xe75   :  { %v2141_v60 = vsel %vm2140_vm0, %v2957_v34, %v2137_v15 }
 0xe76   :  { %v2146_v18 = vsel %vm2143_vm2, %v2145_v27, %v2141_v60 }
 0xe77   :  { %v2148_v17 = vsel %vm1716_vm15, %v2959_v26, %v2146_v18  ;;  %v2989_v18 = vmov 5.0  }
 0xe78   :  { %2150 = vrot.lane.b32.xlu1 %v2148_v17, %s2987_s26 }
 0xe94   :  { %v2156_v44 = vpop.permute.xlu2 %2155 }
 0xe95   :  { %v2158_v23 = vmul.f32 %v2156_v44, %v2148_v17 }
 0xe97   :  { %2160 = vrot.lane.b32.xlu2 %v2158_v23, %s2988_s13 }
 0xe9f   :  { %1619 = vrot.lane.b32.xlu2 %v3707_v57, %s2985_s4  ;;  %v2699_v57 = vld [vmem:[%s4013_s2 + $0x8] sm:$0xff] }
 0xeb2   :  { %v2166_v21 = vpop.permute.xlu0 %2165 }
 0xeb3   :  { %v2168_v56 = vmul.f32 %v2166_v21, %v2148_v17 }
 0xeb5   :  { %2170 = vrot.lane.b32.xlu0 %v2168_v56, %s2980_s22 }
 0xeea   :  { %v2151_v30 = vpop.permute.xlu1 %2150 }
 0xeeb   :  { %v2153_v32 = vmul.f32 %v2151_v30, %v2148_v17 }
 0xef1   :  { %v2161_v55 = vpop.permute.xlu2 %2160 }
 0xef2   :  { %v2163_v38 = vadd.f32 %v2161_v55, %v2153_v32 }
 0xef9   :  { %v1620_v43 = vpop.permute.xlu2 %1619 }
 0xf27   :  { %v2171_v4 = vpop.permute.xlu0 %2170 }
 0xf28   :  { %v2173_v40 = vadd.f32 %v2171_v4, %v2163_v38 }
 0xf2a   :  { %2960 = vtanh.f32 %v2173_v40  ;;  %v2184_v46 = vrot.slane %v2173_v40, 7 }
 0xf2c   :  { %2700 = vmatpush.msk.msrb.mxu1 %vm1726_vm3, %v2184_v46  ;;  %2704 = vmatpush.msk.msrb.mxu2 %vm1726_vm3, %v2184_v46 }
 0xf2e   :  { %2702 = vmatpush.msk.msrb.mxu1 %vm3728_vm5, %v2184_v46  ;;  %2706 = vmatpush.msk.msrb.mxu2 %vm3728_vm5, %v2184_v46 }
 0xf2f   :  { %2707 = vmatmul.msk.f32.vlgmr.msrb.gmra.mxu2 %vm1732_vm4, %v2699_v57  ;;  %2703 = vmatmul.msk.f32.vlgmr.msrb.gmra.mxu1 %vm1732_vm4, %v2180_v41 }
 0xf30   :  { %2716 = vmatpush.msk.msra.mxu1 %vm1649_vm7, %v3755_v45  ;;  %v2961_v39 = vpop.eup %2960  ;;  %2326 = vmatpush.msra.mxu2 %v3794_v11  ;;  %v1632_v45 = vsel %vm1631_vm12, %v1611_v14, %v1620_v43 }
 0xf31   :  { %2176 = vrot.lane.b32.xlu1 %v2961_v39, %s2986_s8 }
 0xf32   :  { %2298 = vmatpush.msra.mxu1 %v3761_v25  ;;  %2327 = vmatpush.msra.mxu2 %v3799_v58 }
 0xf34   :  { %2299 = vmatpush.msra.mxu1 %v3768_v28  ;;  %2328 = vmatpush.msra.mxu2 %v3805_v42 }
 0xf36   :  { %2300 = vmatpush.msra.mxu1 %v3774_v12  ;;  %2329 = vmatpush.msra.mxu2 %v3824_v6 }
 0xf38   :  { %2301 = vmatpush.msra.mxu1 %v3780_v29 }
 0xf39   :  { %2717 = vmatmul.msk.f32.vlgmr.msra.gmra.mxu1 %vm1645_vm13, %v1632_v45 }
 0xfa3   :  { %v2177_v25 = vpop.permute.xlu1 %2176 }
 0xfa4   :  { %v2179_v11 = vmul.f32 %v2177_v25, %v2148_v17 }
 0xfa6   :  { %v2188_v28 = vrot.slane %v2179_v11, 7 }
 0xfa8   :  { %2189 = vrot.lane.b32.xlu0 %v2188_v28, %s2983_s0 }
 0xfac   :  { %v2215_v58 = vpop.f32.mrf.mxu1 }
 0xfb2   :  { %v2238_v48 = vpop.f32.mrf.mxu2 }
 0xfb3   :  { %2307 = vrot.lane.b32.xlu1 %v2238_v48, %s2981_s23 }
 0xfb6   :  { %v2303_v42 = vpop.f32.mrf.mxu1 }
 0xfb7   :  { %v2304_v12 = vadd.f32 %v2303_v42, %v3812_v63 }
 0xfb9   :  { %2338 = vrot.lane.b32.xlu0 %v2304_v12, %s2982_s24  ;;  %2335 = vrot.lane.b32.xlu2 %v2304_v12, %s2981_s23 }
 0xfbb   :  { %2341 = vrot.lane.b32.xlu1 %v2304_v12, %s2986_s8 }
 0xfc1   :  { %2344 = vrot.lane.b32.xlu2 %v2304_v12, %s2987_s26 }
0x1013   :  { %v2336_v52 = vpop.permute.xlu2 %2335 }
0x1014   :  { %v2347_v51 = vsel %vm85_vm9, %v2304_v12, %v2336_v52  ;;  %v2438_v12 = vld [vmem:[%s4019_s14 + $0x8] sm:$0xff] }
0x101a   :  { %v2190_v29 = vpop.permute.xlu0 %2189 }
0x101b   :  { %2708 = vmatpush.msk.msra.mxu3 %vm1726_vm3, %v2190_v29  ;;  %2712 = vmatpush.msk.msra.mxu0 %vm1726_vm3, %v2190_v29  ;;  %v2345_v24 = vpop.permute.xlu2 %2344 }
0x101d   :  { %2710 = vmatpush.msk.msra.mxu3 %vm3728_vm5, %v2190_v29  ;;  %2714 = vmatpush.msk.msra.mxu0 %vm3728_vm5, %v2190_v29  ;;  %v2437_v29 = vld [vmem:[%s4019_s14] sm:$0xff] }
0x101e   :  { %2711 = vmatmul.msk.f32.vlgmr.msra.gmra.mxu3 %vm1732_vm4, %v2180_v41  ;;  %2715 = vmatmul.msk.f32.vlgmr.msra.gmra.mxu0 %vm1732_vm4, %v2699_v57  ;;  %vm2399_vm4 = vcmask 126976  }
0x101f   :  { %2460 = vmatpush.msrb.mxu3 %v2438_v12 }
0x1021   :  { %2461 = vmatpush.msrb.mxu3 %v2437_v29 }
0x1025   :  { %v2308_v63 = vpop.permute.xlu1 %2307 }
0x1026   :  { %v2310_v6 = vsel %vm85_vm9, %v2215_v58, %v2308_v63 }
0x1027   :  { %2718 = vmatmul.msk.f32.vlgmr.msra.gmra.mxu2 %vm1857_vm6, %v2310_v6 }
0x102b   :  { %v2339_v35 = vpop.permute.xlu0 %2338 }
0x102c   :  { %v2348_v59 = vsel %vm1857_vm6, %v2347_v51, %v2339_v35 }
0x102d   :  { %v2342_v54 = vpop.permute.xlu1 %2341 }
0x102e   :  { %v2349_v9 = vsel %vm1896_vm8, %v2348_v59, %v2342_v54 }
0x102f   :  { %v2350_v0 = vsel %vm1898_vm10, %v2349_v9, %v2345_v24 }
0x1030   :  { %v2351_v61 = vperm.slane %v2350_v0, 0 }
0x109b   :  { %v2280_v50 = vpop.f32.mrf.mxu0 }
0x109c   :  { %2390 = vrot.lane.b32.xlu1 %v2280_v50, %s2982_s24 }
0x10a1   :  { %v2260_v1 = vpop.f32.mrf.mxu3 }
0x10a2   :  { %2380 = vrot.lane.b32.xlu0 %v2260_v1, %s2981_s23 }
0x10aa   :  { %v2331_v49 = vpop.f32.mrf.mxu2 }
0x10ab   :  { %v2332_v2 = vadd.f32 %v3835_v5, %v2331_v49 }
0x10ad   :  { %v2352_v20 = vadd.f32 %v2351_v61, %v2332_v2  ;;  %v2739_v2 = vld [vmem:[%s4018_s15] ss:$0 sm:$0xff] }
0x10af   :  { %v2354_v3 = vsub.f32 0.0, %v2352_v20 }
0x10b1   :  { %v2355_v7 = vmul.f32 1.442695, %v2354_v3 }
0x10b3   :  { %2962 = vpow2.f32 %v2355_v7 }
0x10b9   :  { %v2963_v47 = vpop.eup %2962 }
0x10ba   :  { %v2357_v19 = vadd.f32 1.0, %v2963_v47 }
0x10bc   :  { %2964 = vrcp.f32 %v2357_v19  ;;  %v2369_v16 = vand.u32 2147483648, %v2357_v19  ;;  %v2367_v34 = vand.u32 2147483647, %v2357_v19  ;;  %vm2363_vm13 = vweird.f32 %v2357_v19 }
0x10bd   :  { %2966 = vtanh.f32 %v2352_v20 }
0x10be   :  { %v2370_v13 = vor.u32 1.1754944e-38, %v2369_v16  ;;  %vm2368_vm5 = vcmp.eq.f32.partialorder %v2367_v34, 8.507059e+37  ;;  %2968 = vrcp.f32 %v2989_v18 }
0x10c2   :  { %v2965_v62 = vpop.eup %2964 }
0x10c3   :  { %v2359_v22 = vmul.f32 %v2965_v62, %v2357_v19  ;;  %vm2364_vm12 = vweird.f32 %v2965_v62  ;;  %v2967_v33 = vpop.eup %2966 }
0x10c4   :  { %vm2365_vm3 = vmor %vm2363_vm13, %vm2364_vm12  ;;  %v2969_v17 = vpop.eup %2968 }
0x10c5   :  { %v2360_v37 = vsub.f32 1.0, %v2359_v22  ;;  %v2408_v21 = vmul.f32 5.0, %v2969_v17  ;;  %vm2412_vm6 = vweird.f32 %v2969_v17 }
0x10c7   :  { %v2361_v31 = vmul.f32 %v2965_v62, %v2360_v37  ;;  %v2409_v55 = vsub.f32 1.0, %v2408_v21 }
0x10c9   :  { %v2362_v53 = vadd.f32 %v2965_v62, %v2361_v31  ;;  %v2410_v40 = vmul.f32 %v2969_v17, %v2409_v55 }
0x10cb   :  { %v2366_v5 = vsel %vm2365_vm3, %v2965_v62, %v2362_v53  ;;  %v2411_v41 = vadd.f32 %v2969_v17, %v2410_v40  ;;  %v2531_v40 = vld [vmem:[%s4022_s18] sm:$0xff] }
0x10cc   :  { %v2371_v8 = vsel %vm2368_vm5, %v2370_v13, %v2366_v5 }
0x10cd   :  { %v2373_v10 = vsel %vm1716_vm15, %v2967_v33, %v2371_v8  ;;  %v2413_v43 = vsel %vm2412_vm6, %v2969_v17, %v2411_v41 }
0x10ce   :  { %2375 = vrot.lane.b32.xlu2 %v2373_v10, %s2987_s26 }
0x110e   :  { %v2391_v15 = vpop.permute.xlu1 %2390 }
0x110f   :  { %v2393_v27 = vmul.f32 %v2391_v15, %v2373_v10  ;;  %v2498_v15 = vld [vmem:[%s4021_s16] sm:$0xff] }
0x1111   :  { %2395 = vrot.lane.b32.xlu1 %v2393_v27, %s2980_s22 }
0x1114   :  { %v2381_v60 = vpop.permute.xlu0 %2380 }
0x1115   :  { %v2383_v26 = vmul.f32 %v2381_v60, %v2373_v10 }
0x1117   :  { %2385 = vrot.lane.b32.xlu0 %v2383_v26, %s2988_s13 }
0x1128   :  { %v2376_v44 = vpop.permute.xlu2 %2375 }
0x1129   :  { %v2378_v23 = vmul.f32 %v2376_v44, %v2373_v10  ;;  %v2499_v10 = vld [vmem:[%s4021_s16 + $0x8] sm:$0xf] }
0x112a   :  { %2720 = vmatpush.msk.msrb.mxu0 %vm1649_vm7, %v2499_v10 }
0x112c   :  { %2525 = vmatpush.msrb.mxu0 %v2498_v15 }
0x1183   :  { %v2396_v36 = vpop.permute.xlu1 %2395 }
0x1189   :  { %v2386_v56 = vpop.permute.xlu0 %2385 }
0x118a   :  { %v2388_v30 = vadd.f32 %v2386_v56, %v2378_v23 }
0x118c   :  { %v2398_v32 = vadd.f32 %v2396_v36, %v2388_v30 }
0x118e   :  { %v2400_v38 = vsel %vm2399_vm4, %v2398_v32, 0.0 }
0x118f   :  { %v2401_v4 = vrot.slane %v2400_v38, 4 }
0x1191   :  { %v2402_v46 = vadd.f32 %v2401_v4, %v2400_v38  ;;  %v2532_v4 = vld [vmem:[%s4022_s18 + $0x8] sm:$0xf] }
0x1192   :  { %2722 = vmatpush.msk.msrb.mxu2 %vm1649_vm7, %v2532_v4 }
0x1193   :  { %v2403_v57 = vrot.slane %v2402_v46, 2 }
0x1194   :  { %2558 = vmatpush.msrb.mxu2 %v2531_v40 }
0x1195   :  { %v2404_v39 = vadd.f32 %v2403_v57, %v2402_v46  ;;  %v25_v46 = vstv %s4023_s19  ;;  %v2740_v57 = vld [vmem:[%s4020_s17] ss:$0 sm:$0xff] }
0x1196   :  { %26 = vst [vmem:[#allocation2] sm:$0x1] %v25_v46 }
0x1197   :  { %v2405_v14 = vrot.slane %v2404_v39, 1 }
0x1199   :  { %v2406_v45 = vadd.f32 %v2405_v14, %v2404_v39 }
0x119b   :  { %v2414_v25 = vmul.f32 %v2413_v43, %v2406_v45 }
0x119d   :  { %v2415_v11 = vsub.f32 %v2398_v32, %v2414_v25 }
0x119f   :  { %v2416_v28 = vmul.f32 %v2415_v11, %v2415_v11 }
0x11a1   :  { %v2417_v58 = vsel %vm2399_vm4, %v2416_v28, 0.0 }
0x11a2   :  { %v2418_v48 = vrot.slane %v2417_v58, 4 }
0x11a4   :  { %v2419_v42 = vadd.f32 %v2418_v48, %v2417_v58 }
0x11a6   :  { %v2420_v63 = vrot.slane %v2419_v42, 2 }
0x11a8   :  { %v2421_v6 = vadd.f32 %v2420_v63, %v2419_v42 }
0x11aa   :  { %v2422_v50 = vrot.slane %v2421_v6, 1 }
0x11ac   :  { %v2423_v52 = vadd.f32 %v2422_v50, %v2421_v6 }
0x11ae   :  { %v2424_v35 = vmul.f32 %v2423_v52, %v2413_v43 }
0x11b0   :  { %v2425_v1 = vadd.f32 1e-05, %v2424_v35 }
0x11b2   :  { %2970 = vrsqrt.f32 %v2425_v1  ;;  %vm2432_vm10 = vweird.f32 %v2425_v1 }
0x11b8   :  { %v2971_v54 = vpop.eup %2970 }
0x11b9   :  { %v2427_v51 = vmul.f32 %v2971_v54, %v2425_v1  ;;  %vm2433_vm8 = vweird.f32 %v2971_v54 }
0x11ba   :  { %vm2434_vm15 = vmor %vm2432_vm10, %vm2433_vm8 }
0x11bb   :  { %v2428_v59 = vmul.f32 %v2971_v54, %v2427_v51 }
0x11bd   :  { %v2429_v9 = vmul.f32 0.5, %v2428_v59 }
0x11bf   :  { %v2430_v24 = vsub.f32 1.5, %v2429_v9 }
0x11c1   :  { %v2431_v0 = vmul.f32 %v2971_v54, %v2430_v24 }
0x11c3   :  { %v2435_v49 = vsel %vm2434_vm15, %v2971_v54, %v2431_v0 }
0x11c4   :  { %v2436_v61 = vmul.f32 %v2435_v49, %v2415_v11 }
0x11c6   :  { %2719 = vmatmul.msk.f32.vlgmr.msrb.gmra.mxu3 %vm85_vm9, %v2436_v61 }
0x1249   :  { %v2463_v20 = vpop.f32.mrf.mxu3 }
0x124a   :  { %v2464_v3 = vadd.f32 %v2739_v2, %v2463_v20 }
0x124c   :  { %v2466_v7 = vmax.f32 %v2464_v3, 0.0 }
0x124e   :  { %v2468_v47 = vsel %vm2467_vm11, %v2466_v7, 0.0 }
0x124f   :  { %v2469_v19 = vrot.slane %v2468_v47, 4 }
0x1251   :  { %v2470_v62 = vadd.f32 %v2469_v19, %v2468_v47 }
0x1253   :  { %v2471_v22 = vrot.slane %v2470_v62, 2 }
0x1255   :  { %v2472_v37 = vadd.f32 %v2471_v22, %v2470_v62 }
0x1257   :  { %v2473_v16 = vrot.slane %v2472_v37, 1 }
0x1259   :  { %v2474_v31 = vadd.f32 %v2473_v16, %v2472_v37 }
0x125b   :  { %v2475_v34 = vmul.f32 %v2474_v31, %v2413_v43 }
0x125d   :  { %v2476_v53 = vsub.f32 %v2466_v7, %v2475_v34 }
0x125f   :  { %v2477_v13 = vmul.f32 %v2476_v53, %v2476_v53 }
0x1261   :  { %v2478_v5 = vsel %vm2467_vm11, %v2477_v13, 0.0 }
0x1262   :  { %v2479_v33 = vrot.slane %v2478_v5, 4 }
0x1264   :  { %v2480_v8 = vadd.f32 %v2479_v33, %v2478_v5 }
0x1266   :  { %v2481_v27 = vrot.slane %v2480_v8, 2 }
0x1268   :  { %v2482_v60 = vadd.f32 %v2481_v27, %v2480_v8 }
0x126a   :  { %v2483_v26 = vrot.slane %v2482_v60, 1 }
0x126c   :  { %v2484_v18 = vadd.f32 %v2483_v26, %v2482_v60 }
0x126e   :  { %v2485_v17 = vmul.f32 %v2484_v18, %v2413_v43  ;;  %v2741_v43 = vld [vmem:[#allocation2] ss:$0 sm:$0xff] }
0x1270   :  { %v2486_v44 = vadd.f32 1e-05, %v2485_v17 }
0x1272   :  { %2972 = vrsqrt.f32 %v2486_v44  ;;  %vm2493_vm14 = vweird.f32 %v2486_v44 }
0x1278   :  { %v2973_v23 = vpop.eup %2972 }
0x1279   :  { %v2488_v21 = vmul.f32 %v2973_v23, %v2486_v44  ;;  %vm2494_vm9 = vweird.f32 %v2973_v23 }
0x127a   :  { %vm2495_vm0 = vmor %vm2493_vm14, %vm2494_vm9 }
0x127b   :  { %v2489_v56 = vmul.f32 %v2973_v23, %v2488_v21 }
0x127d   :  { %v2490_v30 = vmul.f32 0.5, %v2489_v56 }
0x127f   :  { %v2491_v36 = vsub.f32 1.5, %v2490_v30 }
0x1281   :  { %v2492_v55 = vmul.f32 %v2973_v23, %v2491_v36 }
0x1283   :  { %v2496_v32 = vsel %vm2495_vm0, %v2973_v23, %v2492_v55 }
0x1284   :  { %v2497_v38 = vmul.f32 %v2496_v32, %v2476_v53 }
0x1286   :  { %2721 = vmatmul.msk.f32.vlgmr.msrb.gmra.mxu0 %vm1552_vm1, %v2497_v38 }
0x1303   :  { %v2527_v41 = vpop.f32.mrf.mxu0 }
0x1304   :  { %v2528_v39 = vadd.f32 %v2740_v57, %v2527_v41 }
0x1306   :  { %v2530_v14 = vmax.f32 %v2528_v39, 0.0 }
0x1308   :  { %2723 = vmatmul.msk.f32.vlgmr.msrb.gmra.mxu2 %vm1552_vm1, %v2530_v14  ;;  %vm2582_vm1 = vcmask 4096  }
0x138b   :  { %v2560_v45 = vpop.f32.mrf.mxu2 }
0x138c   :  { %v2561_v25 = vadd.f32 %v2741_v43, %v2560_v45 }
0x138e   :  { %v2563_v11 = vsub.f32 0.0, %v2561_v25 }
0x1390   :  { %v2564_v28 = vmul.f32 1.442695, %v2563_v11 }
0x1392   :  { %2974 = vpow2.f32 %v2564_v28 }
0x1398   :  { %v2975_v58 = vpop.eup %2974 }
0x1399   :  { %v2566_v48 = vadd.f32 1.0, %v2975_v58 }
0x139b   :  { %2976 = vrcp.f32 %v2566_v48  ;;  %v2578_v63 = vand.u32 2147483648, %v2566_v48  ;;  %v2576_v50 = vand.u32 2147483647, %v2566_v48  ;;  %vm2572_vm2 = vweird.f32 %v2566_v48 }
0x139d   :  { %v2579_v35 = vor.u32 1.1754944e-38, %v2578_v63  ;;  %vm2577_vm13 = vcmp.eq.f32.partialorder %v2576_v50, 8.507059e+37 }
0x13a1   :  { %v2977_v42 = vpop.eup %2976 }
0x13a2   :  { %v2568_v12 = vmul.f32 %v2977_v42, %v2566_v48  ;;  %vm2573_vm7 = vweird.f32 %v2977_v42 }
0x13a3   :  { %vm2574_vm12 = vmor %vm2572_vm2, %vm2573_vm7 }
0x13a4   :  { %v2569_v29 = vsub.f32 1.0, %v2568_v12 }
0x13a6   :  { %v2570_v6 = vmul.f32 %v2977_v42, %v2569_v29 }
0x13a8   :  { %v2571_v52 = vadd.f32 %v2977_v42, %v2570_v6 }
0x13aa   :  { %v2575_v1 = vsel %vm2574_vm12, %v2977_v42, %v2571_v52 }
0x13ab   :  { %v2580_v54 = vsel %vm2577_vm13, %v2579_v35, %v2575_v1 }
0x13ac   :  { %2583 = vst.msk [vmem:[%s4024_s20] sm:$0x1f] %vm2582_vm1, %v2580_v54 }

</bundles_post_ra>
